<compile_context>
chip_gen: v6e
topology: v6e:2x2x1
jax: 0.10.0
libtpu: 0.0.40
codegen_flags: <defaults>
</compile_context>

<pallas_src>
import functools

import jax
import jax.numpy as jnp
from jax import lax
from jax.experimental import pallas as pl
from jax.experimental.pallas import tpu as pltpu

NEG_SLOPE = 0.2


def _leaky(x):
    # leaky_relu with slope 0.2 == max(x, 0.2*x): 2 VPU ops instead of 3.
    return jnp.maximum(x, NEG_SLOPE * x)


def fold_bn(gamma, beta, mean, var, eps=1e-5):
    """Inference BatchNorm folded to per-channel (scale, bias)."""
    scale = gamma / jnp.sqrt(var + eps)
    return scale, beta - mean * scale


# ---------------------------------------------------------------------------
# Kernel 1: streaming feature extractor + global max over points.
#   grid = (core_split, B, tiles_per_core)
#   x block = (1, tile_n, K*6)        channels*neighbours on lanes (lane-dense)
#   output  = (core_split, B, 1, 1024) resident running-max accumulator per
#             (core, batch), revisited across the "arbitrary" tile axis.
# ---------------------------------------------------------------------------
def _feature_kernel(x_ref,
                    w1_ref, b1_ref,
                    w2_ref, b2_ref,
                    w3_ref, b3_ref,
                    g_ref,
                    *, tile_n, k, n_valid, n_pad, tiles_per_core):
    c = pl.program_id(0)        # core-split index (v7x megacore robustness)
    nt = pl.program_id(2)       # N-tile index within this core's share

    @pl.when(nt == 0)
    def _init():
        g_ref[...] = jnp.full(g_ref.shape, -jnp.inf, dtype=g_ref.dtype)

    x = x_ref[0]                                             # (tile_n, k*6) bf16

    # conv1 (1x1, 6->64) for all k neighbours in ONE matmul via a
    # block-diagonal (k*6, k*64) weight (BN1 scale pre-folded, bias tiled).
    h1 = jnp.dot(x, w1_ref[...], preferred_element_type=jnp.float32)
    h1 = _leaky(h1 + b1_ref[...])                            # (tile_n, k*64) f32

    # conv2 (64->128) + max over the k neighbours, one neighbour at a time so
    # the peak live intermediate is (tile_n, 128) instead of (k*tile_n, 128).
    m = None
    for j in range(k):
        h1_j = h1[:, j * 64:(j + 1) * 64].astype(jnp.bfloat16)
        h2_j = jnp.dot(h1_j, w2_ref[...], preferred_element_type=jnp.float32)
        h2_j = _leaky(h2_j + b2_ref[...])                    # (tile_n, 128) f32
        m = h2_j if m is None else jnp.maximum(m, h2_j)

    # conv3 (k=1, 128->1024) + BN1d(1024) + leaky_relu.
    h3 = jnp.dot(m.astype(jnp.bfloat16), w3_ref[...],
                 preferred_element_type=jnp.float32)
    h3 = _leaky(h3 + b3_ref[...])                            # (tile_n, 1024) f32

    # Mask rows that are only N-padding; code is emitted only if padding
    # exists at all (static check).
    if n_pad != n_valid:
        row = ((c * tiles_per_core + nt) * tile_n
               + lax.broadcasted_iota(jnp.int32, (tile_n, 1), 0))
        h3 = jnp.where(row < n_valid, h3, -jnp.inf)

    part = jnp.max(h3, axis=0).reshape(g_ref.shape)          # (1,1,1,1024)
    g_ref[...] = jnp.maximum(g_ref[...], part)


# ---------------------------------------------------------------------------
# Kernel 2: combine per-core partial maxima + tiny MLP head (1024->512->256->9),
# whole-in-VMEM (no grid).
# ---------------------------------------------------------------------------
def _head_kernel(g_ref, wl1_ref, b4_ref, wl2_ref, b5_ref, wt_ref, bt_ref,
                 o_ref):
    g = jnp.max(g_ref[...], axis=0)                          # (B, 1024) f32
    h = jnp.dot(g.astype(jnp.bfloat16), wl1_ref[...],
                preferred_element_type=jnp.float32)
    h = _leaky(h + b4_ref[...])                              # (B, 512)
    h = jnp.dot(h.astype(jnp.bfloat16), wl2_ref[...],
                preferred_element_type=jnp.float32)
    h = _leaky(h + b5_ref[...])                              # (B, 256)
    o = jnp.dot(h.astype(jnp.bfloat16), wt_ref[...],
                preferred_element_type=jnp.float32) + bt_ref[...]
    o_ref[...] = o.astype(o_ref.dtype)                       # (B, 9)


# ---------------------------------------------------------------------------
# Wrapper
# ---------------------------------------------------------------------------
def transform_net_forward(x, p, *, tile_n=256, core_split=2):
    """x: (B, 6, N, K) as in the PyTorch module.  Returns (B, 3, 3)."""
    B, cin, N, K = x.shape
    f32, bf16 = jnp.float32, jnp.bfloat16

    # Input relayout fused with the (mandatory) bf16 cast: (B,6,N,K) ->
    # (B, N, K*6).  Points on sublanes, (neighbour, channel) on lanes; the
    # transpose/reshape rides in the same XLA copy fusion as the cast, so it
    # costs no extra HBM round trip vs. a plain cast.
    xt = jnp.transpose(x, (0, 2, 3, 1)).reshape(B, N, K * cin).astype(bf16)

    tile_n = min(tile_n, ((N + 7) // 8) * 8)
    tile_n = max(8, (tile_n // 8) * 8)                        # multiple of 8
    core_split = max(1, int(core_split))
    tiles_per_core = pl.cdiv(pl.cdiv(N, tile_n), core_split)
    n_tiles = tiles_per_core * core_split
    n_pad = n_tiles * tile_n
    if n_pad != N:
        xt = jnp.pad(xt, ((0, 0), (0, n_pad - N), (0, 0)))

    # Weights: BN scale folded in, laid out for `activations @ W`, cast bf16.
    w1 = p['conv1_w'].T * p['bn1_s'][None, :]                 # (6, 64) f32
    w1bd = jnp.kron(jnp.eye(K, dtype=f32), w1).astype(bf16)   # (K*6, K*64)
    b1t = jnp.tile(p['bn1_b'], K).reshape(1, K * 64).astype(f32)
    w2 = (p['conv2_w'].T * p['bn2_s'][None, :]).astype(bf16)  # (64, 128)
    b2 = p['bn2_b'].reshape(1, -1).astype(f32)
    w3 = (p['conv3_w'].T * p['bn3c_s'][None, :]).astype(bf16)  # (128, 1024)
    b3 = p['bn3c_b'].reshape(1, -1).astype(f32)

    const = lambda c, b, nt: (0, 0)   # constants: DMA'd once, stay resident

    g_part = pl.pallas_call(
        functools.partial(_feature_kernel, tile_n=tile_n, k=K, n_valid=N,
                          n_pad=n_pad, tiles_per_core=tiles_per_core),
        out_shape=jax.ShapeDtypeStruct((core_split, B, 1, 1024), f32),
        grid_spec=pltpu.PrefetchScalarGridSpec(
            num_scalar_prefetch=0,
            grid=(core_split, B, tiles_per_core),
            in_specs=[
                pl.BlockSpec((1, tile_n, K * cin),
                             lambda c, b, nt: (b, c * tiles_per_core + nt, 0)),
                pl.BlockSpec(w1bd.shape, const),
                pl.BlockSpec(b1t.shape, const),
                pl.BlockSpec(w2.shape, const),
                pl.BlockSpec(b2.shape, const),
                pl.BlockSpec(w3.shape, const),
                pl.BlockSpec(b3.shape, const),
            ],
            out_specs=pl.BlockSpec((1, 1, 1, 1024),
                                   lambda c, b, nt: (c, b, 0, 0)),
        ),
        compiler_params=pltpu.CompilerParams(
            dimension_semantics=("parallel", "parallel", "arbitrary"),
            vmem_limit_bytes=48 * 1024 * 1024,
        ),
    )(xt, w1bd, b1t, w2, b2, w3, b3)

    g_part = g_part.reshape(core_split, B, 1024)

    # Tiny MLP head, whole-in-VMEM (BN scales folded into weights).
    wl1 = (p['lin1_w'].T * p['bn3_s'][None, :]).astype(bf16)  # (1024, 512)
    b4 = p['bn3_b'].reshape(1, -1).astype(f32)
    wl2 = (p['lin2_w'].T * p['bn4_s'][None, :]).astype(bf16)  # (512, 256)
    b5 = p['bn4_b'].reshape(1, -1).astype(f32)
    wt = p['tr_w'].T.astype(bf16)                             # (256, 9)
    bt = p['tr_b'].reshape(1, -1).astype(f32)

    vmem = pl.BlockSpec(memory_space=pltpu.MemorySpace.VMEM)
    out9 = pl.pallas_call(
        _head_kernel,
        out_shape=jax.ShapeDtypeStruct((B, 9), f32),
        in_specs=[vmem] * 7,
        out_specs=vmem,
    )(g_part, wl1, b4, wl2, b5, wt, bt)
    return out9.reshape(B, 3, 3)


# ---------------------------------------------------------------------------
# Pure-JAX reference mirroring the PyTorch forward (folded-BN, f32 math).
# ---------------------------------------------------------------------------
def transform_net_ref(x, p):
    B = x.shape[0]
    h = jnp.einsum('oc,bcnk->bonk', p['conv1_w'], x)
    h = _leaky(h * p['bn1_s'][None, :, None, None] + p['bn1_b'][None, :, None, None])
    h = jnp.einsum('oc,bcnk->bonk', p['conv2_w'], h)
    h = _leaky(h * p['bn2_s'][None, :, None, None] + p['bn2_b'][None, :, None, None])
    h = h.max(axis=-1)                                        # (B, 128, N)
    h = jnp.einsum('oc,bcn->bon', p['conv3_w'], h)
    h = _leaky(h * p['bn3c_s'][None, :, None] + p['bn3c_b'][None, :, None])
    h = h.max(axis=-1)                                        # (B, 1024)
    h = _leaky((h @ p['lin1_w'].T) * p['bn3_s'] + p['bn3_b'])
    h = _leaky((h @ p['lin2_w'].T) * p['bn4_s'] + p['bn4_b'])
    out = h @ p['tr_w'].T + p['tr_b']
    return out.reshape(B, 3, 3)


if __name__ == "__main__":
    B, N, K = 2, 40, 16   # small shapes; channel widths 6/64/128/1024 fixed by module

    keys = iter(jax.random.split(jax.random.PRNGKey(0), 32))

    def rnd(shape, scale):
        return jax.random.normal(next(keys), shape, dtype=jnp.float32) * scale

    x = rnd((B, 6, N, K), 1.0)

    # Conv / Linear weights in PyTorch (out, in) layout, ~1/sqrt(fan_in) scale.
    conv1_w = rnd((64, 6), 6 ** -0.5)
    conv2_w = rnd((128, 64), 64 ** -0.5)
    conv3_w = rnd((1024, 128), 128 ** -0.5)
    lin1_w = rnd((512, 1024), 1024 ** -0.5)
    lin2_w = rnd((256, 512), 512 ** -0.5)
    # Module inits transform.weight to 0 and bias to eye(3); use a small random
    # weight so the final matmul is actually exercised, keep the identity bias.
    tr_w = rnd((9, 256), 0.01)
    tr_b = jnp.eye(3, dtype=jnp.float32).reshape(9)

    def bn_params(c):
        gamma = 1.0 + 0.1 * rnd((c,), 1.0)
        beta = 0.1 * rnd((c,), 1.0)
        mean = 0.1 * rnd((c,), 1.0)
        var = jnp.abs(rnd((c,), 1.0)) + 0.5
        return fold_bn(gamma, beta, mean, var)

    s1, b1 = bn_params(64)
    s2, b2 = bn_params(128)
    s3c, b3c = bn_params(1024)   # BN1d(1024) captured inside conv3
    s4, b4 = bn_params(512)      # re-bound self.bn3 = BN1d(512)
    s5, b5 = bn_params(256)      # bn4

    params = dict(conv1_w=conv1_w, conv2_w=conv2_w, conv3_w=conv3_w,
                  lin1_w=lin1_w, lin2_w=lin2_w, tr_w=tr_w, tr_b=tr_b,
                  bn1_s=s1, bn1_b=b1, bn2_s=s2, bn2_b=b2,
                  bn3c_s=s3c, bn3c_b=b3c, bn3_s=s4, bn3_b=b4,
                  bn4_s=s5, bn4_b=b5)

    out = transform_net_forward(x, params)          # tile_n auto-clamped to N
    out = jax.block_until_ready(out)
    assert out.shape == (B, 3, 3)

    # Reference in f32.  The kernel intentionally feeds the MXU bf16 inputs,
    # so round x and the matmul weights through bf16 for the reference too;
    # the remaining difference is the bf16 rounding of intermediate
    # activations (f32 accumulation is kept in the kernel).
    rt = lambda a: a.astype(jnp.bfloat16).astype(jnp.float32)
    p_ref = dict(params)
    for name in ('conv1_w', 'conv2_w', 'conv3_w', 'lin1_w', 'lin2_w', 'tr_w'):
        p_ref[name] = rt(params[name])
    ref = transform_net_ref(rt(x), p_ref)

    err = jnp.max(jnp.abs(out - ref))
    assert jnp.allclose(out, ref, atol=5e-2, rtol=5e-2), f"mismatch, max err {err}"

    print("KERNEL_OK")
</pallas_src>

<mosaic_0001>
module attributes {stable_mosaic.version = 11 : i64} {
  func.func @_feature_kernel(%arg0: i32, %arg1: i32, %arg2: i32, %arg3: memref<1x40x96xbf16, #tpu.memory_space<vmem>>, %arg4: memref<96x1024xbf16, #tpu.memory_space<vmem>>, %arg5: memref<1x1024xf32, #tpu.memory_space<vmem>>, %arg6: memref<64x128xbf16, #tpu.memory_space<vmem>>, %arg7: memref<1x128xf32, #tpu.memory_space<vmem>>, %arg8: memref<128x1024xbf16, #tpu.memory_space<vmem>>, %arg9: memref<1x1024xf32, #tpu.memory_space<vmem>>, %arg10: memref<1x1x1x1024xf32, #tpu.memory_space<vmem>>) attributes {dimension_semantics = [#tpu.dimension_semantics<parallel>, #tpu.dimension_semantics<parallel>, #tpu.dimension_semantics<arbitrary>], iteration_bounds = array<i64: 2, 2, 1>, scalar_prefetch = 0 : i64, scratch_operands = 0 : i64, tpu.core_type = #tpu.core_type<tc>, window_params = [{transform_indices = @transform_0, window_bounds = array<i64: 1, 40, 96>}, {pipeline_mode = #tpu.pipeline_mode<synchronous>, transform_indices = @transform_1, window_bounds = array<i64: 96, 1024>}, {pipeline_mode = #tpu.pipeline_mode<synchronous>, transform_indices = @transform_2, window_bounds = array<i64: 1, 1024>}, {pipeline_mode = #tpu.pipeline_mode<synchronous>, transform_indices = @transform_3, window_bounds = array<i64: 64, 128>}, {pipeline_mode = #tpu.pipeline_mode<synchronous>, transform_indices = @transform_4, window_bounds = array<i64: 1, 128>}, {pipeline_mode = #tpu.pipeline_mode<synchronous>, transform_indices = @transform_5, window_bounds = array<i64: 128, 1024>}, {pipeline_mode = #tpu.pipeline_mode<synchronous>, transform_indices = @transform_6, window_bounds = array<i64: 1, 1024>}, {transform_indices = @transform_7, window_bounds = array<i64: 1, 1, 1, 1024>}]} {
    %c0_i32 = arith.constant 0 : i32
    %0 = arith.cmpi eq, %arg2, %c0_i32 : i32
    %1 = arith.extui %0 : i1 to i32
    %c0_i32_0 = arith.constant 0 : i32
    %2 = arith.cmpi ne, %1, %c0_i32_0 : i32
    scf.if %2 {
      %cst_121 = arith.constant 0xFF800000 : f32
      %214 = vector.broadcast %cst_121 : f32 to vector<1x1x1x1024xf32>
      %c0_122 = arith.constant 0 : index
      %c0_123 = arith.constant 0 : index
      %c0_124 = arith.constant 0 : index
      %c0_125 = arith.constant 0 : index
      %215 = vector.load %arg10[%c0_122, %c0_123, %c0_124, %c0_125] : memref<1x1x1x1024xf32, #tpu.memory_space<vmem>>, vector<1x1x1x1024xf32>
      tpu.vector_store %arg10[%c0_122, %c0_123, %c0_124, %c0_125], %214 {strides = array<i32>} : memref<1x1x1x1024xf32, #tpu.memory_space<vmem>>, vector<1x1x1x1024xf32>,
    } else {
    }
    %c0 = arith.constant 0 : index
    %c0_1 = arith.constant 0 : index
    %c0_2 = arith.constant 0 : index
    %3 = vector.load %arg3[%c0, %c0_1, %c0_2] : memref<1x40x96xbf16, #tpu.memory_space<vmem>>, vector<1x40x96xbf16>
    %4 = vector.shape_cast %3 : vector<1x40x96xbf16> to vector<40x96xbf16>
    %c0_3 = arith.constant 0 : index
    %c0_4 = arith.constant 0 : index
    %5 = vector.load %arg4[%c0_3, %c0_4] : memref<96x1024xbf16, #tpu.memory_space<vmem>>, vector<96x1024xbf16>
    %cst = arith.constant dense<0.000000e+00> : vector<40x1024xf32>
    %6 = tpu.matmul %4, %5, %cst {dimension_numbers = #tpu.dot_dimension_numbers<[1], [0], [0], [1], [0, 0, 1, 1], [], []>} : vector<40x96xbf16>, vector<96x1024xbf16>, vector<40x1024xf32> -> vector<40x1024xf32>
    %c0_5 = arith.constant 0 : index
    %c0_6 = arith.constant 0 : index
    %7 = vector.load %arg5[%c0_5, %c0_6] : memref<1x1024xf32, #tpu.memory_space<vmem>>, vector<1x1024xf32>
    %8 = vector.broadcast %7 : vector<1x1024xf32> to vector<40x1024xf32>
    %9 = arith.addf %6, %8 : vector<40x1024xf32>
    %cst_7 = arith.constant 2.000000e-01 : f32
    %10 = vector.broadcast %cst_7 : f32 to vector<40x1024xf32>
    %11 = arith.mulf %10, %9 : vector<40x1024xf32>
    %12 = arith.maximumf %9, %11 : vector<40x1024xf32>
    %13 = vector.extract_strided_slice %12 {offsets = [0, 0], sizes = [40, 64], strides = [1, 1]} : vector<40x1024xf32> to vector<40x64xf32>
    %14 = arith.truncf %13 : vector<40x64xf32> to vector<40x64xbf16>
    %c0_8 = arith.constant 0 : index
    %c0_9 = arith.constant 0 : index
    %15 = vector.load %arg6[%c0_8, %c0_9] : memref<64x128xbf16, #tpu.memory_space<vmem>>, vector<64x128xbf16>
    %cst_10 = arith.constant dense<0.000000e+00> : vector<40x128xf32>
    %16 = tpu.matmul %14, %15, %cst_10 {dimension_numbers = #tpu.dot_dimension_numbers<[1], [0], [0], [1], [0, 0, 1, 1], [], []>} : vector<40x64xbf16>, vector<64x128xbf16>, vector<40x128xf32> -> vector<40x128xf32>
    %c0_11 = arith.constant 0 : index
    %c0_12 = arith.constant 0 : index
    %17 = vector.load %arg7[%c0_11, %c0_12] : memref<1x128xf32, #tpu.memory_space<vmem>>, vector<1x128xf32>
    %18 = vector.broadcast %17 : vector<1x128xf32> to vector<40x128xf32>
    %19 = arith.addf %16, %18 : vector<40x128xf32>
    %cst_13 = arith.constant 2.000000e-01 : f32
    %20 = vector.broadcast %cst_13 : f32 to vector<40x128xf32>
    %21 = arith.mulf %20, %19 : vector<40x128xf32>
    %22 = arith.maximumf %19, %21 : vector<40x128xf32>
    %23 = vector.extract_strided_slice %12 {offsets = [0, 64], sizes = [40, 64], strides = [1, 1]} : vector<40x1024xf32> to vector<40x64xf32>
    %24 = arith.truncf %23 : vector<40x64xf32> to vector<40x64xbf16>
    %c0_14 = arith.constant 0 : index
    %c0_15 = arith.constant 0 : index
    %25 = vector.load %arg6[%c0_14, %c0_15] : memref<64x128xbf16, #tpu.memory_space<vmem>>, vector<64x128xbf16>
    %cst_16 = arith.constant dense<0.000000e+00> : vector<40x128xf32>
    %26 = tpu.matmul %24, %25, %cst_16 {dimension_numbers = #tpu.dot_dimension_numbers<[1], [0], [0], [1], [0, 0, 1, 1], [], []>} : vector<40x64xbf16>, vector<64x128xbf16>, vector<40x128xf32> -> vector<40x128xf32>
    %c0_17 = arith.constant 0 : index
    %c0_18 = arith.constant 0 : index
    %27 = vector.load %arg7[%c0_17, %c0_18] : memref<1x128xf32, #tpu.memory_space<vmem>>, vector<1x128xf32>
    %28 = vector.broadcast %27 : vector<1x128xf32> to vector<40x128xf32>
    %29 = arith.addf %26, %28 : vector<40x128xf32>
    %cst_19 = arith.constant 2.000000e-01 : f32
    %30 = vector.broadcast %cst_19 : f32 to vector<40x128xf32>
    %31 = arith.mulf %30, %29 : vector<40x128xf32>
    %32 = arith.maximumf %29, %31 : vector<40x128xf32>
    %33 = arith.maximumf %22, %32 : vector<40x128xf32>
    %34 = vector.extract_strided_slice %12 {offsets = [0, 128], sizes = [40, 64], strides = [1, 1]} : vector<40x1024xf32> to vector<40x64xf32>
    %35 = arith.truncf %34 : vector<40x64xf32> to vector<40x64xbf16>
    %c0_20 = arith.constant 0 : index
    %c0_21 = arith.constant 0 : index
    %36 = vector.load %arg6[%c0_20, %c0_21] : memref<64x128xbf16, #tpu.memory_space<vmem>>, vector<64x128xbf16>
    %cst_22 = arith.constant dense<0.000000e+00> : vector<40x128xf32>
    %37 = tpu.matmul %35, %36, %cst_22 {dimension_numbers = #tpu.dot_dimension_numbers<[1], [0], [0], [1], [0, 0, 1, 1], [], []>} : vector<40x64xbf16>, vector<64x128xbf16>, vector<40x128xf32> -> vector<40x128xf32>
    %c0_23 = arith.constant 0 : index
    %c0_24 = arith.constant 0 : index
    %38 = vector.load %arg7[%c0_23, %c0_24] : memref<1x128xf32, #tpu.memory_space<vmem>>, vector<1x128xf32>
    %39 = vector.broadcast %38 : vector<1x128xf32> to vector<40x128xf32>
    %40 = arith.addf %37, %39 : vector<40x128xf32>
    %cst_25 = arith.constant 2.000000e-01 : f32
    %41 = vector.broadcast %cst_25 : f32 to vector<40x128xf32>
    %42 = arith.mulf %41, %40 : vector<40x128xf32>
    %43 = arith.maximumf %40, %42 : vector<40x128xf32>
    %44 = arith.maximumf %33, %43 : vector<40x128xf32>
    %45 = vector.extract_strided_slice %12 {offsets = [0, 192], sizes = [40, 64], strides = [1, 1]} : vector<40x1024xf32> to vector<40x64xf32>
    %46 = arith.truncf %45 : vector<40x64xf32> to vector<40x64xbf16>
    %c0_26 = arith.constant 0 : index
    %c0_27 = arith.constant 0 : index
    %47 = vector.load %arg6[%c0_26, %c0_27] : memref<64x128xbf16, #tpu.memory_space<vmem>>, vector<64x128xbf16>
    %cst_28 = arith.constant dense<0.000000e+00> : vector<40x128xf32>
    %48 = tpu.matmul %46, %47, %cst_28 {dimension_numbers = #tpu.dot_dimension_numbers<[1], [0], [0], [1], [0, 0, 1, 1], [], []>} : vector<40x64xbf16>, vector<64x128xbf16>, vector<40x128xf32> -> vector<40x128xf32>
    %c0_29 = arith.constant 0 : index
    %c0_30 = arith.constant 0 : index
    %49 = vector.load %arg7[%c0_29, %c0_30] : memref<1x128xf32, #tpu.memory_space<vmem>>, vector<1x128xf32>
    %50 = vector.broadcast %49 : vector<1x128xf32> to vector<40x128xf32>
    %51 = arith.addf %48, %50 : vector<40x128xf32>
    %cst_31 = arith.constant 2.000000e-01 : f32
    %52 = vector.broadcast %cst_31 : f32 to vector<40x128xf32>
    %53 = arith.mulf %52, %51 : vector<40x128xf32>
    %54 = arith.maximumf %51, %53 : vector<40x128xf32>
    %55 = arith.maximumf %44, %54 : vector<40x128xf32>
    %56 = vector.extract_strided_slice %12 {offsets = [0, 256], sizes = [40, 64], strides = [1, 1]} : vector<40x1024xf32> to vector<40x64xf32>
    %57 = arith.truncf %56 : vector<40x64xf32> to vector<40x64xbf16>
    %c0_32 = arith.constant 0 : index
    %c0_33 = arith.constant 0 : index
    %58 = vector.load %arg6[%c0_32, %c0_33] : memref<64x128xbf16, #tpu.memory_space<vmem>>, vector<64x128xbf16>
    %cst_34 = arith.constant dense<0.000000e+00> : vector<40x128xf32>
    %59 = tpu.matmul %57, %58, %cst_34 {dimension_numbers = #tpu.dot_dimension_numbers<[1], [0], [0], [1], [0, 0, 1, 1], [], []>} : vector<40x64xbf16>, vector<64x128xbf16>, vector<40x128xf32> -> vector<40x128xf32>
    %c0_35 = arith.constant 0 : index
    %c0_36 = arith.constant 0 : index
    %60 = vector.load %arg7[%c0_35, %c0_36] : memref<1x128xf32, #tpu.memory_space<vmem>>, vector<1x128xf32>
    %61 = vector.broadcast %60 : vector<1x128xf32> to vector<40x128xf32>
    %62 = arith.addf %59, %61 : vector<40x128xf32>
    %cst_37 = arith.constant 2.000000e-01 : f32
    %63 = vector.broadcast %cst_37 : f32 to vector<40x128xf32>
    %64 = arith.mulf %63, %62 : vector<40x128xf32>
    %65 = arith.maximumf %62, %64 : vector<40x128xf32>
    %66 = arith.maximumf %55, %65 : vector<40x128xf32>
    %67 = vector.extract_strided_slice %12 {offsets = [0, 320], sizes = [40, 64], strides = [1, 1]} : vector<40x1024xf32> to vector<40x64xf32>
    %68 = arith.truncf %67 : vector<40x64xf32> to vector<40x64xbf16>
    %c0_38 = arith.constant 0 : index
    %c0_39 = arith.constant 0 : index
    %69 = vector.load %arg6[%c0_38, %c0_39] : memref<64x128xbf16, #tpu.memory_space<vmem>>, vector<64x128xbf16>
    %cst_40 = arith.constant dense<0.000000e+00> : vector<40x128xf32>
    %70 = tpu.matmul %68, %69, %cst_40 {dimension_numbers = #tpu.dot_dimension_numbers<[1], [0], [0], [1], [0, 0, 1, 1], [], []>} : vector<40x64xbf16>, vector<64x128xbf16>, vector<40x128xf32> -> vector<40x128xf32>
    %c0_41 = arith.constant 0 : index
    %c0_42 = arith.constant 0 : index
    %71 = vector.load %arg7[%c0_41, %c0_42] : memref<1x128xf32, #tpu.memory_space<vmem>>, vector<1x128xf32>
    %72 = vector.broadcast %71 : vector<1x128xf32> to vector<40x128xf32>
    %73 = arith.addf %70, %72 : vector<40x128xf32>
    %cst_43 = arith.constant 2.000000e-01 : f32
    %74 = vector.broadcast %cst_43 : f32 to vector<40x128xf32>
    %75 = arith.mulf %74, %73 : vector<40x128xf32>
    %76 = arith.maximumf %73, %75 : vector<40x128xf32>
    %77 = arith.maximumf %66, %76 : vector<40x128xf32>
    %78 = vector.extract_strided_slice %12 {offsets = [0, 384], sizes = [40, 64], strides = [1, 1]} : vector<40x1024xf32> to vector<40x64xf32>
    %79 = arith.truncf %78 : vector<40x64xf32> to vector<40x64xbf16>
    %c0_44 = arith.constant 0 : index
    %c0_45 = arith.constant 0 : index
    %80 = vector.load %arg6[%c0_44, %c0_45] : memref<64x128xbf16, #tpu.memory_space<vmem>>, vector<64x128xbf16>
    %cst_46 = arith.constant dense<0.000000e+00> : vector<40x128xf32>
    %81 = tpu.matmul %79, %80, %cst_46 {dimension_numbers = #tpu.dot_dimension_numbers<[1], [0], [0], [1], [0, 0, 1, 1], [], []>} : vector<40x64xbf16>, vector<64x128xbf16>, vector<40x128xf32> -> vector<40x128xf32>
    %c0_47 = arith.constant 0 : index
    %c0_48 = arith.constant 0 : index
    %82 = vector.load %arg7[%c0_47, %c0_48] : memref<1x128xf32, #tpu.memory_space<vmem>>, vector<1x128xf32>
    %83 = vector.broadcast %82 : vector<1x128xf32> to vector<40x128xf32>
    %84 = arith.addf %81, %83 : vector<40x128xf32>
    %cst_49 = arith.constant 2.000000e-01 : f32
    %85 = vector.broadcast %cst_49 : f32 to vector<40x128xf32>
    %86 = arith.mulf %85, %84 : vector<40x128xf32>
    %87 = arith.maximumf %84, %86 : vector<40x128xf32>
    %88 = arith.maximumf %77, %87 : vector<40x128xf32>
    %89 = vector.extract_strided_slice %12 {offsets = [0, 448], sizes = [40, 64], strides = [1, 1]} : vector<40x1024xf32> to vector<40x64xf32>
    %90 = arith.truncf %89 : vector<40x64xf32> to vector<40x64xbf16>
    %c0_50 = arith.constant 0 : index
    %c0_51 = arith.constant 0 : index
    %91 = vector.load %arg6[%c0_50, %c0_51] : memref<64x128xbf16, #tpu.memory_space<vmem>>, vector<64x128xbf16>
    %cst_52 = arith.constant dense<0.000000e+00> : vector<40x128xf32>
    %92 = tpu.matmul %90, %91, %cst_52 {dimension_numbers = #tpu.dot_dimension_numbers<[1], [0], [0], [1], [0, 0, 1, 1], [], []>} : vector<40x64xbf16>, vector<64x128xbf16>, vector<40x128xf32> -> vector<40x128xf32>
    %c0_53 = arith.constant 0 : index
    %c0_54 = arith.constant 0 : index
    %93 = vector.load %arg7[%c0_53, %c0_54] : memref<1x128xf32, #tpu.memory_space<vmem>>, vector<1x128xf32>
    %94 = vector.broadcast %93 : vector<1x128xf32> to vector<40x128xf32>
    %95 = arith.addf %92, %94 : vector<40x128xf32>
    %cst_55 = arith.constant 2.000000e-01 : f32
    %96 = vector.broadcast %cst_55 : f32 to vector<40x128xf32>
    %97 = arith.mulf %96, %95 : vector<40x128xf32>
    %98 = arith.maximumf %95, %97 : vector<40x128xf32>
    %99 = arith.maximumf %88, %98 : vector<40x128xf32>
    %100 = vector.extract_strided_slice %12 {offsets = [0, 512], sizes = [40, 64], strides = [1, 1]} : vector<40x1024xf32> to vector<40x64xf32>
    %101 = arith.truncf %100 : vector<40x64xf32> to vector<40x64xbf16>
    %c0_56 = arith.constant 0 : index
    %c0_57 = arith.constant 0 : index
    %102 = vector.load %arg6[%c0_56, %c0_57] : memref<64x128xbf16, #tpu.memory_space<vmem>>, vector<64x128xbf16>
    %cst_58 = arith.constant dense<0.000000e+00> : vector<40x128xf32>
    %103 = tpu.matmul %101, %102, %cst_58 {dimension_numbers = #tpu.dot_dimension_numbers<[1], [0], [0], [1], [0, 0, 1, 1], [], []>} : vector<40x64xbf16>, vector<64x128xbf16>, vector<40x128xf32> -> vector<40x128xf32>
    %c0_59 = arith.constant 0 : index
    %c0_60 = arith.constant 0 : index
    %104 = vector.load %arg7[%c0_59, %c0_60] : memref<1x128xf32, #tpu.memory_space<vmem>>, vector<1x128xf32>
    %105 = vector.broadcast %104 : vector<1x128xf32> to vector<40x128xf32>
    %106 = arith.addf %103, %105 : vector<40x128xf32>
    %cst_61 = arith.constant 2.000000e-01 : f32
    %107 = vector.broadcast %cst_61 : f32 to vector<40x128xf32>
    %108 = arith.mulf %107, %106 : vector<40x128xf32>
    %109 = arith.maximumf %106, %108 : vector<40x128xf32>
    %110 = arith.maximumf %99, %109 : vector<40x128xf32>
    %111 = vector.extract_strided_slice %12 {offsets = [0, 576], sizes = [40, 64], strides = [1, 1]} : vector<40x1024xf32> to vector<40x64xf32>
    %112 = arith.truncf %111 : vector<40x64xf32> to vector<40x64xbf16>
    %c0_62 = arith.constant 0 : index
    %c0_63 = arith.constant 0 : index
    %113 = vector.load %arg6[%c0_62, %c0_63] : memref<64x128xbf16, #tpu.memory_space<vmem>>, vector<64x128xbf16>
    %cst_64 = arith.constant dense<0.000000e+00> : vector<40x128xf32>
    %114 = tpu.matmul %112, %113, %cst_64 {dimension_numbers = #tpu.dot_dimension_numbers<[1], [0], [0], [1], [0, 0, 1, 1], [], []>} : vector<40x64xbf16>, vector<64x128xbf16>, vector<40x128xf32> -> vector<40x128xf32>
    %c0_65 = arith.constant 0 : index
    %c0_66 = arith.constant 0 : index
    %115 = vector.load %arg7[%c0_65, %c0_66] : memref<1x128xf32, #tpu.memory_space<vmem>>, vector<1x128xf32>
    %116 = vector.broadcast %115 : vector<1x128xf32> to vector<40x128xf32>
    %117 = arith.addf %114, %116 : vector<40x128xf32>
    %cst_67 = arith.constant 2.000000e-01 : f32
    %118 = vector.broadcast %cst_67 : f32 to vector<40x128xf32>
    %119 = arith.mulf %118, %117 : vector<40x128xf32>
    %120 = arith.maximumf %117, %119 : vector<40x128xf32>
    %121 = arith.maximumf %110, %120 : vector<40x128xf32>
    %122 = vector.extract_strided_slice %12 {offsets = [0, 640], sizes = [40, 64], strides = [1, 1]} : vector<40x1024xf32> to vector<40x64xf32>
    %123 = arith.truncf %122 : vector<40x64xf32> to vector<40x64xbf16>
    %c0_68 = arith.constant 0 : index
    %c0_69 = arith.constant 0 : index
    %124 = vector.load %arg6[%c0_68, %c0_69] : memref<64x128xbf16, #tpu.memory_space<vmem>>, vector<64x128xbf16>
    %cst_70 = arith.constant dense<0.000000e+00> : vector<40x128xf32>
    %125 = tpu.matmul %123, %124, %cst_70 {dimension_numbers = #tpu.dot_dimension_numbers<[1], [0], [0], [1], [0, 0, 1, 1], [], []>} : vector<40x64xbf16>, vector<64x128xbf16>, vector<40x128xf32> -> vector<40x128xf32>
    %c0_71 = arith.constant 0 : index
    %c0_72 = arith.constant 0 : index
    %126 = vector.load %arg7[%c0_71, %c0_72] : memref<1x128xf32, #tpu.memory_space<vmem>>, vector<1x128xf32>
    %127 = vector.broadcast %126 : vector<1x128xf32> to vector<40x128xf32>
    %128 = arith.addf %125, %127 : vector<40x128xf32>
    %cst_73 = arith.constant 2.000000e-01 : f32
    %129 = vector.broadcast %cst_73 : f32 to vector<40x128xf32>
    %130 = arith.mulf %129, %128 : vector<40x128xf32>
    %131 = arith.maximumf %128, %130 : vector<40x128xf32>
    %132 = arith.maximumf %121, %131 : vector<40x128xf32>
    %133 = vector.extract_strided_slice %12 {offsets = [0, 704], sizes = [40, 64], strides = [1, 1]} : vector<40x1024xf32> to vector<40x64xf32>
    %134 = arith.truncf %133 : vector<40x64xf32> to vector<40x64xbf16>
    %c0_74 = arith.constant 0 : index
    %c0_75 = arith.constant 0 : index
    %135 = vector.load %arg6[%c0_74, %c0_75] : memref<64x128xbf16, #tpu.memory_space<vmem>>, vector<64x128xbf16>
    %cst_76 = arith.constant dense<0.000000e+00> : vector<40x128xf32>
    %136 = tpu.matmul %134, %135, %cst_76 {dimension_numbers = #tpu.dot_dimension_numbers<[1], [0], [0], [1], [0, 0, 1, 1], [], []>} : vector<40x64xbf16>, vector<64x128xbf16>, vector<40x128xf32> -> vector<40x128xf32>
    %c0_77 = arith.constant 0 : index
    %c0_78 = arith.constant 0 : index
    %137 = vector.load %arg7[%c0_77, %c0_78] : memref<1x128xf32, #tpu.memory_space<vmem>>, vector<1x128xf32>
    %138 = vector.broadcast %137 : vector<1x128xf32> to vector<40x128xf32>
    %139 = arith.addf %136, %138 : vector<40x128xf32>
    %cst_79 = arith.constant 2.000000e-01 : f32
    %140 = vector.broadcast %cst_79 : f32 to vector<40x128xf32>
    %141 = arith.mulf %140, %139 : vector<40x128xf32>
    %142 = arith.maximumf %139, %141 : vector<40x128xf32>
    %143 = arith.maximumf %132, %142 : vector<40x128xf32>
    %144 = vector.extract_strided_slice %12 {offsets = [0, 768], sizes = [40, 64], strides = [1, 1]} : vector<40x1024xf32> to vector<40x64xf32>
    %145 = arith.truncf %144 : vector<40x64xf32> to vector<40x64xbf16>
    %c0_80 = arith.constant 0 : index
    %c0_81 = arith.constant 0 : index
    %146 = vector.load %arg6[%c0_80, %c0_81] : memref<64x128xbf16, #tpu.memory_space<vmem>>, vector<64x128xbf16>
    %cst_82 = arith.constant dense<0.000000e+00> : vector<40x128xf32>
    %147 = tpu.matmul %145, %146, %cst_82 {dimension_numbers = #tpu.dot_dimension_numbers<[1], [0], [0], [1], [0, 0, 1, 1], [], []>} : vector<40x64xbf16>, vector<64x128xbf16>, vector<40x128xf32> -> vector<40x128xf32>
    %c0_83 = arith.constant 0 : index
    %c0_84 = arith.constant 0 : index
    %148 = vector.load %arg7[%c0_83, %c0_84] : memref<1x128xf32, #tpu.memory_space<vmem>>, vector<1x128xf32>
    %149 = vector.broadcast %148 : vector<1x128xf32> to vector<40x128xf32>
    %150 = arith.addf %147, %149 : vector<40x128xf32>
    %cst_85 = arith.constant 2.000000e-01 : f32
    %151 = vector.broadcast %cst_85 : f32 to vector<40x128xf32>
    %152 = arith.mulf %151, %150 : vector<40x128xf32>
    %153 = arith.maximumf %150, %152 : vector<40x128xf32>
    %154 = arith.maximumf %143, %153 : vector<40x128xf32>
    %155 = vector.extract_strided_slice %12 {offsets = [0, 832], sizes = [40, 64], strides = [1, 1]} : vector<40x1024xf32> to vector<40x64xf32>
    %156 = arith.truncf %155 : vector<40x64xf32> to vector<40x64xbf16>
    %c0_86 = arith.constant 0 : index
    %c0_87 = arith.constant 0 : index
    %157 = vector.load %arg6[%c0_86, %c0_87] : memref<64x128xbf16, #tpu.memory_space<vmem>>, vector<64x128xbf16>
    %cst_88 = arith.constant dense<0.000000e+00> : vector<40x128xf32>
    %158 = tpu.matmul %156, %157, %cst_88 {dimension_numbers = #tpu.dot_dimension_numbers<[1], [0], [0], [1], [0, 0, 1, 1], [], []>} : vector<40x64xbf16>, vector<64x128xbf16>, vector<40x128xf32> -> vector<40x128xf32>
    %c0_89 = arith.constant 0 : index
    %c0_90 = arith.constant 0 : index
    %159 = vector.load %arg7[%c0_89, %c0_90] : memref<1x128xf32, #tpu.memory_space<vmem>>, vector<1x128xf32>
    %160 = vector.broadcast %159 : vector<1x128xf32> to vector<40x128xf32>
    %161 = arith.addf %158, %160 : vector<40x128xf32>
    %cst_91 = arith.constant 2.000000e-01 : f32
    %162 = vector.broadcast %cst_91 : f32 to vector<40x128xf32>
    %163 = arith.mulf %162, %161 : vector<40x128xf32>
    %164 = arith.maximumf %161, %163 : vector<40x128xf32>
    %165 = arith.maximumf %154, %164 : vector<40x128xf32>
    %166 = vector.extract_strided_slice %12 {offsets = [0, 896], sizes = [40, 64], strides = [1, 1]} : vector<40x1024xf32> to vector<40x64xf32>
    %167 = arith.truncf %166 : vector<40x64xf32> to vector<40x64xbf16>
    %c0_92 = arith.constant 0 : index
    %c0_93 = arith.constant 0 : index
    %168 = vector.load %arg6[%c0_92, %c0_93] : memref<64x128xbf16, #tpu.memory_space<vmem>>, vector<64x128xbf16>
    %cst_94 = arith.constant dense<0.000000e+00> : vector<40x128xf32>
    %169 = tpu.matmul %167, %168, %cst_94 {dimension_numbers = #tpu.dot_dimension_numbers<[1], [0], [0], [1], [0, 0, 1, 1], [], []>} : vector<40x64xbf16>, vector<64x128xbf16>, vector<40x128xf32> -> vector<40x128xf32>
    %c0_95 = arith.constant 0 : index
    %c0_96 = arith.constant 0 : index
    %170 = vector.load %arg7[%c0_95, %c0_96] : memref<1x128xf32, #tpu.memory_space<vmem>>, vector<1x128xf32>
    %171 = vector.broadcast %170 : vector<1x128xf32> to vector<40x128xf32>
    %172 = arith.addf %169, %171 : vector<40x128xf32>
    %cst_97 = arith.constant 2.000000e-01 : f32
    %173 = vector.broadcast %cst_97 : f32 to vector<40x128xf32>
    %174 = arith.mulf %173, %172 : vector<40x128xf32>
    %175 = arith.maximumf %172, %174 : vector<40x128xf32>
    %176 = arith.maximumf %165, %175 : vector<40x128xf32>
    %177 = vector.extract_strided_slice %12 {offsets = [0, 960], sizes = [40, 64], strides = [1, 1]} : vector<40x1024xf32> to vector<40x64xf32>
    %178 = arith.truncf %177 : vector<40x64xf32> to vector<40x64xbf16>
    %c0_98 = arith.constant 0 : index
    %c0_99 = arith.constant 0 : index
    %179 = vector.load %arg6[%c0_98, %c0_99] : memref<64x128xbf16, #tpu.memory_space<vmem>>, vector<64x128xbf16>
    %cst_100 = arith.constant dense<0.000000e+00> : vector<40x128xf32>
    %180 = tpu.matmul %178, %179, %cst_100 {dimension_numbers = #tpu.dot_dimension_numbers<[1], [0], [0], [1], [0, 0, 1, 1], [], []>} : vector<40x64xbf16>, vector<64x128xbf16>, vector<40x128xf32> -> vector<40x128xf32>
    %c0_101 = arith.constant 0 : index
    %c0_102 = arith.constant 0 : index
    %181 = vector.load %arg7[%c0_101, %c0_102] : memref<1x128xf32, #tpu.memory_space<vmem>>, vector<1x128xf32>
    %182 = vector.broadcast %181 : vector<1x128xf32> to vector<40x128xf32>
    %183 = arith.addf %180, %182 : vector<40x128xf32>
    %cst_103 = arith.constant 2.000000e-01 : f32
    %184 = vector.broadcast %cst_103 : f32 to vector<40x128xf32>
    %185 = arith.mulf %184, %183 : vector<40x128xf32>
    %186 = arith.maximumf %183, %185 : vector<40x128xf32>
    %187 = arith.maximumf %176, %186 : vector<40x128xf32>
    %188 = arith.truncf %187 : vector<40x128xf32> to vector<40x128xbf16>
    %c0_104 = arith.constant 0 : index
    %c0_105 = arith.constant 0 : index
    %189 = vector.load %arg8[%c0_104, %c0_105] : memref<128x1024xbf16, #tpu.memory_space<vmem>>, vector<128x1024xbf16>
    %cst_106 = arith.constant dense<0.000000e+00> : vector<40x1024xf32>
    %190 = tpu.matmul %188, %189, %cst_106 {dimension_numbers = #tpu.dot_dimension_numbers<[1], [0], [0], [1], [0, 0, 1, 1], [], []>} : vector<40x128xbf16>, vector<128x1024xbf16>, vector<40x1024xf32> -> vector<40x1024xf32>
    %c0_107 = arith.constant 0 : index
    %c0_108 = arith.constant 0 : index
    %191 = vector.load %arg9[%c0_107, %c0_108] : memref<1x1024xf32, #tpu.memory_space<vmem>>, vector<1x1024xf32>
    %192 = vector.broadcast %191 : vector<1x1024xf32> to vector<40x1024xf32>
    %193 = arith.addf %190, %192 : vector<40x1024xf32>
    %cst_109 = arith.constant 2.000000e-01 : f32
    %194 = vector.broadcast %cst_109 : f32 to vector<40x1024xf32>
    %195 = arith.mulf %194, %193 : vector<40x1024xf32>
    %196 = arith.maximumf %193, %195 : vector<40x1024xf32>
    %c1_i32 = arith.constant 1 : i32
    %197 = arith.muli %arg0, %c1_i32 : i32
    %198 = arith.addi %197, %arg2 : i32
    %c40_i32 = arith.constant 40 : i32
    %199 = arith.muli %198, %c40_i32 : i32
    %200 = tpu.iota {dimensions = array<i32: 0>} : vector<40x1xi32>
    %201 = vector.broadcast %199 : i32 to vector<40x1xi32>
    %202 = arith.addi %201, %200 : vector<40x1xi32>
    %c40_i32_110 = arith.constant 40 : i32
    %203 = vector.broadcast %c40_i32_110 : i32 to vector<40x1xi32>
    %204 = arith.cmpi slt, %202, %203 : vector<40x1xi32>
    %cst_111 = arith.constant 0xFF800000 : f32
    %205 = vector.shape_cast %204 : vector<40x1xi1> to vector<40x1xi1>
    %206 = vector.broadcast %205 : vector<40x1xi1> to vector<40x1024xi1>
    %207 = vector.broadcast %cst_111 : f32 to vector<40x1024xf32>
    %208 = arith.select %206, %196, %207 : vector<40x1024xi1>, vector<40x1024xf32>
    %cst_112 = arith.constant dense<0xFF800000> : vector<1024xf32>
    %209 = vector.multi_reduction <maximumf>, %208, %cst_112 [0] : vector<40x1024xf32> to vector<1024xf32>
    %210 = vector.shape_cast %209 : vector<1024xf32> to vector<1x1x1x1024xf32>
    %c0_113 = arith.constant 0 : index
    %c0_114 = arith.constant 0 : index
    %c0_115 = arith.constant 0 : index
    %c0_116 = arith.constant 0 : index
    %211 = vector.load %arg10[%c0_113, %c0_114, %c0_115, %c0_116] : memref<1x1x1x1024xf32, #tpu.memory_space<vmem>>, vector<1x1x1x1024xf32>
    %212 = arith.maximumf %211, %210 : vector<1x1x1x1024xf32>
    %c0_117 = arith.constant 0 : index
    %c0_118 = arith.constant 0 : index
    %c0_119 = arith.constant 0 : index
    %c0_120 = arith.constant 0 : index
    %213 = vector.load %arg10[%c0_117, %c0_118, %c0_119, %c0_120] : memref<1x1x1x1024xf32, #tpu.memory_space<vmem>>, vector<1x1x1x1024xf32>
    tpu.vector_store %arg10[%c0_117, %c0_118, %c0_119, %c0_120], %212 {strides = array<i32>} : memref<1x1x1x1024xf32, #tpu.memory_space<vmem>>, vector<1x1x1x1024xf32>,
    return
  }
  func.func @transform_0(%arg0: i32, %arg1: i32, %arg2: i32) -> (i32, i32, i32) {
    %c1_i32 = arith.constant 1 : i32
    %0 = arith.muli %arg0, %c1_i32 : i32
    %1 = arith.addi %0, %arg2 : i32
    %c0_i32 = arith.constant 0 : i32
    %c0_i32_0 = arith.constant 0 : i32
    return %arg1, %1, %c0_i32 : i32, i32, i32
  }
  func.func @transform_1(%arg0: i32, %arg1: i32, %arg2: i32) -> (i32, i32) {
    %c0_i32 = arith.constant 0 : i32
    %c0_i32_0 = arith.constant 0 : i32
    %c0_i32_1 = arith.constant 0 : i32
    return %c0_i32, %c0_i32_0 : i32, i32
  }
  func.func @transform_2(%arg0: i32, %arg1: i32, %arg2: i32) -> (i32, i32) {
    %c0_i32 = arith.constant 0 : i32
    %c0_i32_0 = arith.constant 0 : i32
    %c0_i32_1 = arith.constant 0 : i32
    return %c0_i32, %c0_i32_0 : i32, i32
  }
  func.func @transform_3(%arg0: i32, %arg1: i32, %arg2: i32) -> (i32, i32) {
    %c0_i32 = arith.constant 0 : i32
    %c0_i32_0 = arith.constant 0 : i32
    %c0_i32_1 = arith.constant 0 : i32
    return %c0_i32, %c0_i32_0 : i32, i32
  }
  func.func @transform_4(%arg0: i32, %arg1: i32, %arg2: i32) -> (i32, i32) {
    %c0_i32 = arith.constant 0 : i32
    %c0_i32_0 = arith.constant 0 : i32
    %c0_i32_1 = arith.constant 0 : i32
    return %c0_i32, %c0_i32_0 : i32, i32
  }
  func.func @transform_5(%arg0: i32, %arg1: i32, %arg2: i32) -> (i32, i32) {
    %c0_i32 = arith.constant 0 : i32
    %c0_i32_0 = arith.constant 0 : i32
    %c0_i32_1 = arith.constant 0 : i32
    return %c0_i32, %c0_i32_0 : i32, i32
  }
  func.func @transform_6(%arg0: i32, %arg1: i32, %arg2: i32) -> (i32, i32) {
    %c0_i32 = arith.constant 0 : i32
    %c0_i32_0 = arith.constant 0 : i32
    %c0_i32_1 = arith.constant 0 : i32
    return %c0_i32, %c0_i32_0 : i32, i32
  }
  func.func @transform_7(%arg0: i32, %arg1: i32, %arg2: i32) -> (i32, i32, i32, i32) {
    %c0_i32 = arith.constant 0 : i32
    %c0_i32_0 = arith.constant 0 : i32
    %c0_i32_1 = arith.constant 0 : i32
    return %arg0, %arg1, %c0_i32, %c0_i32_0 : i32, i32, i32, i32
  }
}

</mosaic_0001>

<bundles_post_ra>
// kernel: tpu_custom_call.1
= control target key start
LH: loop header
LB: loop body
LE: loop exit
PB: predicated region body
PF: predicated region fallthrough
CT: control target
= control target key end

     0   :  { %s5846_s0 = inlined_call_operand.hbm [shape: bf16[2,80,96], index: 0, kind: input, shape index: {}]   ;;  %s5847_s1 = inlined_call_operand.hbm [shape: bf16[96,1024], index: 1, kind: input, shape index: {}]   ;;  %s5848_s2 = inlined_call_operand.hbm [shape: f32[1,1024], index: 2, kind: input, shape index: {}]   ;;  %s5849_s3 = inlined_call_operand.hbm [shape: bf16[64,128], index: 3, kind: input, shape index: {}]   ;;  %s5850_s4 = inlined_call_operand.vmem [shape: f32[1,128], index: 4, kind: input, shape index: {}]   ;;  %s5851_s5 = inlined_call_operand.hbm [shape: bf16[128,1024], index: 5, kind: input, shape index: {}]   ;;  %s5852_s6 = inlined_call_operand.vmem [shape: f32[1,1024], index: 6, kind: input, shape index: {}]   ;;  %s5853_s7 = inlined_call_operand.hbm [shape: f32[2,2,1,1024], index: 7, kind: output, shape index: {}]  }
   0x1   :  { %5869 = sst [smem:[#allocation21_spill]] %s5847_s1 }
   0x2   :  { %5870 = sst [smem:[#allocation22_spill]] %s5848_s2 }
   0x3   :  { %5871 = sst [smem:[#allocation23_spill]] %s5849_s3 }
   0x4   :  { %5872 = sst [smem:[#allocation24_spill]] %s5851_s5 }
   0x5   :  { %5873 = sst [smem:[#allocation25_spill]] %s5853_s7 }
   0x6   :  { %12 = vsyncpa [#allocation3], 0 }
   0x7   :  { %14 = vsyncpa [#allocation3 + $0x1], 0 }
   0x8   :  { %15 = vsyncpa [#allocation6], 0 }
   0x9   :  { %16 = vsyncpa [#allocation9], 0 }
   0xa   :  { %17 = vsyncpa [#allocation4], 0 }
   0xb   :  { %19 = vsyncpa [#allocation4 + $0x1], 0  ;;  %s4661_s24 = smov 0   ;;  %s4663_s25 = smov 0  }
   0xc   :  { %s4665_s26 = smov 0   ;;  %s4667_s27 = smov 0  }
   0xd   :  { %s4669_s28 = smov 0   ;;  %s4671_s29 = smov 0  }
   0xe   :  { %s4673_s30 = smov 0   ;;  %s4675_s8 = smov 0  }
   0xf LB: > { %5874 = sst [smem:[#allocation16_spill]] %s4576_s24  ;;  %s3591_s9 = sadd.s32 4294967295, %s4604_s8   ;;  %s4604_s8 = sphi %s4675_s8, %s25_s8   ;;  %s4600_s30 = sphi %s4673_s30, %s5913_s30   ;;  %s4596_s29 = sphi %s4671_s29, %s5912_s29   ;;  %s4592_s28 = sphi %s4669_s28, %s5911_s28   ;;  %s4588_s27 = sphi %s4667_s27, %s5910_s27   ;;  %s4584_s26 = sphi %s4665_s26, %s5909_s26   ;;  %s4580_s25 = sphi %s4663_s25, %s5908_s25   ;;  %s4576_s24 = sphi %s4661_s24, %s5907_s24  }
  0x10   : > { %5875 = sst [smem:[#allocation17_spill]] %s4604_s8  ;;  %s3592_s10 = sadd.s32 4294967294, %s4604_s8  }
  0x11   : > { %p68_p0 = scmp.ne.s32.totalorder %s4580_s25, %s4576_s24  ;;  %p4705_p1 = scmp.eq.s32.totalorder %s3591_s9, 0 }
  0x12   : > { %p4709_p2 = scmp.eq.s32.totalorder %s3591_s9, 3  ;;  %p226_p3 = scmp.eq.s32.totalorder %s3592_s10, 3 }
  0x13   : > { %s5876_s11 = scalar_select %p4705_p1, 1, 0 }
  0x14   : > { %s5877_s12 = scalar_select %p4709_p2, 1, 0 }
  0x15   : > { %p4715_p4 = por %p4705_p1, %p68_p0  ;;  %p3593_p5 = scmp.ge.s32.totalorder %s4604_s8, 1 }
  0x16   : > { %p4720_p6 = por %p226_p3, %p68_p0  ;;  %p233_p7 = scmp.lt.s32.totalorder %s4604_s8, 5 }
  0x17   : > { %s5878_s13 = scalar_select %p4715_p4, 1, 0 }
  0x18   : > { %s5879_s14 = scalar_select %p4720_p6, 1, 0 }
  0x19   : > { %p4725_p8 = pnand %p3593_p5, %p233_p7  ;;  %s4606_s16 = smov [#allocation5]  }
  0x1a   : > { %5880 = sst [smem:[#allocation18_spill]] %s5879_s14  ;;  %s245_s17 = sshll.u32 %s4606_s16, 4  ;;  %s246_s17 = int_to_ptr.vmem [resolvable:$true] %s245_s17 }
  0x1b   : > { %s5881_s15 = scalar_select %p4725_p8, 1, 0 }
  0x1c   : > { %p4247_p9 = pneg %p4725_p8  ;;  %s4607_s19 = smov [#allocation8]  }
  0x1d   : > { %s269_s20 = sshll.u32 %s4607_s19, 4  ;;  %s4379_s21 = scalar_lea.vmem %s246_s17, 6144  ;;  %s270_s20 = int_to_ptr.vmem [resolvable:$true] %s269_s20 }
  0x1e   : > { %p4733_p10 = pnand %p4247_p9, %p4705_p1  ;;  %p4380_p12 = scmp.ne.s32.totalorder %s246_s17, %s4379_s21 }
  0x1f   : > { %p4387_p3 = scmp.lt.s32.totalorder %s246_s17, %s246_s17  ;;  %p4388_p5 = scmp.lt.s32.totalorder %s4379_s21, %s4379_s21 }
  0x20   : > { %p4370_p11 = pneg %p4733_p10 }
  0x21   : > { %p4389_p7 = por %p4388_p5, %p4387_p3 }
  0x22   : > { %p4382_p13 = pnand %p4380_p12, %p4370_p11 }
  0x24   : > { %p4383_p0 = pneg %p4382_p13 }
  0x26   : > { %p4390_p9 = pnand %p4389_p7, %p4383_p0 }
  0x28   : > { %4393 = shalt.err (!%p4390_p9)
}
  0x29   : > { %s5854_s22 = smov 512   ;;  %s5855_s23 = smov 32  }
  0x2a   : > { %s5883_s1 = sld [smem:[#allocation21_spill]]  ;;  %s4405_s16 = scalar_lea.vmem %s270_s20, 512 }
  0x2b   : > { %p4406_p12 = scmp.ne.s32.totalorder %s270_s20, %s4405_s16  ;;  %p4413_p0 = scmp.lt.s32.totalorder %s270_s20, %s270_s20 }
  0x2c   : > { %p4414_p5 = scmp.lt.s32.totalorder %s4405_s16, %s4405_s16 }
  0x2d   : > { %p4408_p13 = pnand %p4406_p12, %p4370_p11 }
  0x2e   : > { %p4415_p7 = por %p4414_p5, %p4413_p0 }
  0x2f   : > { %p4409_p3 = pneg %p4408_p13 }
  0x30   : > { %4250 = dma.hbm_to_vmem [thread:$0]  (!%p4733_p10), %s5883_s1, 6144, %s246_s17, [#allocation6], %s5854_s22, %s5854_s22, %s5855_s23  }
  0x31   : > { %p4416_p9 = pnand %p4415_p7, %p4409_p3 }
  0x33   : > { %4419 = shalt.err (!%p4416_p9)
}
  0x34   : > { %s5860_s19 = smov 64   ;;  %s5861_s21 = smov 4  }
  0x35   : > { %s5884_s3 = sld [smem:[#allocation23_spill]]  ;;  %s4612_s10 = smov [#allocation7]  }
  0x36   : > { %s259_s22 = sshll.u32 %s4612_s10, 4  ;;  %s4613_s23 = smov [#allocation10]   ;;  %s260_s22 = int_to_ptr.vmem [resolvable:$true] %s259_s22 }
  0x37   : > { %s285_s1 = sshll.u32 %s4613_s23, 4  ;;  %s4431_s16 = scalar_lea.vmem %s260_s22, 128  ;;  %s286_s1 = int_to_ptr.vmem [resolvable:$true] %s285_s1 }
  0x38   : > { %p4432_p12 = scmp.ne.s32.totalorder %s260_s22, %s4431_s16  ;;  %p4439_p0 = scmp.lt.s32.totalorder %s260_s22, %s260_s22 }
  0x39   : > { %p4440_p5 = scmp.lt.s32.totalorder %s4431_s16, %s4431_s16 }
  0x3a   : > { %p4434_p13 = pnand %p4432_p12, %p4370_p11 }
  0x3b   : > { %4256 = dma.hbm_to_vmem [thread:$0]  (!%p4733_p10), %s5884_s3, 512, %s270_s20, [#allocation9], %s5860_s19, %s5860_s19, %s5861_s21  }
  0x3c   : > { %p4435_p3 = pneg %p4434_p13  ;;  %p4441_p7 = por %p4440_p5, %p4439_p0 }
  0x3e   : > { %p4442_p9 = pnand %p4441_p7, %p4435_p3 }
  0x40   : > { %4445 = shalt.err (!%p4442_p9)
}
  0x41   : > { %s5885_s2 = sld [smem:[#allocation22_spill]]  ;;  %s4457_s23 = scalar_lea.vmem %s286_s1, 8192 }
  0x42   : > { %p4458_p6 = scmp.ne.s32.totalorder %s286_s1, %s4457_s23  ;;  %p4465_p12 = scmp.lt.s32.totalorder %s286_s1, %s286_s1 }
  0x43   : > { %p4466_p13 = scmp.lt.s32.totalorder %s4457_s23, %s4457_s23 }
  0x44   : > { %p4460_p1 = pnand %p4458_p6, %p4370_p11 }
  0x45   : > { %p4467_p8 = por %p4466_p13, %p4465_p12 }
  0x46   : > { %p4461_p4 = pneg %p4460_p1 }
  0x47   : > { %4253 = dma.hbm_to_vmem [thread:$0]  (!%p4733_p10), %s5885_s2, 128, %s260_s22, [#allocation6]  }
  0x48   : > { %p4468_p2 = pnand %p4467_p8, %p4461_p4 }
  0x4a   : > { %4471 = shalt.err (!%p4468_p2)
}
  0x4b   : > { %s5886_s9 = smov 32   ;;  %s5887_s10 = smov 512  }
  0x4c   : > { %s5888_s5 = sld [smem:[#allocation24_spill]]  ;;  %s40_s22 = sadd.s32 1, %s4596_s29 }
  0x4d   : > { %s44_s18 = sadd.s32 1, %s4600_s30  ;;  %p42_p1 = scmp.ge.s32.totalorder %s40_s22, 2 }
  0x4e   : > { %s55_s17 = sadd.s32 1, %s4584_s26  ;;  %p62_p2 = scmp.ne.s32.totalorder %s4584_s26, %s4580_s25 }
  0x4f   : > { %p63_p4 = scmp.eq.s32.totalorder %s4604_s8, 0  ;;  %s5915_s22 = smov (%p42_p1, %s40_s22), 0 }
  0x50   : > { %5889 = sst [smem:[#allocation19_spill]] %s5915_s22  ;;  %s5917_s18 = smov (!%p42_p1, %s44_s18), %s4600_s30 }
  0x51   : > { %s50_s23 = ssub.s32 %s4596_s29, %s5915_s22  ;;  %p4791_p6 = por %p63_p4, %p62_p2 }
  0x52   : > { %4259 = dma.hbm_to_vmem [thread:$0]  (!%p4733_p10), %s5888_s5, 8192, %s286_s1, [#allocation9], %s5887_s10, %s5887_s10, %s5886_s9  }
  0x53   : > { %p46_p8 = scmp.ge.s32.totalorder %s5917_s18, 2  ;;  %p5891_p10 = scmp.ne.s32.totalorder %s5877_s12, 0 }
  0x54   : > { %p4272_p3 = scmp.lt.s32.totalorder %s4604_s8, 4  ;;  %s302_s9 = sand.u32 1, %s4584_s26  }
  0x55   : > { %p4797_p11 = por %p5891_p10, %p62_p2  ;;  %s5919_s18 = smov (%p46_p8, %s5917_s18), 0 }
  0x56   : > { %5893 = sst [smem:[#allocation20_spill]] %s5919_s18  ;;  %s4224_s10 = smul.u32 20, %s302_s9 }
  0x57   : > { %s51_s20 = ssub.s32 %s4600_s30, %s5919_s18  ;;  %s308_s19 = smul.u32 5, %s4600_s30 }
  0x58   : > { %s52_s21 = sor.u32 %s51_s20, %s50_s23  ;;  %s4225_s2 = smul.u32 10, %s4596_s29 }
  0x59   : > { %p53_p0 = scmp.eq.s32.totalorder %s52_s21, 0  ;;  %s306_s3 = scalar_lea.vmem [#allocation2], %s4224_s10 }
  0x5a   : > { %s316_s5 = sshll.u32 %s306_s3, 4  ;;  %p4811_p5 = pnand %p4272_p3, %p4791_p6  ;;  %s317_s5 = int_to_ptr.vmem [resolvable:$true] %s316_s5 }
  0x5b   : > { %s4816_s22 = scalar_select %p53_p0, %s4584_s26, %s55_s17  }
  0x5c   : > { %s313_s14 = sadd.s32 %s4225_s2, %s308_s19  ;;  %s303_s23 = scalar_lea.sflag [#allocation3], %s302_s9 }
  0x5d   : > { %s3599_s24 = sshll.u32 %s313_s14, 6  ;;  %p4474_p7 = pneg %p4811_p5 }
  0x5e   : > { %s315_s18 = scalar_lea.hbm %s5846_s0, %s3599_s24  ;;  %s4485_s21 = scalar_lea.vmem %s317_s5, 320 }
  0x5f   : > { %p4486_p9 = scmp.ne.s32.totalorder %s317_s5, %s4485_s21  ;;  %s4614_s3 = smov [#allocation2]  }
  0x60   : > { %s4490_s16 = sshll.u32 %s4614_s3, 4  ;;  %s4491_s16 = int_to_ptr.vmem [resolvable:$false] %s4490_s16 }
  0x61   : > { %p4488_p12 = pnand %p4486_p9, %p4474_p7  ;;  %s4492_s10 = scalar_lea.vmem %s4491_s16, 640 }
  0x62   : > { %p4493_p1 = scmp.lt.s32.totalorder %s317_s5, %s4491_s16  ;;  %p4494_p2 = scmp.lt.s32.totalorder %s4492_s10, %s4485_s21 }
  0x63   : > { %p4489_p13 = pneg %p4488_p12 }
  0x64   : > { %p4495_p4 = por %p4494_p2, %p4493_p1 }
  0x66   : > { %p4496_p6 = pnand %p4495_p4, %p4489_p13 }
  0x68   : > { %4499 = shalt.err (!%p4496_p6)
}
  0x69   : > { %s5895_s2 = smov 4   ;;  %s5896_s7 = smov 64  }
  0x6a   : > { %4263 = dma.hbm_to_vmem [thread:$0]  (!%p4811_p5), %s315_s18, 320, %s317_s5, %s303_s23, %s5896_s7, %s5896_s7, %s5895_s2  }
  0x6b   : > { %p5897_p8 = scmp.ne.s32.totalorder %s5881_s15, 0 }
  0x6c   : > { %s4831_s24 = sand.u32 (!%p5897_p8), 1, %s4580_s25   ;;  %p5898_p10 = scmp.ne.s32.totalorder (!%p5897_p8), %s5878_s13, 0 }
  0x6d   : > { %328 = sbr.rel (%p5897_p8) target bundleno = 1134 (0x46e), region = 48  ;;  %s331_s14 = scalar_lea.sflag (!%p5897_p8), [#allocation3], %s4831_s24 }
  0x6e   : > { %s4226_s8 = smul.u32 (!%p5897_p8), 20, %s4831_s24 }
  0x70   : > { %s4835_s19 = scalar_lea.vmem (!%p5897_p8), [#allocation2], %s4226_s8 }
  0x72   : > { %4559 = dma.done.wait (%p5898_p10), %s331_s14, 320  }
  0x73   : > { %4561 = vsyncadd (%p5898_p10), %s331_s14, 4294966976  ;;  %p5899_p3 = scmp.ne.s32.totalorder %s5876_s11, 0 }
  0x75   : > { %4563 = dma.done.wait (%p5899_p3), [#allocation6], 6272  }
  0x76   : > { %4565 = vsyncadd (%p5899_p3), [#allocation6], 4294961024 }
  0x77   : > { %4567 = dma.done.wait (%p5899_p3), [#allocation9], 8704  }
  0x78   : > { %4569 = vsyncadd (%p5899_p3), [#allocation9], 4294958592  ;;  %v4615_v0 = vmov 0   ;;  %v434_v1 = vld [vmem:[#allocation5 + $0x140] sm:$0xff]  ;;  %v435_v13 = vld [vmem:[#allocation5 + $0x148] sm:$0xff]  ;;  %vm737_vm0 = vcmask 785408  }
  0x79   : > { %779 = vmatprep.mubr.bf16.mxu0 %v4615_v0  ;;  %840 = vmatprep.mubr.bf16.mxu1 %v4615_v0  ;;  %v438_v2 = vld [vmem:[#allocation5 + $0x160] sm:$0xff]  ;;  %v439_v14 = vld [vmem:[#allocation5 + $0x168] sm:$0xff]  ;;  %v436_v43 = vld [vmem:[#allocation5 + $0x150] sm:$0xff]  ;;  %vm4617_vm1 = vmmov 0   ;;  %vm1113_vm2 = vcmask 523264   ;;  %s4618_s5 = smov 64  }
  0x7a   : > { %v426_v3 = vld [vmem:[#allocation5 + $0x100] sm:$0xff]  ;;  %v3650_v4 = vcombine.high %v434_v1, %v438_v2  ;;  %v3649_v5 = vcombine.low %v434_v1, %v438_v2  ;;  %v3652_v16 = vcombine.high %v435_v13, %v439_v14  ;;  %v3651_v17 = vcombine.low %v435_v13, %v439_v14  ;;  %v427_v18 = vld [vmem:[#allocation5 + $0x108] sm:$0xff]  ;;  %v440_v44 = vld [vmem:[#allocation5 + $0x170] sm:$0xff]  ;;  %s3236_s20 = smul.u32 40, %s4592_s28  ;;  %s3605_s12 = sshll.u32 %s4831_s24, 3 }
  0x7b   : > { %v430_v6 = vld [vmem:[#allocation5 + $0x120] sm:$0xff]  ;;  %v431_v19 = vld [vmem:[#allocation5 + $0x128] sm:$0xff]  ;;  %v3654_v49 = vcombine.high %v436_v43, %v440_v44  ;;  %v428_v51 = vld [vmem:[#allocation5 + $0x110] sm:$0xff]  ;;  %v3653_v56 = vcombine.low %v436_v43, %v440_v44  ;;  %s3787_s23 = sshll.u32 %s4588_s27, 3  ;;  %s3788_s21 = sshll.u32 %s4592_s28, 4 }
  0x7c   : > { %v3642_v7 = vcombine.high %v426_v3, %v430_v6  ;;  %v418_v8 = vld [vmem:[#allocation5 + $0xc0] sm:$0xff]  ;;  %751 = vmatprep.subr.bf16.mxu0 %v3650_v4  ;;  %v3641_v10 = vcombine.low %v426_v3, %v430_v6  ;;  %v419_v20 = vld [vmem:[#allocation5 + $0xc8] sm:$0xff]  ;;  %812 = vmatprep.subr.bf16.mxu1 %v3652_v16  ;;  %v3644_v23 = vcombine.high %v427_v18, %v431_v19  ;;  %v432_v52 = vld [vmem:[#allocation5 + $0x130] sm:$0xff]  ;;  %s3458_s3 = sadd.s32 %s3788_s21, %s3787_s23  ;;  %s380_s10 = scalar_lea.vmem [#allocation11], %s3605_s12 }
  0x7d   : > { %v422_v9 = vld [vmem:[#allocation5 + $0xe0] sm:$0xff]  ;;  %752 = vmatpush1.bf16.msra.mxu0 %v3649_v5  ;;  %v423_v21 = vld [vmem:[#allocation5 + $0xe8] sm:$0xff]  ;;  %813 = vmatpush1.bf16.msra.mxu1 %v3651_v17  ;;  %v3643_v25 = vcombine.low %v427_v18, %v431_v19  ;;  %v437_v54 = vld [vmem:[#allocation5 + $0x158] sm:$0xff]  ;;  %v3646_v58 = vcombine.high %v428_v51, %v432_v52  ;;  %v3645_v62 = vcombine.low %v428_v51, %v432_v52  ;;  %s3789_s16 = sshll.u32 %s3458_s3, 4  ;;  %s3462_s2 = sshll.u32 %s380_s10, 4  ;;  %s3463_s2 = int_to_ptr.vmem [resolvable:$true] %s3462_s2 }
  0x7e   : > { %v410_v11 = vld [vmem:[#allocation5 + $0x80] sm:$0xff]  ;;  %753 = vmatprep.subr.bf16.mxu0 %v3642_v7  ;;  %v3634_v12 = vcombine.high %v418_v8, %v422_v9  ;;  %v3633_v22 = vcombine.low %v418_v8, %v422_v9  ;;  %814 = vmatprep.subr.bf16.mxu1 %v3644_v23  ;;  %v3636_v28 = vcombine.high %v419_v20, %v423_v21  ;;  %v411_v29 = vld [vmem:[#allocation5 + $0x88] sm:$0xff]  ;;  %v441_v55 = vld [vmem:[#allocation5 + $0x178] sm:$0xff]  ;;  %s5900_s14 = sld [smem:[#allocation25_spill]]  ;;  %s4500_s27 = scalar_lea.vmem %s3463_s2, 128 }
  0x7f   : > { %v414_v15 = vld [vmem:[#allocation5 + $0xa0] sm:$0xff]  ;;  %v415_v30 = vld [vmem:[#allocation5 + $0xa8] sm:$0xff]  ;;  %v3635_v33 = vcombine.low %v419_v20, %v423_v21  ;;  %v420_v59 = vld [vmem:[#allocation5 + $0xd0] sm:$0xff]  ;;  %v3656_v61 = vcombine.high %v437_v54, %v441_v55  ;;  %v3655_v5 = vcombine.low %v437_v54, %v441_v55  ;;  %p4501_p0 = scmp.ne.s32.totalorder %s3463_s2, %s4500_s27  ;;  %s4620_s28 = smov [#allocation11]  }
  0x80   : > { %v3626_v24 = vcombine.high %v410_v11, %v414_v15  ;;  %v402_v26 = vld [vmem:[#allocation5 + $0x40] sm:$0xff]  ;;  %v3625_v31 = vcombine.low %v410_v11, %v414_v15  ;;  %v3628_v36 = vcombine.high %v411_v29, %v415_v30  ;;  %v403_v37 = vld [vmem:[#allocation5 + $0x48] sm:$0xff]  ;;  %v3627_v41 = vcombine.low %v411_v29, %v415_v30  ;;  %v424_v60 = vld [vmem:[#allocation5 + $0xf0] sm:$0xff]  ;;  %s4504_s11 = sshll.u32 %s4620_s28, 4  ;;  %s4505_s11 = int_to_ptr.vmem [resolvable:$false] %s4504_s11 }
  0x81   : > { %754 = vmatpush1.bf16.msra.mxu0 %v3641_v10  ;;  %v406_v27 = vld [vmem:[#allocation5 + $0x60] sm:$0xff]  ;;  %815 = vmatpush1.bf16.msra.mxu1 %v3643_v25  ;;  %v407_v38 = vld [vmem:[#allocation5 + $0x68] sm:$0xff]  ;;  %v429_v63 = vld [vmem:[#allocation5 + $0x118] sm:$0xff]  ;;  %v3638_v2 = vcombine.high %v420_v59, %v424_v60  ;;  %v3637_v8 = vcombine.low %v420_v59, %v424_v60  ;;  %p4502_p5 = pnand %p4501_p0, %p4797_p11  ;;  %s4506_s13 = scalar_lea.vmem %s4505_s11, 256 }
  0x82   : > { %755 = vmatprep.subr.bf16.mxu0 %v3634_v12  ;;  %v3618_v32 = vcombine.high %v402_v26, %v406_v27  ;;  %v394_v34 = vld [vmem:[#allocation5] sm:$0xff]  ;;  %816 = vmatprep.subr.bf16.mxu1 %v3636_v28  ;;  %v3617_v39 = vcombine.low %v402_v26, %v406_v27  ;;  %v3620_v42 = vcombine.high %v403_v37, %v407_v38  ;;  %v395_v45 = vld [vmem:[#allocation5 + $0x8] sm:$0xff]  ;;  %v433_v1 = vld [vmem:[#allocation5 + $0x138] sm:$0xff]  ;;  %p4507_p9 = scmp.lt.s32.totalorder %s3463_s2, %s4505_s11  ;;  %p4508_p12 = scmp.lt.s32.totalorder %s4506_s13, %s4500_s27 }
  0x83   : > { %v398_v35 = vld [vmem:[#allocation5 + $0x20] sm:$0xff]  ;;  %v399_v46 = vld [vmem:[#allocation5 + $0x28] sm:$0xff]  ;;  %v3619_v48 = vcombine.low %v403_v37, %v407_v38  ;;  %v412_v3 = vld [vmem:[#allocation5 + $0x90] sm:$0xff]  ;;  %v3648_v7 = vcombine.high %v429_v63, %v433_v1  ;;  %v3647_v14 = vcombine.low %v429_v63, %v433_v1  ;;  %v4616_v37 = vmov 0.0   ;;  %p4503_p7 = pneg %p4502_p5 }
  0x84   : > { %v3610_v40 = vcombine.high %v394_v34, %v398_v35  ;;  %v3609_v47 = vcombine.low %v394_v34, %v398_v35  ;;  %v3612_v50 = vcombine.high %v395_v45, %v399_v46  ;;  %v4852_v53 = vld [vmem:[%s4835_s19] sm:$0xff]   ;;  %v3611_v57 = vcombine.low %v395_v45, %v399_v46  ;;  %v4858_v6 = vld [vmem:[%s4835_s19 + $0x8] sm:$0xff]   ;;  %v4358_v23 = vld [vmem:[%s4835_s19 + $0x10] ss:$0 sps:$4 sm:$0xff]   ;;  %s3460_s19 = scalar_lea.hbm %s5900_s14, %s3789_s16  ;;  %p4509_p13 = por %p4508_p12, %p4507_p9 }
  0x85   : > { %756 = vmatpush1.bf16.msra.mxu0 %v3633_v22  ;;  %817 = vmatpush1.bf16.msra.mxu1 %v3635_v33  ;;  %v416_v4 = vld [vmem:[#allocation5 + $0xb0] sm:$0xff]  ;;  %v421_v9 = vld [vmem:[#allocation5 + $0xd8] sm:$0xff]  ;;  %v4921_v45 = vld [vmem:[#allocation7] sm:$0xff] }
  0x86   : > { %757 = vmatprep.subr.bf16.mxu0 %v3626_v24  ;;  %818 = vmatprep.subr.bf16.mxu1 %v3628_v36  ;;  %v425_v10 = vld [vmem:[#allocation5 + $0xf8] sm:$0xff]  ;;  %v3630_v11 = vcombine.high %v412_v3, %v416_v4  ;;  %v404_v12 = vld [vmem:[#allocation5 + $0x50] sm:$0xff]  ;;  %v3629_v16 = vcombine.low %v412_v3, %v416_v4  ;;  %v4873_v36 = vld [vmem:[#allocation8 + $0x18] sm:$0xff]   ;;  %p4510_p1 = pnand %p4509_p13, %p4503_p7 }
  0x87   : > { %v408_v13 = vld [vmem:[#allocation5 + $0x70] sm:$0xff]  ;;  %v3640_v15 = vcombine.high %v421_v9, %v425_v10  ;;  %v413_v17 = vld [vmem:[#allocation5 + $0x98] sm:$0xff]  ;;  %v3639_v22 = vcombine.low %v421_v9, %v425_v10 }
  0x88   : > { %v417_v18 = vld [vmem:[#allocation5 + $0xb8] sm:$0xff]  ;;  %v3622_v19 = vcombine.high %v404_v12, %v408_v13  ;;  %v396_v20 = vld [vmem:[#allocation5 + $0x10] sm:$0xff]  ;;  %v3621_v25 = vcombine.low %v404_v12, %v408_v13 }
  0x89   : > { %758 = vmatpush1.bf16.msra.mxu0 %v3625_v31  ;;  %819 = vmatpush1.bf16.msra.mxu1 %v3627_v41  ;;  %v400_v21 = vld [vmem:[#allocation5 + $0x30] sm:$0xff]  ;;  %v3632_v24 = vcombine.high %v413_v17, %v417_v18  ;;  %v405_v26 = vld [vmem:[#allocation5 + $0x58] sm:$0xff]  ;;  %v3631_v29 = vcombine.low %v413_v17, %v417_v18  ;;  %v4908_v41 = vld [vmem:[#allocation8] sm:$0xff]  }
  0x8a   : > { %759 = vmatprep.subr.bf16.mxu0 %v3618_v32  ;;  %820 = vmatprep.subr.bf16.mxu1 %v3620_v42  ;;  %v409_v27 = vld [vmem:[#allocation5 + $0x78] sm:$0xff]  ;;  %v3614_v28 = vcombine.high %v396_v20, %v400_v21  ;;  %v3613_v31 = vcombine.low %v396_v20, %v400_v21  ;;  %v444_v42 = vlaneseq }
  0x8b   : > { %v3624_v30 = vcombine.high %v405_v26, %v409_v27  ;;  %v397_v32 = vld [vmem:[#allocation5 + $0x18] sm:$0xff]  ;;  %v3623_v34 = vcombine.low %v405_v26, %v409_v27 }
  0x8c   : > { %v401_v33 = vld [vmem:[#allocation5 + $0x38] sm:$0xff]  ;;  %v4918_v43 = vshrl.u32 %v444_v42, 7 }
  0x8d   : > { %760 = vmatpush1.bf16.msra.mxu0 %v3617_v39  ;;  %821 = vmatpush1.bf16.msra.mxu1 %v3619_v48  ;;  %v3616_v35 = vcombine.high %v397_v32, %v401_v33  ;;  %v3615_v38 = vcombine.low %v397_v32, %v401_v33  ;;  %v4896_v39 = vld [vmem:[#allocation8 + $0x10] sm:$0xff]  }
  0x8e   : > { %761 = vmatprep.subr.bf16.mxu0 %v3610_v40  ;;  %822 = vmatprep.subr.bf16.mxu1 %v3612_v50  ;;  %v4902_v40 = vld [vmem:[#allocation8 + $0x8] sm:$0xff]   ;;  %v446_v44 = vsub.s32 0, %v4918_v43  ;;  %v450_v54 = vsub.s32 1, %v4918_v43 }
  0x90   : > { %v447_v46 = vrot.slane %v4921_v45, %v446_v44  ;;  %v451_v1 = vrot.slane %v4921_v45, %v450_v54 }
  0x91   : > { %762 = vmatpush1.bf16.msra.mxu0 %v3609_v47  ;;  %823 = vmatpush1.bf16.msra.mxu1 %v3611_v57 }
  0x92   : > { %873 = vmatprep.subr.bf16.mxu0 %v3654_v49  ;;  %934 = vmatprep.subr.bf16.mxu1 %v3656_v61 }
  0x94   : > { %3657 = vmatmul.mubr.msk.bf16.vlgmr.msra.gmra.mxu0 %vm737_vm0, %v4852_v53  ;;  %3660 = vmatmul.mubr.msk.bf16.vlgmr.msra.gmra.mxu1 %vm737_vm0, %v4852_v53 }
  0x95   : > { %789 = vmatprep.mubr.bf16.mxu0 %v4615_v0  ;;  %874 = vmatpush1.bf16.msra.mxu0 %v3653_v56  ;;  %v454_v56 = vsub.s32 2, %v4918_v43 }
  0x96   : > { %875 = vmatprep.subr.bf16.mxu0 %v3646_v58  ;;  %850 = vmatprep.mubr.bf16.mxu1 %v4615_v0 }
  0x97   : > { %935 = vmatpush1.bf16.msra.mxu1 %v3655_v5  ;;  %v455_v3 = vrot.slane %v4921_v45, %v454_v56 }
  0x98   : > { %936 = vmatprep.subr.bf16.mxu1 %v3648_v7 }
  0x99   : > { %876 = vmatpush1.bf16.msra.mxu0 %v3645_v62 }
  0x9a   : > { %877 = vmatprep.subr.bf16.mxu0 %v3638_v2 }
  0x9b   : > { %937 = vmatpush1.bf16.msra.mxu1 %v3647_v14  ;;  %v458_v14 = vsub.s32 3, %v4918_v43 }
  0x9c   : > { %3658 = vmatmul.mubr.msk.bf16.gmra.mxu0 %vm737_vm0, %v4858_v6  ;;  %938 = vmatprep.subr.bf16.mxu1 %v3640_v15 }
  0x9d   : > { %799 = vmatprep.mubr.bf16.mxu0 %v4615_v0  ;;  %878 = vmatpush1.bf16.msra.mxu0 %v3637_v8 }
  0x9e   : > { %879 = vmatprep.subr.bf16.mxu0 %v3630_v11  ;;  %3661 = vmatmul.mubr.msk.bf16.gmra.mxu1 %vm737_vm0, %v4858_v6 }
  0x9f   : > { %860 = vmatprep.mubr.bf16.mxu1 %v4615_v0  ;;  %939 = vmatpush1.bf16.msra.mxu1 %v3639_v22 }
  0xa0   : > { %940 = vmatprep.subr.bf16.mxu1 %v3632_v24 }
  0xa1   : > { %880 = vmatpush1.bf16.msra.mxu0 %v3629_v16 }
  0xa2   : > { %881 = vmatprep.subr.bf16.mxu0 %v3622_v19 }
  0xa3   : > { %941 = vmatpush1.bf16.msra.mxu1 %v3631_v29 }
  0xa4   : > { %3659 = vmatmul.mubr.msk.bf16.gmra.mxu0 %vm737_vm0, %v4358_v23  ;;  %942 = vmatprep.subr.bf16.mxu1 %v3624_v30  ;;  %v459_v30 = vrot.slane %v4921_v45, %v458_v14 }
  0xa5   : > { %882 = vmatpush1.bf16.msra.mxu0 %v3621_v25  ;;  %901 = vmatprep.mubr.bf16.mxu0 %v4615_v0 }
  0xa6   : > { %883 = vmatprep.subr.bf16.mxu0 %v3614_v28  ;;  %3662 = vmatmul.mubr.msk.bf16.gmra.mxu1 %vm737_vm0, %v4358_v23 }
  0xa7   : > { %962 = vmatprep.mubr.bf16.mxu1 %v4615_v0  ;;  %943 = vmatpush1.bf16.msra.mxu1 %v3623_v34 }
  0xa8   : > { %944 = vmatprep.subr.bf16.mxu1 %v3616_v35 }
  0xa9   : > { %884 = vmatpush1.bf16.msra.mxu0 %v3613_v31 }
  0xaa   : > { %3904 = vmatprep.subr.bf16.mxu0 %v4616_v37 }
  0xab   : > { %945 = vmatpush1.bf16.msra.mxu1 %v3615_v38 }
  0xac   : > { %3663 = vmatmul.mubr.msk.bf16.vlgmr.msra.gmra.mxu0 %vm737_vm0, %v4852_v53  ;;  %3924 = vmatprep.subr.bf16.mxu1 %v4616_v37 }
  0xad   : > { %911 = vmatprep.mubr.bf16.mxu0 %v4615_v0  ;;  %3905 = vmatpush3.bf16.msra.mxu0 %v4873_v36 }
  0xae   : > { %3906 = vmatprep.subr.bf16.mxu0 %v4616_v37  ;;  %3666 = vmatmul.mubr.msk.bf16.vlgmr.msra.gmra.mxu1 %vm737_vm0, %v4852_v53 }
  0xaf   : > { %972 = vmatprep.mubr.bf16.mxu1 %v4615_v0  ;;  %3925 = vmatpush3.bf16.msra.mxu1 %v4873_v36 }
  0xb0   : > { %3926 = vmatprep.subr.bf16.mxu1 %v4616_v37 }
  0xb1   : > { %3907 = vmatpush3.bf16.msra.mxu0 %v4896_v39 }
  0xb2   : > { %3908 = vmatprep.subr.bf16.mxu0 %v4616_v37 }
  0xb3   : > { %3927 = vmatpush3.bf16.msra.mxu1 %v4896_v39 }
  0xb4   : > { %3664 = vmatmul.mubr.msk.bf16.gmra.mxu0 %vm737_vm0, %v4858_v6  ;;  %3928 = vmatprep.subr.bf16.mxu1 %v4616_v37 }
  0xb5   : > { %921 = vmatprep.mubr.bf16.mxu0 %v4615_v0  ;;  %3909 = vmatpush3.bf16.msra.mxu0 %v4902_v40 }
  0xb6   : > { %3667 = vmatmul.mubr.msk.bf16.gmra.mxu1 %vm737_vm0, %v4858_v6  ;;  %3910 = vmatprep.subr.bf16.mxu0 %v4616_v37 }
  0xb7   : > { %982 = vmatprep.mubr.bf16.mxu1 %v4615_v0  ;;  %3929 = vmatpush3.bf16.msra.mxu1 %v4902_v40 }
  0xb8   : > { %3930 = vmatprep.subr.bf16.mxu1 %v4616_v37 }
  0xb9   : > { %3911 = vmatpush3.bf16.msra.mxu0 %v4908_v41 }
  0xba   : > { %3944 = vmatprep.subr.bf16.mxu0 %v4616_v37 }
  0xbb   : > { %3931 = vmatpush3.bf16.msra.mxu1 %v4908_v41 }
  0xbc   : > { %3665 = vmatmul.mubr.msk.bf16.gmra.mxu0 %vm737_vm0, %v4358_v23  ;;  %3964 = vmatprep.subr.bf16.mxu1 %v4616_v37 }
  0xbd   : > { %3912 = vmatprep.mubr.msk.bf16.mxu0 %vm4617_vm1, %v4616_v37 }
  0xbe   : > { %3668 = vmatmul.mubr.msk.bf16.gmra.mxu1 %vm737_vm0, %v4358_v23 }
  0xbf   : > { %3932 = vmatprep.mubr.msk.bf16.mxu1 %vm4617_vm1, %v4616_v37 }
 0x154   : > { %v781_v47 = vpop.f32.mrf.mxu0  ;;  %v842_v53 = vpop.f32.mrf.mxu1 }
 0x155   : > { %v782_v48 = vadd.f32 %v781_v47, %v447_v46  ;;  %v4940_v9 = vadd.f32 %v842_v53, %v455_v3 }
 0x156   : > { %v783_v49 = vpop.f32.mrf.mxu0  ;;  %v4928_v58 = vpop.f32.mrf.mxu1 }
 0x157   : > { %v991_v51 = vmul.f32 0.2, %v782_v48  ;;  %v784_v19 = vadd.f32 %v783_v49, %v451_v1  ;;  %v993_v23 = vmul.f32 0.2, %v4940_v9  ;;  %v462_v49 = vsub.s32 4, %v4918_v43 }
 0x158   : > { %v785_v50 = vpop.f32.mrf.mxu0  ;;  %v846_v63 = vpop.f32.mrf.mxu1 }
 0x159   : > { %v786_v52 = vadd.f32 %v785_v50, %v447_v46  ;;  %v1031_v60 = vmax.f32 %v782_v48, %v991_v51  ;;  %v4948_v15 = vadd.f32 %v846_v63, %v455_v3  ;;  %v1033_v47 = vmax.f32 %v4940_v9, %v993_v23 }
 0x15a   : > { %v787_v55 = vpop.f32.mrf.mxu0  ;;  %v4936_v5 = vpop.f32.mrf.mxu1  ;;  %v992_v50 = vmul.f32 0.2, %v784_v19 }
 0x15b   : > { %v999_v57 = vmul.f32 0.2, %v786_v52  ;;  %v4938_v6 = vadd.f32 %v787_v55, %v451_v1  ;;  %v1001_v31 = vmul.f32 0.2, %v4948_v15 }
 0x15c   : > { %v791_v59 = vpop.f32.mrf.mxu0 }
 0x15d   : > { %v1039_v61 = vmax.f32 %v786_v52, %v999_v57  ;;  %v792_v62 = vadd.f32 %v791_v59, %v447_v46  ;;  %v1000_v20 = vmul.f32 0.2, %v4938_v6  ;;  %v1041_v59 = vmax.f32 %v4948_v15, %v1001_v31 }
 0x15e   : > { %v793_v2 = vpop.f32.mrf.mxu0  ;;  %v852_v12 = vpop.f32.mrf.mxu1 }
 0x15f   : > { %v1071_v4 = vpack.c.bf16 %v1039_v61, %v1031_v60  ;;  %v1007_v7 = vmul.f32 0.2, %v792_v62  ;;  %v794_v10 = vadd.f32 %v793_v2, %v451_v1  ;;  %v1040_v42 = vmax.f32 %v4938_v6, %v1000_v20 }
 0x160   : > { %v795_v8 = vpop.f32.mrf.mxu0  ;;  %v854_v18 = vpop.f32.mrf.mxu1  ;;  %v4961_v48 = vadd.f32 %v852_v12, %v455_v3  ;;  %v4978_v6 = vadd.f32 %v4928_v58, %v459_v30  ;;  %v4989_v58 = vrot.slane %v4921_v45, %v462_v49 }
 0x161   : > { %v796_v11 = vadd.f32 %v795_v8, %v447_v46  ;;  %1192 = vrot.lane.b32.xlu0 %v1071_v4, %s4618_s5  ;;  %3913 = vmatmul.mubr.msk.bf16.vlgmr.msra.gmra.mxu0 %vm1113_vm2, %v1071_v4  ;;  %v1047_v21 = vmax.f32 %v792_v62, %v1007_v7  ;;  %v1008_v24 = vmul.f32 0.2, %v794_v10  ;;  %v4972_v60 = vadd.f32 %v854_v18, %v459_v30 }
 0x162   : > { %v797_v13 = vpop.f32.mrf.mxu0  ;;  %3916 = vmatprep.mubr.msk.bf16.mxu0 %vm4617_vm1, %v4616_v37  ;;  %3945 = vmatpush3.bf16.msra.mxu0 %v4873_v36  ;;  %v856_v28 = vpop.f32.mrf.mxu1  ;;  %v1009_v7 = vmul.f32 0.2, %v4961_v48 }
 0x163   : > { %v1015_v16 = vmul.f32 0.2, %v796_v11  ;;  %v798_v17 = vadd.f32 %v797_v13, %v451_v1  ;;  %3946 = vmatprep.subr.bf16.mxu0 %v4616_v37  ;;  %v1048_v51 = vmax.f32 %v794_v10, %v1008_v24  ;;  %v4966_v53 = vadd.f32 %v856_v28, %v455_v3 }
 0x164   : > { %v801_v22 = vpop.f32.mrf.mxu0  ;;  %v858_v38 = vpop.f32.mrf.mxu1  ;;  %v1032_v10 = vmax.f32 %v784_v19, %v992_v50  ;;  %v1010_v13 = vmul.f32 0.2, %v4972_v60  ;;  %v1049_v23 = vmax.f32 %v4961_v48, %v1009_v7  ;;  %v466_v24 = vsub.s32 5, %v4918_v43 }
 0x165   : > { %v1055_v25 = vmax.f32 %v796_v11, %v1015_v16  ;;  %v1016_v26 = vmul.f32 0.2, %v798_v17  ;;  %v802_v27 = vadd.f32 %v801_v22, %v447_v46  ;;  %v859_v2 = vadd.f32 %v858_v38, %v459_v30 }
 0x166   : > { %v803_v29 = vpop.f32.mrf.mxu0  ;;  %3947 = vmatpush3.bf16.msra.mxu0 %v4896_v39  ;;  %v862_v55 = vpop.f32.mrf.mxu1  ;;  %v1017_v11 = vmul.f32 0.2, %v4966_v53  ;;  %v4993_v16 = vpack.c.bf16 %v1041_v59, %v1033_v47  ;;  %v1278_v19 = vpack.c.bf16 %v1040_v42, %v1032_v10  ;;  %v994_v22 = vmul.f32 0.2, %v4978_v6 }
 0x167   : > { %v1056_v32 = vmax.f32 %v798_v17, %v1016_v26  ;;  %v1023_v33 = vmul.f32 0.2, %v802_v27  ;;  %v804_v34 = vadd.f32 %v803_v29, %v451_v1  ;;  %v1072_v35 = vpack.c.bf16 %v1055_v25, %v1047_v21  ;;  %3948 = vmatprep.subr.bf16.mxu0 %v4616_v37 }
 0x168   : > { %v805_v46 = vpop.f32.mrf.mxu0  ;;  %v863_v61 = vadd.f32 %v862_v55, %v455_v3  ;;  %v864_v4 = vpop.f32.mrf.mxu1  ;;  %v849_v3 = vadd.f32 %v4936_v5, %v459_v30  ;;  %v1018_v5 = vmul.f32 0.2, %v859_v2  ;;  %v1050_v31 = vmax.f32 %v4972_v60, %v1010_v13 }
 0x169   : > { %1194 = vrot.lane.b32.xlu0 %v1072_v35, %s4618_s5  ;;  %3917 = vmatmul.mubr.msk.bf16.gmra.mxu0 %vm1113_vm2, %v1072_v35  ;;  %v1063_v52 = vmax.f32 %v802_v27, %v1023_v33  ;;  %v1024_v62 = vmul.f32 0.2, %v804_v34  ;;  %v4974_v1 = vpack.c.bf16 %v1056_v32, %v1048_v51  ;;  %v1057_v27 = vmax.f32 %v4966_v53, %v1017_v11 }
 0x16a   : > { %v806_v57 = vpop.f32.mrf.mxu0  ;;  %3920 = vmatprep.mubr.msk.bf16.mxu0 %vm4617_vm1, %v4616_v37  ;;  %3949 = vmatpush3.bf16.msra.mxu0 %v4902_v40  ;;  %v1025_v8 = vmul.f32 0.2, %v863_v61  ;;  %v866_v12 = vpop.f32.mrf.mxu1  ;;  %v1002_v26 = vmul.f32 0.2, %v849_v3  ;;  %v865_v28 = vadd.f32 %v864_v4, %v459_v30  ;;  %v1058_v38 = vmax.f32 %v859_v2, %v1018_v5 }
 0x16b   : > { %v1073_v63 = vpack.c.bf16 %v1063_v52, %v1063_v52  ;;  %3950 = vmatprep.subr.bf16.mxu0 %v4616_v37  ;;  %v1064_v18 = vmax.f32 %v804_v34, %v1024_v62  ;;  %v1034_v30 = vmax.f32 %v4978_v6, %v994_v22  ;;  %v467_v47 = vrot.slane %v4921_v45, %v466_v24 }
 0x16c   : > { %v903_v9 = vpop.f32.mrf.mxu0  ;;  %v1065_v15 = vmax.f32 %v863_v61, %v1025_v8  ;;  %v867_v20 = vpop.f32.mrf.mxu1  ;;  %v1042_v51 = vmax.f32 %v849_v3, %v1002_v26  ;;  %v5021_v52 = vpack.c.bf16 %v1057_v27, %v1049_v23  ;;  %v1026_v53 = vmul.f32 0.2, %v865_v28 }
 0x16d   : > { %1196 = vrot.lane.b32.xlu1 %v1073_v63, %s4618_s5  ;;  %1366 = vrot.lane.b32.xlu0 %v4974_v1, %s4618_s5  ;;  %v904_v21 = vadd.f32 %v903_v9, %v4989_v58  ;;  %v5011_v35 = vpack.c.bf16 %v1064_v18, %v1064_v18  ;;  %v5026_v60 = vpack.c.bf16 %v1058_v38, %v1050_v31  ;;  %v470_v6 = vsub.s32 6, %v4918_v43 }
 0x16e   : > { %3951 = vmatpush3.bf16.msra.mxu0 %v4908_v41  ;;  %v905_v17 = vpop.f32.mrf.mxu0  ;;  %v5007_v32 = vpack.c.bf16 %v1065_v15, %v1065_v15  ;;  %v964_v34 = vpop.f32.mrf.mxu1  ;;  %v5038_v8 = vpack.c.bf16 %v1042_v51, %v1034_v30  ;;  %v1066_v9 = vmax.f32 %v865_v28, %v1026_v53  ;;  %v474_v22 = vsub.s32 7, %v4918_v43 }
 0x16f   : > { %3984 = vmatprep.subr.bf16.mxu0 %v4616_v37  ;;  %v995_v42 = vmul.f32 0.2, %v904_v21 }
 0x170   : > { %v907_v25 = vpop.f32.mrf.mxu0  ;;  %v5017_v50 = vpop.f32.mrf.mxu1 }
 0x171   : > { %1364 = vrot.lane.b32.xlu1 %v1278_v19, %s4618_s5  ;;  %3921 = vmatmul.mubr.msk.bf16.gmra.mxu0 %vm1113_vm2, %v1073_v63  ;;  %v908_v29 = vadd.f32 %v907_v25, %v4989_v58  ;;  %v1035_v61 = vmax.f32 %v904_v21, %v995_v42  ;;  %v5028_v63 = vadd.f32 %v905_v17, %v467_v47 }
 0x172   : > { %3952 = vmatprep.mubr.msk.bf16.mxu0 %vm4617_vm1, %v4616_v37  ;;  %1536 = vrot.lane.b32.xlu0 %v4993_v16, %s4618_s5  ;;  %v909_v33 = vpop.f32.mrf.mxu0  ;;  %v968_v59 = vpop.f32.mrf.mxu1  ;;  %v471_v21 = vrot.slane %v4921_v45, %v470_v6  ;;  %v5059_v25 = vpack.c.bf16 %v1066_v9, %v1066_v9 }
 0x173   : > { %v1003_v46 = vmul.f32 0.2, %v908_v29  ;;  %v5030_v2 = vadd.f32 %v909_v33, %v467_v47 }
 0x174   : > { %v913_v48 = vpop.f32.mrf.mxu0  ;;  %v5033_v7 = vpop.f32.mrf.mxu1  ;;  %v965_v38 = vadd.f32 %v964_v34, %v471_v21  ;;  %v969_v42 = vadd.f32 %v968_v59, %v471_v21 }
 0x175   : > { %1368 = vrot.lane.b32.xlu1 %v5011_v35, %s4618_s5  ;;  %v914_v55 = vadd.f32 %v913_v48, %v4989_v58  ;;  %v1043_v62 = vmax.f32 %v908_v29, %v1003_v46  ;;  %v1004_v5 = vmul.f32 0.2, %v5030_v2 }
 0x176   : > { %1540 = vrot.lane.b32.xlu0 %v5007_v32, %s4618_s5  ;;  %v915_v57 = vpop.f32.mrf.mxu0  ;;  %v974_v13 = vpop.f32.mrf.mxu1  ;;  %v1005_v9 = vmul.f32 0.2, %v969_v42 }
 0x177   : > { %v1011_v10 = vmul.f32 0.2, %v914_v55  ;;  %v5044_v11 = vadd.f32 %v915_v57, %v467_v47  ;;  %v5049_v18 = vpack.c.bf16 %v1043_v62, %v1035_v61  ;;  %v975_v57 = vadd.f32 %v974_v13, %v471_v21 }
 0x178   : > { %v917_v4 = vpop.f32.mrf.mxu0  ;;  %v976_v23 = vpop.f32.mrf.mxu1 }
 0x179   : > { %3953 = vmatmul.mubr.msk.bf16.vlgmr.msra.gmra.mxu0 %vm1113_vm2, %v1278_v19  ;;  %1538 = vrot.lane.b32.xlu1 %v5021_v52, %s4618_s5  ;;  %v918_v3 = vadd.f32 %v917_v4, %v4989_v58  ;;  %v996_v19 = vmul.f32 0.2, %v5028_v63  ;;  %v1051_v26 = vmax.f32 %v914_v55, %v1011_v10  ;;  %v1012_v29 = vmul.f32 0.2, %v5044_v11 }
 0x17a   : > { %3956 = vmatprep.mubr.msk.bf16.mxu0 %vm4617_vm1, %v4616_v37  ;;  %3985 = vmatpush3.bf16.msra.mxu0 %v4873_v36  ;;  %v919_v12 = vpop.f32.mrf.mxu0  ;;  %v978_v46 = vpop.f32.mrf.mxu1  ;;  %v475_v55 = vrot.slane %v4921_v45, %v474_v22  ;;  %v997_v4 = vmul.f32 0.2, %v965_v38  ;;  %v1013_v13 = vmul.f32 0.2, %v975_v57 }
 0x17b   : > { %3986 = vmatprep.subr.bf16.mxu0 %v4616_v37  ;;  %1710 = vrot.lane.b32.xlu0 %v5026_v60, %s4618_s5  ;;  %v1019_v15 = vmul.f32 0.2, %v918_v3  ;;  %v920_v17 = vadd.f32 %v919_v12, %v467_v47  ;;  %v1036_v51 = vmax.f32 %v5028_v63, %v996_v19  ;;  %v979_v62 = vadd.f32 %v978_v46, %v471_v21 }
 0x17c   : > { %v923_v20 = vpop.f32.mrf.mxu0  ;;  %v980_v34 = vpop.f32.mrf.mxu1  ;;  %v1052_v45 = vmax.f32 %v5044_v11, %v1012_v29  ;;  %v967_v12 = vadd.f32 %v5017_v50, %v475_v55  ;;  %v1045_v50 = vmax.f32 %v969_v42, %v1005_v9 }
 0x17d   : > { %1708 = vrot.lane.b32.xlu1 %v5038_v8, %s4618_s5  ;;  %v1059_v27 = vmax.f32 %v918_v3, %v1019_v15  ;;  %v924_v28 = vadd.f32 %v923_v20, %v4989_v58  ;;  %v1020_v31 = vmul.f32 0.2, %v920_v17  ;;  %v1044_v58 = vmax.f32 %v5030_v2, %v1004_v5 }
 0x17e   : > { %3987 = vmatpush3.bf16.msra.mxu0 %v4896_v39  ;;  %v925_v33 = vpop.f32.mrf.mxu0  ;;  %v1021_v5 = vmul.f32 0.2, %v979_v62 }
 0x17f   : > { %3988 = vmatprep.subr.bf16.mxu0 %v4616_v37  ;;  %v1027_v30 = vmul.f32 0.2, %v924_v28  ;;  %1880 = vrot.lane.b32.xlu0 %v5049_v18, %s4618_s5  ;;  %v926_v48 = vadd.f32 %v925_v33, %v467_v47  ;;  %v5076_v61 = vpack.c.bf16 %v1059_v27, %v1051_v26  ;;  %v1060_v63 = vmax.f32 %v920_v17, %v1020_v31 }
 0x180   : > { %v927_v53 = vpop.f32.mrf.mxu0  ;;  %v5088_v19 = vpack.c.bf16 %v1044_v58, %v1036_v51  ;;  %v971_v17 = vadd.f32 %v5033_v7, %v475_v55  ;;  %v977_v27 = vadd.f32 %v976_v23, %v475_v55  ;;  %v998_v31 = vmul.f32 0.2, %v967_v12 }
 0x181   : > { %3957 = vmatmul.mubr.msk.bf16.gmra.mxu0 %vm1113_vm2, %v4974_v1  ;;  %1712 = vrot.lane.b32.xlu1 %v5059_v25, %s4618_s5  ;;  %v1067_v59 = vmax.f32 %v924_v28, %v1027_v30  ;;  %v1028_v47 = vmul.f32 0.2, %v926_v48  ;;  %v984_v1 = vpop.f32.mrf.mxu1  ;;  %v5094_v20 = vpack.c.bf16 %v1060_v63, %v1052_v45  ;;  %v981_v28 = vadd.f32 %v980_v34, %v475_v55 }
 0x182   : > { %3960 = vmatprep.mubr.msk.bf16.mxu0 %vm4617_vm1, %v4616_v37  ;;  %3989 = vmatpush3.bf16.msra.mxu0 %v4902_v40  ;;  %v928_v2 = vpop.f32.mrf.mxu0  ;;  %v985_v3 = vadd.f32 %v984_v1, %v471_v21  ;;  %v1037_v21 = vmax.f32 %v965_v38, %v997_v4  ;;  %v1053_v33 = vmax.f32 %v975_v57, %v1013_v13  ;;  %v1006_v30 = vmul.f32 0.2, %v971_v17 }
 0x183   : > { %3990 = vmatprep.subr.bf16.mxu0 %v4616_v37  ;;  %v5083_v10 = vpack.c.bf16 %v1067_v59, %v1067_v59  ;;  %v986_v15 = vpop.f32.mrf.mxu1  ;;  %v1068_v11 = vmax.f32 %v926_v48, %v1028_v47  ;;  %v1061_v38 = vmax.f32 %v979_v62, %v1021_v5  ;;  %v1014_v48 = vmul.f32 0.2, %v977_v27 }
 0x184   : > { %v1029_v29 = vmul.f32 0.2, %v985_v3  ;;  %v987_v42 = vadd.f32 %v986_v15, %v475_v55  ;;  %v5107_v23 = vpack.c.bf16 %v1045_v50, %v1037_v21  ;;  %v1022_v51 = vmul.f32 0.2, %v981_v28  ;;  %v5314_v21 = vld [vmem:[%s5850_s4] ss:$0 sm:$0xff] }
 0x185   : > { %1882 = vrot.lane.b32.xlu1 %v5076_v61, %s4618_s5  ;;  %1884 = vrot.lane.b32.xlu0 %v5083_v10, %s4618_s5  ;;  %v988_v26 = vpop.f32.mrf.mxu1  ;;  %v5101_v7 = vpack.c.bf16 %v1068_v11, %v1068_v11  ;;  %v1046_v53 = vmax.f32 %v971_v17, %v1006_v30  ;;  %v5111_v57 = vpack.c.bf16 %v1061_v38, %v1053_v33 }
 0x186   : > { %3991 = vmatpush3.bf16.msra.mxu0 %v4908_v41  ;;  %v1069_v58 = vmax.f32 %v985_v3, %v1029_v29  ;;  %v1030_v34 = vmul.f32 0.2, %v987_v42  ;;  %v1054_v55 = vmax.f32 %v977_v27, %v1014_v48  ;;  %v1062_v59 = vmax.f32 %v981_v28, %v1022_v51 }
 0x187   : > { %4024 = vmatprep.subr.bf16.mxu0 %v4616_v37  ;;  %v989_v46 = vpop.f32.mrf.mxu1 }
 0x188   : > { %v5115_v47 = vpack.c.bf16 %v1069_v58, %v1069_v58  ;;  %v1070_v45 = vmax.f32 %v987_v42, %v1030_v34  ;;  %v5129_v63 = vpack.c.bf16 %v1062_v59, %v1054_v55 }
 0x189   : > { %3961 = vmatmul.mubr.msk.bf16.gmra.mxu0 %vm1113_vm2, %v5011_v35  ;;  %2052 = vrot.lane.b32.xlu1 %v5088_v19, %s4618_s5  ;;  %v1038_v35 = vmax.f32 %v967_v12, %v998_v31 }
 0x18a   : > { %3992 = vmatprep.mubr.msk.bf16.mxu0 %vm4617_vm1, %v4616_v37  ;;  %2054 = vrot.lane.b32.xlu0 %v5094_v20, %s4618_s5 }
 0x18b   : > { %v5121_v62 = vpack.c.bf16 %v1046_v53, %v1038_v35 }
 0x18d   : > { %2056 = vrot.lane.b32.xlu1 %v5101_v7, %s4618_s5 }
 0x18e   : > { %2224 = vrot.lane.b32.xlu0 %v5107_v23, %s4618_s5 }
 0x191   : > { %3993 = vmatmul.mubr.msk.bf16.vlgmr.msra.gmra.mxu0 %vm1113_vm2, %v4993_v16  ;;  %2226 = vrot.lane.b32.xlu1 %v5111_v57, %s4618_s5  ;;  %v5133_v16 = vpack.c.bf16 %v1070_v45, %v1070_v45 }
 0x192   : > { %3996 = vmatprep.mubr.msk.bf16.mxu0 %vm4617_vm1, %v4616_v37  ;;  %4025 = vmatpush3.bf16.msra.mxu0 %v4873_v36 }
 0x193   : > { %4026 = vmatprep.subr.bf16.mxu0 %v4616_v37  ;;  %2228 = vrot.lane.b32.xlu0 %v5115_v47, %s4618_s5 }
 0x195   : > { %2396 = vrot.lane.b32.xlu1 %v5121_v62, %s4618_s5 }
 0x196   : > { %4027 = vmatpush3.bf16.msra.mxu0 %v4896_v39 }
 0x197   : > { %4028 = vmatprep.subr.bf16.mxu0 %v4616_v37  ;;  %2398 = vrot.lane.b32.xlu0 %v5129_v63, %s4618_s5 }
 0x199   : > { %3997 = vmatmul.mubr.msk.bf16.gmra.mxu0 %vm1113_vm2, %v5021_v52  ;;  %2400 = vrot.lane.b32.xlu1 %v5133_v16, %s4618_s5  ;;  %s3446_s5 = scalar_lea.sflag [#allocation4], %s4831_s24 }
 0x19a   : > { %4000 = vmatprep.mubr.msk.bf16.mxu0 %vm4617_vm1, %v4616_v37  ;;  %4029 = vmatpush3.bf16.msra.mxu0 %v4902_v40 }
 0x19b   : > { %4030 = vmatprep.subr.bf16.mxu0 %v4616_v37 }
 0x19e   : > { %4031 = vmatpush3.bf16.msra.mxu0 %v4908_v41 }
 0x19f   : > { %4064 = vmatprep.subr.bf16.mxu0 %v4616_v37 }
 0x1a1   : > { %4001 = vmatmul.mubr.msk.bf16.gmra.mxu0 %vm1113_vm2, %v5007_v32 }
 0x1a2   : > { %4032 = vmatprep.mubr.msk.bf16.mxu0 %vm4617_vm1, %v4616_v37 }
 0x1a9   : > { %4033 = vmatmul.mubr.msk.bf16.vlgmr.msra.gmra.mxu0 %vm1113_vm2, %v5038_v8 }
 0x1aa   : > { %4036 = vmatprep.mubr.msk.bf16.mxu0 %vm4617_vm1, %v4616_v37  ;;  %4065 = vmatpush3.bf16.msra.mxu0 %v4873_v36 }
 0x1ab   : > { %4066 = vmatprep.subr.bf16.mxu0 %v4616_v37 }
 0x1ae   : > { %4067 = vmatpush3.bf16.msra.mxu0 %v4896_v39 }
 0x1af   : > { %4068 = vmatprep.subr.bf16.mxu0 %v4616_v37 }
 0x1b1   : > { %4037 = vmatmul.mubr.msk.bf16.gmra.mxu0 %vm1113_vm2, %v5026_v60 }
 0x1b2   : > { %4040 = vmatprep.mubr.msk.bf16.mxu0 %vm4617_vm1, %v4616_v37  ;;  %4069 = vmatpush3.bf16.msra.mxu0 %v4902_v40 }
 0x1b3   : > { %4070 = vmatprep.subr.bf16.mxu0 %v4616_v37 }
 0x1b6   : > { %4071 = vmatpush3.bf16.msra.mxu0 %v4908_v41 }
 0x1b7   : > { %4104 = vmatprep.subr.bf16.mxu0 %v4616_v37 }
 0x1b9   : > { %4041 = vmatmul.mubr.msk.bf16.gmra.mxu0 %vm1113_vm2, %v5059_v25 }
 0x1ba   : > { %4072 = vmatprep.mubr.msk.bf16.mxu0 %vm4617_vm1, %v4616_v37 }
 0x1c1   : > { %4073 = vmatmul.mubr.msk.bf16.vlgmr.msra.gmra.mxu0 %vm1113_vm2, %v5049_v18 }
 0x1c2   : > { %4076 = vmatprep.mubr.msk.bf16.mxu0 %vm4617_vm1, %v4616_v37  ;;  %4105 = vmatpush3.bf16.msra.mxu0 %v4873_v36 }
 0x1c3   : > { %4106 = vmatprep.subr.bf16.mxu0 %v4616_v37 }
 0x1c6   : > { %4107 = vmatpush3.bf16.msra.mxu0 %v4896_v39 }
 0x1c7   : > { %4108 = vmatprep.subr.bf16.mxu0 %v4616_v37 }
 0x1c9   : > { %4077 = vmatmul.mubr.msk.bf16.gmra.mxu0 %vm1113_vm2, %v5076_v61 }
 0x1ca   : > { %4080 = vmatprep.mubr.msk.bf16.mxu0 %vm4617_vm1, %v4616_v37  ;;  %4109 = vmatpush3.bf16.msra.mxu0 %v4902_v40 }
 0x1cb   : > { %4110 = vmatprep.subr.bf16.mxu0 %v4616_v37 }
 0x1ce   : > { %4111 = vmatpush3.bf16.msra.mxu0 %v4908_v41 }
 0x1cf   : > { %4144 = vmatprep.subr.bf16.mxu0 %v4616_v37 }
 0x1d1   : > { %4081 = vmatmul.mubr.msk.bf16.gmra.mxu0 %vm1113_vm2, %v5083_v10 }
 0x1d2   : > { %4112 = vmatprep.mubr.msk.bf16.mxu0 %vm4617_vm1, %v4616_v37 }
 0x1d3   : > { %v1193_v32 = vpop.permute.xlu0 %1192 }
 0x1d4   : > { %3933 = vmatmul.mubr.msk.bf16.vlgmr.msra.gmra.mxu1 %vm1113_vm2, %v1193_v32 }
 0x1d5   : > { %3965 = vmatpush3.bf16.msra.mxu1 %v4873_v36  ;;  %3936 = vmatprep.mubr.msk.bf16.mxu1 %vm4617_vm1, %v4616_v37 }
 0x1d6   : > { %3966 = vmatprep.subr.bf16.mxu1 %v4616_v37 }
 0x1d9   : > { %4113 = vmatmul.mubr.msk.bf16.vlgmr.msra.gmra.mxu0 %vm1113_vm2, %v5088_v19  ;;  %3967 = vmatpush3.bf16.msra.mxu1 %v4896_v39 }
 0x1da   : > { %3968 = vmatprep.subr.bf16.mxu1 %v4616_v37  ;;  %4116 = vmatprep.mubr.msk.bf16.mxu0 %vm4617_vm1, %v4616_v37 }
 0x1db   : > { %v1195_v52 = vpop.permute.xlu0 %1194  ;;  %4145 = vmatpush3.bf16.msra.mxu0 %v4873_v36 }
 0x1dc   : > { %3937 = vmatmul.mubr.msk.bf16.gmra.mxu1 %vm1113_vm2, %v1195_v52  ;;  %4146 = vmatprep.subr.bf16.mxu0 %v4616_v37 }
 0x1dd   : > { %3969 = vmatpush3.bf16.msra.mxu1 %v4902_v40  ;;  %3940 = vmatprep.mubr.msk.bf16.mxu1 %vm4617_vm1, %v4616_v37 }
 0x1de   : > { %3970 = vmatprep.subr.bf16.mxu1 %v4616_v37 }
 0x1df   : > { %4147 = vmatpush3.bf16.msra.mxu0 %v4896_v39  ;;  %v1197_v60 = vpop.permute.xlu1 %1196  ;;  %v1367_v18 = vpop.permute.xlu0 %1366 }
 0x1e0   : > { %4148 = vmatprep.subr.bf16.mxu0 %v4616_v37 }
 0x1e1   : > { %4117 = vmatmul.mubr.msk.bf16.gmra.mxu0 %vm1113_vm2, %v5094_v20  ;;  %3971 = vmatpush3.bf16.msra.mxu1 %v4908_v41 }
 0x1e2   : > { %4120 = vmatprep.mubr.msk.bf16.mxu0 %vm4617_vm1, %v4616_v37  ;;  %4004 = vmatprep.subr.bf16.mxu1 %v4616_v37 }
 0x1e3   : > { %4149 = vmatpush3.bf16.msra.mxu0 %v4902_v40  ;;  %v1365_v8 = vpop.permute.xlu1 %1364 }
 0x1e4   : > { %3941 = vmatmul.mubr.msk.bf16.gmra.mxu1 %vm1113_vm2, %v1197_v60  ;;  %4150 = vmatprep.subr.bf16.mxu0 %v4616_v37  ;;  %v1537_v61 = vpop.permute.xlu0 %1536 }
 0x1e5   : > { %3972 = vmatprep.mubr.msk.bf16.mxu1 %vm4617_vm1, %v4616_v37 }
 0x1e7   : > { %4151 = vmatpush3.bf16.msra.mxu0 %v4908_v41  ;;  %v1369_v25 = vpop.permute.xlu1 %1368 }
 0x1e8   : > { %4184 = vmatprep.subr.bf16.mxu0 %v4616_v37  ;;  %v1541_v4 = vpop.permute.xlu0 %1540 }
 0x1e9   : > { %4121 = vmatmul.mubr.msk.bf16.gmra.mxu0 %vm1113_vm2, %v5101_v7 }
 0x1ea   : > { %4152 = vmatprep.mubr.msk.bf16.mxu0 %vm4617_vm1, %v4616_v37 }
 0x1eb   : > { %v1539_v2 = vpop.permute.xlu1 %1538 }
 0x1ec   : > { %3973 = vmatmul.mubr.msk.bf16.vlgmr.msra.gmra.mxu1 %vm1113_vm2, %v1365_v8 }
 0x1ed   : > { %4005 = vmatpush3.bf16.msra.mxu1 %v4873_v36  ;;  %3976 = vmatprep.mubr.msk.bf16.mxu1 %vm4617_vm1, %v4616_v37  ;;  %v1711_v10 = vpop.permute.xlu0 %1710 }
 0x1ee   : > { %4006 = vmatprep.subr.bf16.mxu1 %v4616_v37 }
 0x1ef   : > { %v1709_v9 = vpop.permute.xlu1 %1708 }
 0x1f1   : > { %4153 = vmatmul.mubr.msk.bf16.vlgmr.msra.gmra.mxu0 %vm1113_vm2, %v5107_v23  ;;  %4007 = vmatpush3.bf16.msra.mxu1 %v4896_v39  ;;  %v1881_v50 = vpop.permute.xlu0 %1880 }
 0x1f2   : > { %4008 = vmatprep.subr.bf16.mxu1 %v4616_v37  ;;  %4156 = vmatprep.mubr.msk.bf16.mxu0 %vm4617_vm1, %v4616_v37 }
 0x1f3   : > { %4185 = vmatpush3.bf16.msra.mxu0 %v4873_v36  ;;  %v1713_v19 = vpop.permute.xlu1 %1712 }
 0x1f4   : > { %3977 = vmatmul.mubr.msk.bf16.gmra.mxu1 %vm1113_vm2, %v1367_v18  ;;  %4186 = vmatprep.subr.bf16.mxu0 %v4616_v37 }
 0x1f5   : > { %4009 = vmatpush3.bf16.msra.mxu1 %v4902_v40  ;;  %3980 = vmatprep.mubr.msk.bf16.mxu1 %vm4617_vm1, %v4616_v37 }
 0x1f6   : > { %4010 = vmatprep.subr.bf16.mxu1 %v4616_v37 }
 0x1f7   : > { %4187 = vmatpush3.bf16.msra.mxu0 %v4896_v39 }
 0x1f8   : > { %4188 = vmatprep.subr.bf16.mxu0 %v4616_v37 }
 0x1f9   : > { %4157 = vmatmul.mubr.msk.bf16.gmra.mxu0 %vm1113_vm2, %v5111_v57  ;;  %4011 = vmatpush3.bf16.msra.mxu1 %v4908_v41 }
 0x1fa   : > { %4160 = vmatprep.mubr.msk.bf16.mxu0 %vm4617_vm1, %v4616_v37  ;;  %4044 = vmatprep.subr.bf16.mxu1 %v4616_v37 }
 0x1fb   : > { %4189 = vmatpush3.bf16.msra.mxu0 %v4902_v40 }
 0x1fc   : > { %3981 = vmatmul.mubr.msk.bf16.gmra.mxu1 %vm1113_vm2, %v1369_v25  ;;  %4190 = vmatprep.subr.bf16.mxu0 %v4616_v37 }
 0x1fd   : > { %4012 = vmatprep.mubr.msk.bf16.mxu1 %vm4617_vm1, %v4616_v37 }
 0x1ff   : > { %4191 = vmatpush3.bf16.msra.mxu0 %v4908_v41 }
 0x201   : > { %4161 = vmatmul.mubr.msk.bf16.gmra.mxu0 %vm1113_vm2, %v5115_v47 }
 0x202   : > { %4192 = vmatprep.mubr.msk.bf16.mxu0 %vm4617_vm1, %v4616_v37 }
 0x204   : > { %4013 = vmatmul.mubr.msk.bf16.vlgmr.msra.gmra.mxu1 %vm1113_vm2, %v1537_v61 }
 0x205   : > { %4045 = vmatpush3.bf16.msra.mxu1 %v4873_v36  ;;  %4016 = vmatprep.mubr.msk.bf16.mxu1 %vm4617_vm1, %v4616_v37 }
 0x206   : > { %4046 = vmatprep.subr.bf16.mxu1 %v4616_v37 }
 0x209   : > { %4193 = vmatmul.mubr.msk.bf16.vlgmr.msra.gmra.mxu0 %vm1113_vm2, %v5121_v62  ;;  %4047 = vmatpush3.bf16.msra.mxu1 %v4896_v39 }
 0x20a   : > { %4048 = vmatprep.subr.bf16.mxu1 %v4616_v37  ;;  %4196 = vmatprep.mubr.msk.bf16.mxu0 %vm4617_vm1, %v4616_v37 }
 0x20c   : > { %4017 = vmatmul.mubr.msk.bf16.gmra.mxu1 %vm1113_vm2, %v1539_v2 }
 0x20d   : > { %4049 = vmatpush3.bf16.msra.mxu1 %v4902_v40  ;;  %4020 = vmatprep.mubr.msk.bf16.mxu1 %vm4617_vm1, %v4616_v37 }
 0x20e   : > { %4050 = vmatprep.subr.bf16.mxu1 %v4616_v37 }
 0x211   : > { %4197 = vmatmul.mubr.msk.bf16.gmra.mxu0 %vm1113_vm2, %v5129_v63  ;;  %4051 = vmatpush3.bf16.msra.mxu1 %v4908_v41  ;;  %v1885_v63 = vpop.permute.xlu0 %1884 }
 0x212   : > { %4200 = vmatprep.mubr.msk.bf16.mxu0 %vm4617_vm1, %v4616_v37  ;;  %4084 = vmatprep.subr.bf16.mxu1 %v4616_v37 }
 0x214   : > { %4021 = vmatmul.mubr.msk.bf16.gmra.mxu1 %vm1113_vm2, %v1541_v4 }
 0x215   : > { %4052 = vmatprep.mubr.msk.bf16.mxu1 %vm4617_vm1, %v4616_v37 }
 0x219   : > { %4201 = vmatmul.mubr.msk.bf16.gmra.mxu0 %vm1113_vm2, %v5133_v16 }
 0x21a   : > { %2943 = vmatprep.mubr.bf16.mxu0 %v4615_v0 }
 0x21c   : > { %4053 = vmatmul.mubr.msk.bf16.vlgmr.msra.gmra.mxu1 %vm1113_vm2, %v1709_v9 }
 0x21d   : > { %4085 = vmatpush3.bf16.msra.mxu1 %v4873_v36  ;;  %4056 = vmatprep.mubr.msk.bf16.mxu1 %vm4617_vm1, %v4616_v37 }
 0x21e   : > { %4086 = vmatprep.subr.bf16.mxu1 %v4616_v37 }
 0x221   : > { %v1157_v1 = vpop.f32.mrf.mxu0  ;;  %4087 = vmatpush3.bf16.msra.mxu1 %v4896_v39 }
 0x222   : > { %4088 = vmatprep.subr.bf16.mxu1 %v4616_v37  ;;  %v1158_v28 = vadd.f32 %v5314_v21, %v1157_v1 }
 0x223   : > { %v3914_v3 = vpop.f32.mrf.mxu0 }
 0x224   : > { %4057 = vmatmul.mubr.msk.bf16.gmra.mxu1 %vm1113_vm2, %v1711_v10  ;;  %v1179_v33 = vmul.f32 0.2, %v1158_v28 }
 0x225   : > { %v1160_v12 = vpop.f32.mrf.mxu0  ;;  %4089 = vmatpush3.bf16.msra.mxu1 %v4902_v40  ;;  %4060 = vmatprep.mubr.msk.bf16.mxu1 %vm4617_vm1, %v4616_v37 }
 0x226   : > { %4090 = vmatprep.subr.bf16.mxu1 %v4616_v37  ;;  %v1161_v46 = vadd.f32 %v5314_v21, %v1160_v12  ;;  %v1184_v48 = vmax.f32 %v1158_v28, %v1179_v33  ;;  %v2055_v33 = vpop.permute.xlu0 %2054 }
 0x227   : > { %v3915_v13 = vpop.f32.mrf.mxu0 }
 0x228   : > { %v1180_v51 = vmul.f32 0.2, %v1161_v46 }
 0x229   : > { %v1165_v15 = vpop.f32.mrf.mxu0  ;;  %4091 = vmatpush3.bf16.msra.mxu1 %v4908_v41 }
 0x22a   : > { %4124 = vmatprep.subr.bf16.mxu1 %v4616_v37  ;;  %v1166_v42 = vadd.f32 %v5314_v21, %v1165_v15  ;;  %v1185_v47 = vmax.f32 %v1161_v46, %v1180_v51 }
 0x22b   : > { %v3918_v11 = vpop.f32.mrf.mxu0 }
 0x22c   : > { %4061 = vmatmul.mubr.msk.bf16.gmra.mxu1 %vm1113_vm2, %v1713_v19  ;;  %v1181_v55 = vmul.f32 0.2, %v1166_v42 }
 0x22d   : > { %v1168_v17 = vpop.f32.mrf.mxu0  ;;  %4092 = vmatprep.mubr.msk.bf16.mxu1 %vm4617_vm1, %v4616_v37 }
 0x22e   : > { %v1186_v60 = vmax.f32 %v1166_v42, %v1181_v55 }
 0x22f   : > { %v3919_v5 = vpop.f32.mrf.mxu0 }
 0x230   : > { %v4363_v5 = vld [vmem:[#allocation8 + $0x18] sm:$0xff]  }
 0x231   : > { %v1173_v20 = vpop.f32.mrf.mxu0 }
 0x232   : > { %v1174_v18 = vadd.f32 %v5314_v21, %v1173_v20 }
 0x233   : > { %v3922_v26 = vpop.f32.mrf.mxu0 }
 0x234   : > { %4093 = vmatmul.mubr.msk.bf16.vlgmr.msra.gmra.mxu1 %vm1113_vm2, %v1881_v50  ;;  %v1183_v3 = vmul.f32 0.2, %v1174_v18 }
 0x235   : > { %4125 = vmatpush3.bf16.msra.mxu1 %v4873_v36  ;;  %v1176_v27 = vpop.f32.mrf.mxu0  ;;  %4096 = vmatprep.mubr.msk.bf16.mxu1 %vm4617_vm1, %v4616_v37  ;;  %v1883_v36 = vpop.permute.xlu1 %1882 }
 0x236   : > { %4126 = vmatprep.subr.bf16.mxu1 %v4616_v37  ;;  %v1188_v50 = vmax.f32 %v1174_v18, %v1183_v3 }
 0x237   : > { %v3923_v29 = vpop.f32.mrf.mxu0 }
 0x239   : > { %v1324_v31 = vpop.f32.mrf.mxu0  ;;  %4127 = vmatpush3.bf16.msra.mxu1 %v4896_v39  ;;  %v2053_v15 = vpop.permute.xlu1 %2052 }
 0x23a   : > { %v1325_v7 = vadd.f32 %v5314_v21, %v1324_v31  ;;  %4128 = vmatprep.subr.bf16.mxu1 %v4616_v37 }
 0x23b   : > { %v3954_v30 = vpop.f32.mrf.mxu0 }
 0x23c   : > { %v1346_v38 = vmul.f32 0.2, %v1325_v7  ;;  %4097 = vmatmul.mubr.msk.bf16.gmra.mxu1 %vm1113_vm2, %v1883_v36  ;;  %v4364_v30 = vld [vmem:[#allocation8 + $0x8] sm:$0xff]  }
 0x23d   : > { %v1327_v23 = vpop.f32.mrf.mxu0  ;;  %4129 = vmatpush3.bf16.msra.mxu1 %v4902_v40  ;;  %4100 = vmatprep.mubr.msk.bf16.mxu1 %vm4617_vm1, %v4616_v37  ;;  %v1169_v40 = vadd.f32 %v5314_v21, %v1168_v17 }
 0x23e   : > { %v1351_v58 = vmax.f32 %v1325_v7, %v1346_v38  ;;  %v1328_v35 = vadd.f32 %v5314_v21, %v1327_v23  ;;  %4130 = vmatprep.subr.bf16.mxu1 %v4616_v37 }
 0x23f   : > { %v3955_v53 = vpop.f32.mrf.mxu0 }
 0x240   : > { %v1273_v57 = vmax.f32 %v1184_v48, %v1351_v58  ;;  %v1347_v34 = vmul.f32 0.2, %v1328_v35  ;;  %v4365_v58 = vld [vmem:[#allocation8] sm:$0xff]  }
 0x241   : > { %v1332_v59 = vpop.f32.mrf.mxu0  ;;  %4131 = vmatpush3.bf16.msra.mxu1 %v4908_v41  ;;  %v1182_v41 = vmul.f32 0.2, %v1169_v40 }
 0x242   : > { %v1352_v62 = vmax.f32 %v1328_v35, %v1347_v34  ;;  %v1333_v45 = vadd.f32 %v5314_v21, %v1332_v59  ;;  %4164 = vmatprep.subr.bf16.mxu1 %v4616_v37  ;;  %v2057_v34 = vpop.permute.xlu1 %2056 }
 0x243   : > { %v3958_v16 = vpop.f32.mrf.mxu0  ;;  %v1187_v10 = vmax.f32 %v1169_v40, %v1182_v41  ;;  %v2225_v41 = vpop.permute.xlu0 %2224 }
 0x244   : > { %v1274_v32 = vmax.f32 %v1185_v47, %v1352_v62  ;;  %v1348_v52 = vmul.f32 0.2, %v1333_v45  ;;  %4101 = vmatmul.mubr.msk.bf16.gmra.mxu1 %vm1113_vm2, %v1885_v63 }
 0x245   : > { %v1335_v8 = vpop.f32.mrf.mxu0  ;;  %4132 = vmatprep.mubr.msk.bf16.mxu1 %vm4617_vm1, %v4616_v37 }
 0x246   : > { %v1353_v25 = vmax.f32 %v1333_v45, %v1348_v52  ;;  %v1336_v61 = vadd.f32 %v5314_v21, %v1335_v8 }
 0x247   : > { %v3959_v2 = vpop.f32.mrf.mxu0 }
 0x248   : > { %v1275_v4 = vmax.f32 %v1186_v60, %v1353_v25  ;;  %v1349_v9 = vmul.f32 0.2, %v1336_v61 }
 0x249   : > { %v1340_v1 = vpop.f32.mrf.mxu0 }
 0x24a   : > { %v1354_v12 = vmax.f32 %v1336_v61, %v1349_v9  ;;  %v1341_v13 = vadd.f32 %v5314_v21, %v1340_v1 }
 0x24b   : > { %v3962_v19 = vpop.f32.mrf.mxu0 }
 0x24c   : > { %v1276_v11 = vmax.f32 %v1187_v10, %v1354_v12  ;;  %v1350_v17 = vmul.f32 0.2, %v1341_v13  ;;  %4133 = vmatmul.mubr.msk.bf16.vlgmr.msra.gmra.mxu1 %vm1113_vm2, %v2053_v15  ;;  %v4366_v10 = vld [vmem:[#allocation8 + $0x10] sm:$0xff]   ;;  %v2227_v12 = vpop.permute.xlu1 %2226 }
 0x24d   : > { %4165 = vmatpush3.bf16.msra.mxu1 %v4363_v5  ;;  %v1343_v20 = vpop.f32.mrf.mxu0  ;;  %4136 = vmatprep.mubr.msk.bf16.mxu1 %vm4617_vm1, %v4616_v37 }
 0x24e   : > { %v1355_v26 = vmax.f32 %v1341_v13, %v1350_v17  ;;  %4166 = vmatprep.subr.bf16.mxu1 %v4616_v37 }
 0x24f   : > { %v3963_v27 = vpop.f32.mrf.mxu0 }
 0x250   : > { %v1277_v28 = vmax.f32 %v1188_v50, %v1355_v26 }
 0x251   : > { %v1496_v29 = vpop.f32.mrf.mxu0  ;;  %4167 = vmatpush3.bf16.msra.mxu1 %v4896_v39 }
 0x252   : > { %v1497_v31 = vadd.f32 %v5314_v21, %v1496_v29  ;;  %4168 = vmatprep.subr.bf16.mxu1 %v4616_v37  ;;  %v2229_v29 = vpop.permute.xlu0 %2228 }
 0x253   : > { %v3994_v46 = vpop.f32.mrf.mxu0 }
 0x254   : > { %v1518_v7 = vmul.f32 0.2, %v1497_v31  ;;  %4137 = vmatmul.mubr.msk.bf16.gmra.mxu1 %vm1113_vm2, %v2055_v33 }
 0x255   : > { %v1499_v36 = vpop.f32.mrf.mxu0  ;;  %4169 = vmatpush3.bf16.msra.mxu1 %v4364_v30  ;;  %4140 = vmatprep.mubr.msk.bf16.mxu1 %vm4617_vm1, %v4616_v37 }
 0x256   : > { %v1523_v38 = vmax.f32 %v1497_v31, %v1518_v7  ;;  %v1500_v42 = vadd.f32 %v5314_v21, %v1499_v36  ;;  %4170 = vmatprep.subr.bf16.mxu1 %v4616_v37 }
 0x257   : > { %v3995_v39 = vpop.f32.mrf.mxu0 }
 0x258   : > { %v1356_v23 = vmax.f32 %v1273_v57, %v1523_v38  ;;  %v1519_v48 = vmul.f32 0.2, %v1500_v42 }
 0x259   : > { %v1504_v51 = vpop.f32.mrf.mxu0  ;;  %4171 = vmatpush3.bf16.msra.mxu1 %v4365_v58 }
 0x25a   : > { %v1524_v35 = vmax.f32 %v1500_v42, %v1519_v48  ;;  %v1505_v53 = vadd.f32 %v5314_v21, %v1504_v51  ;;  %4204 = vmatprep.subr.bf16.mxu1 %v4616_v37 }
 0x25b   : > { %v3998_v55 = vpop.f32.mrf.mxu0 }
 0x25c   : > { %v1357_v59 = vmax.f32 %v1274_v32, %v1524_v35  ;;  %v1520_v47 = vmul.f32 0.2, %v1505_v53  ;;  %4141 = vmatmul.mubr.msk.bf16.gmra.mxu1 %vm1113_vm2, %v2057_v34 }
 0x25d   : > { %v1507_v40 = vpop.f32.mrf.mxu0  ;;  %4172 = vmatprep.mubr.msk.bf16.mxu1 %vm4617_vm1, %v4616_v37 }
 0x25e   : > { %v1525_v57 = vmax.f32 %v1505_v53, %v1520_v47  ;;  %v1508_v62 = vadd.f32 %v5314_v21, %v1507_v40 }
 0x25f   : > { %v3999_v45 = vpop.f32.mrf.mxu0 }
 0x260   : > { %v1358_v63 = vmax.f32 %v1275_v4, %v1525_v57  ;;  %v1521_v16 = vmul.f32 0.2, %v1508_v62  ;;  %v2399_v45 = vpop.permute.xlu0 %2398 }
 0x261   : > { %v1512_v52 = vpop.f32.mrf.mxu0 }
 0x262   : > { %v1526_v60 = vmax.f32 %v1508_v62, %v1521_v16  ;;  %v1513_v8 = vadd.f32 %v5314_v21, %v1512_v52 }
 0x263   : > { %v4002_v18 = vpop.f32.mrf.mxu0 }
 0x264   : > { %v1359_v32 = vmax.f32 %v1276_v11, %v1526_v60  ;;  %v1522_v25 = vmul.f32 0.2, %v1513_v8  ;;  %4173 = vmatmul.mubr.msk.bf16.vlgmr.msra.gmra.mxu1 %vm1113_vm2, %v2225_v41 }
 0x265   : > { %4205 = vmatpush3.bf16.msra.mxu1 %v4363_v5  ;;  %v1515_v61 = vpop.f32.mrf.mxu0  ;;  %4176 = vmatprep.mubr.msk.bf16.mxu1 %vm4617_vm1, %v4616_v37 }
 0x266   : > { %v1527_v2 = vmax.f32 %v1513_v8, %v1522_v25  ;;  %4206 = vmatprep.subr.bf16.mxu1 %v4616_v37 }
 0x267   : > { %v4003_v4 = vpop.f32.mrf.mxu0 }
 0x268   : > { %v1360_v9 = vmax.f32 %v1277_v28, %v1527_v2 }
 0x269   : > { %v1668_v1 = vpop.f32.mrf.mxu0  ;;  %4207 = vmatpush3.bf16.msra.mxu1 %v4366_v10 }
 0x26a   : > { %v1669_v3 = vadd.f32 %v5314_v21, %v1668_v1  ;;  %4208 = vmatprep.subr.bf16.mxu1 %v4616_v37 }
 0x26b   : > { %v4034_v13 = vpop.f32.mrf.mxu0 }
 0x26c   : > { %v1690_v15 = vmul.f32 0.2, %v1669_v3  ;;  %4177 = vmatmul.mubr.msk.bf16.gmra.mxu1 %vm1113_vm2, %v2227_v12 }
 0x26d   : > { %v1671_v19 = vpop.f32.mrf.mxu0  ;;  %4209 = vmatpush3.bf16.msra.mxu1 %v4364_v30  ;;  %4180 = vmatprep.mubr.msk.bf16.mxu1 %vm4617_vm1, %v4616_v37 }
 0x26e   : > { %v1695_v11 = vmax.f32 %v1669_v3, %v1690_v15  ;;  %v1672_v17 = vadd.f32 %v5314_v21, %v1671_v19  ;;  %4210 = vmatprep.subr.bf16.mxu1 %v4616_v37 }
 0x26f   : > { %v4035_v5 = vpop.f32.mrf.mxu0 }
 0x270   : > { %v1445_v20 = vmax.f32 %v1356_v23, %v1695_v11  ;;  %v1691_v50 = vmul.f32 0.2, %v1672_v17 }
 0x271   : > { %v1676_v26 = vpop.f32.mrf.mxu0  ;;  %4211 = vmatpush3.bf16.msra.mxu1 %v4365_v58  ;;  %v2397_v58 = vpop.permute.xlu1 %2396 }
 0x272   : > { %v1696_v27 = vmax.f32 %v1672_v17, %v1691_v50  ;;  %v1677_v28 = vadd.f32 %v5314_v21, %v1676_v26 }
 0x273   : > { %v4038_v31 = vpop.f32.mrf.mxu0 }
 0x274   : > { %v1446_v33 = vmax.f32 %v1357_v59, %v1696_v27  ;;  %v1692_v46 = vmul.f32 0.2, %v1677_v28  ;;  %4181 = vmatmul.mubr.msk.bf16.gmra.mxu1 %vm1113_vm2, %v2229_v29 }
 0x275   : > { %v1679_v7 = vpop.f32.mrf.mxu0  ;;  %4212 = vmatprep.mubr.msk.bf16.mxu1 %vm4617_vm1, %v4616_v37  ;;  %v2401_v4 = vpop.permute.xlu1 %2400 }
 0x276   : > { %v1697_v36 = vmax.f32 %v1677_v28, %v1692_v46  ;;  %v1680_v30 = vadd.f32 %v5314_v21, %v1679_v7 }
 0x277   : > { %v4039_v38 = vpop.f32.mrf.mxu0 }
 0x278   : > { %v1447_v42 = vmax.f32 %v1358_v63, %v1697_v36  ;;  %v1693_v39 = vmul.f32 0.2, %v1680_v30 }
 0x279   : > { %v1684_v23 = vpop.f32.mrf.mxu0 }
 0x27a   : > { %v1698_v48 = vmax.f32 %v1680_v30, %v1693_v39  ;;  %v1685_v51 = vadd.f32 %v5314_v21, %v1684_v23 }
 0x27b   : > { %v4042_v35 = vpop.f32.mrf.mxu0 }
 0x27c   : > { %v1448_v53 = vmax.f32 %v1359_v32, %v1698_v48  ;;  %v1694_v34 = vmul.f32 0.2, %v1685_v51  ;;  %4213 = vmatmul.mubr.msk.bf16.vlgmr.msra.gmra.mxu1 %vm1113_vm2, %v2397_v58 }
 0x27d   : > { %v1687_v55 = vpop.f32.mrf.mxu0  ;;  %4216 = vmatprep.mubr.msk.bf16.mxu1 %vm4617_vm1, %v4616_v37 }
 0x27e   : > { %v1699_v59 = vmax.f32 %v1685_v51, %v1694_v34 }
 0x27f   : > { %v4043_v47 = vpop.f32.mrf.mxu0 }
 0x280   : > { %v1449_v40 = vmax.f32 %v1360_v9, %v1699_v59 }
 0x281   : > { %v1840_v57 = vpop.f32.mrf.mxu0 }
 0x282   : > { %v1841_v62 = vadd.f32 %v5314_v21, %v1840_v57 }
 0x283   : > { %v4074_v63 = vpop.f32.mrf.mxu0 }
 0x284   : > { %v1862_v16 = vmul.f32 0.2, %v1841_v62  ;;  %4217 = vmatmul.mubr.msk.bf16.gmra.mxu1 %vm1113_vm2, %v2399_v45 }
 0x285   : > { %v1843_v52 = vpop.f32.mrf.mxu0  ;;  %4220 = vmatprep.mubr.msk.bf16.mxu1 %vm4617_vm1, %v4616_v37 }
 0x286   : > { %v1867_v60 = vmax.f32 %v1841_v62, %v1862_v16  ;;  %v1844_v8 = vadd.f32 %v5314_v21, %v1843_v52 }
 0x287   : > { %v4075_v41 = vpop.f32.mrf.mxu0 }
 0x288   : > { %v1528_v18 = vmax.f32 %v1445_v20, %v1867_v60  ;;  %v1863_v32 = vmul.f32 0.2, %v1844_v8 }
 0x289   : > { %v1848_v25 = vpop.f32.mrf.mxu0 }
 0x28a   : > { %v1868_v61 = vmax.f32 %v1844_v8, %v1863_v32  ;;  %v1849_v2 = vadd.f32 %v5314_v21, %v1848_v25 }
 0x28b   : > { %v4078_v9 = vpop.f32.mrf.mxu0 }
 0x28c   : > { %v1529_v1 = vmax.f32 %v1446_v33, %v1868_v61  ;;  %v1864_v10 = vmul.f32 0.2, %v1849_v2  ;;  %4221 = vmatmul.mubr.msk.bf16.gmra.mxu1 %vm1113_vm2, %v2401_v4 }
 0x28d   : > { %v1851_v3 = vpop.f32.mrf.mxu0  ;;  %3004 = vmatprep.mubr.bf16.mxu1 %v4615_v0 }
 0x28e   : > { %v1869_v37 = vmax.f32 %v1849_v2, %v1864_v10  ;;  %v1852_v12 = vadd.f32 %v5314_v21, %v1851_v3 }
 0x28f   : > { %v4079_v13 = vpop.f32.mrf.mxu0 }
 0x290   : > { %v1530_v15 = vmax.f32 %v1447_v42, %v1869_v37  ;;  %v1865_v19 = vmul.f32 0.2, %v1852_v12 }
 0x291   : > { %v1856_v11 = vpop.f32.mrf.mxu0 }
 0x292   : > { %v1870_v17 = vmax.f32 %v1852_v12, %v1865_v19  ;;  %v1857_v5 = vadd.f32 %v5314_v21, %v1856_v11 }
 0x293   : > { %v4082_v20 = vpop.f32.mrf.mxu0 }
 0x294   : > { %v1531_v50 = vmax.f32 %v1448_v53, %v1870_v17  ;;  %v1866_v26 = vmul.f32 0.2, %v1857_v5  ;;  %v1241_v27 = vpop.f32.mrf.mxu1 }
 0x295   : > { %v1242_v28 = vadd.f32 %v5314_v21, %v1241_v27  ;;  %v1859_v29 = vpop.f32.mrf.mxu0 }
 0x296   : > { %v1871_v31 = vmax.f32 %v1857_v5, %v1866_v26  ;;  %v3934_v33 = vpop.f32.mrf.mxu1  ;;  %v2545_v29 = vld [vmem:[#allocation10 + $0x1e0] sm:$0xff] }
 0x297   : > { %v1263_v46 = vmul.f32 0.2, %v1242_v28  ;;  %v4083_v7 = vpop.f32.mrf.mxu0 }
 0x298   : > { %v1532_v36 = vmax.f32 %v1449_v40, %v1871_v31  ;;  %v1244_v30 = vpop.f32.mrf.mxu1 }
 0x299   : > { %v1268_v38 = vmax.f32 %v1242_v28, %v1263_v46  ;;  %v1245_v42 = vadd.f32 %v5314_v21, %v1244_v30  ;;  %v2012_v39 = vpop.f32.mrf.mxu0  ;;  %v2541_v28 = vld [vmem:[#allocation10 + $0x1c0] sm:$0xff]  ;;  %v2546_v30 = vld [vmem:[#allocation10 + $0x1e8] sm:$0xff] }
 0x29a   : > { %v2013_v23 = vadd.f32 %v5314_v21, %v2012_v39  ;;  %v3935_v48 = vpop.f32.mrf.mxu1  ;;  %v3779_v7 = vcombine.high %v2541_v28, %v2545_v29  ;;  %v3778_v39 = vcombine.low %v2541_v28, %v2545_v29 }
 0x29b   : > { %v1617_v51 = vmax.f32 %v1528_v18, %v1268_v38  ;;  %v1264_v58 = vmul.f32 0.2, %v1245_v42  ;;  %v4114_v35 = vpop.f32.mrf.mxu0 }
 0x29c   : > { %v2034_v53 = vmul.f32 0.2, %v2013_v23  ;;  %v1249_v34 = vpop.f32.mrf.mxu1  ;;  %2911 = vmatprep.subr.bf16.mxu0 %v3779_v7 }
 0x29d   : > { %v1269_v55 = vmax.f32 %v1245_v42, %v1264_v58  ;;  %v1250_v59 = vadd.f32 %v5314_v21, %v1249_v34  ;;  %v2015_v47 = vpop.f32.mrf.mxu0  ;;  %2912 = vmatpush1.bf16.msra.mxu0 %v3778_v39  ;;  %v2533_v34 = vld [vmem:[#allocation10 + $0x180] sm:$0xff] }
 0x29e   : > { %v2039_v57 = vmax.f32 %v2013_v23, %v2034_v53  ;;  %v2016_v40 = vadd.f32 %v5314_v21, %v2015_v47  ;;  %v3938_v62 = vpop.f32.mrf.mxu1 }
 0x29f   : > { %v1618_v45 = vmax.f32 %v1529_v1, %v1269_v55  ;;  %v1265_v63 = vmul.f32 0.2, %v1250_v59  ;;  %v4115_v16 = vpop.f32.mrf.mxu0  ;;  %v2537_v55 = vld [vmem:[#allocation10 + $0x1a0] sm:$0xff] }
 0x2a0   : > { %v5397_v52 = vmax.f32 %v1617_v51, %v2039_v57  ;;  %v2035_v60 = vmul.f32 0.2, %v2016_v40  ;;  %v1252_v8 = vpop.f32.mrf.mxu1  ;;  %v3771_v62 = vcombine.high %v2533_v34, %v2537_v55 }
 0x2a1   : > { %v1270_v41 = vmax.f32 %v1250_v59, %v1265_v63  ;;  %v1253_v18 = vadd.f32 %v5314_v21, %v1252_v8  ;;  %v2020_v32 = vpop.f32.mrf.mxu0  ;;  %v2534_v59 = vld [vmem:[#allocation10 + $0x188] sm:$0xff] }
 0x2a2   : > { %v2040_v25 = vmax.f32 %v2016_v40, %v2035_v60  ;;  %v2021_v61 = vadd.f32 %v5314_v21, %v2020_v32  ;;  %v3939_v2 = vpop.f32.mrf.mxu1  ;;  %v3770_v60 = vcombine.low %v2533_v34, %v2537_v55  ;;  %2913 = vmatprep.subr.bf16.mxu0 %v3771_v62  ;;  %v2510_v62 = vld [vmem:[#allocation10 + $0xc8] sm:$0xff] }
 0x2a3   : > { %v1619_v4 = vmax.f32 %v1530_v15, %v1270_v41  ;;  %v1266_v9 = vmul.f32 0.2, %v1253_v18  ;;  %v4118_v10 = vpop.f32.mrf.mxu0  ;;  %v2542_v15 = vld [vmem:[#allocation10 + $0x1c8] sm:$0xff]  ;;  %v2529_v2 = vld [vmem:[#allocation10 + $0x160] sm:$0xff] }
 0x2a4   : > { %v5401_v3 = vmax.f32 %v1618_v45, %v2040_v25  ;;  %v2036_v1 = vmul.f32 0.2, %v2021_v61  ;;  %v1257_v37 = vpop.f32.mrf.mxu1  ;;  %v3780_v23 = vcombine.low %v2542_v15, %v2546_v30  ;;  %v3781_v48 = vcombine.high %v2542_v15, %v2546_v30  ;;  %v2538_v45 = vld [vmem:[#allocation10 + $0x1a8] sm:$0xff]  ;;  %2914 = vmatpush1.bf16.msra.mxu0 %v3770_v60  ;;  %v2517_v15 = vld [vmem:[#allocation10 + $0x100] sm:$0xff] }
 0x2a5   : > { %v1271_v12 = vmax.f32 %v1253_v18, %v1266_v9  ;;  %v1258_v13 = vadd.f32 %v5314_v21, %v1257_v37  ;;  %v2023_v19 = vpop.f32.mrf.mxu0  ;;  %v3772_v8 = vcombine.low %v2534_v59, %v2538_v45  ;;  %v3773_v41 = vcombine.high %v2534_v59, %v2538_v45  ;;  %v2530_v37 = vld [vmem:[#allocation10 + $0x168] sm:$0xff] }
 0x2a6   : > { %v2041_v11 = vmax.f32 %v2021_v61, %v2036_v1  ;;  %v2024_v17 = vadd.f32 %v5314_v21, %v2023_v19  ;;  %v3942_v5 = vpop.f32.mrf.mxu1  ;;  %2972 = vmatprep.subr.bf16.mxu1 %v3781_v48  ;;  %v2525_v61 = vld [vmem:[#allocation10 + $0x140] sm:$0xff] }
 0x2a7   : > { %v1620_v20 = vmax.f32 %v1531_v50, %v1271_v12  ;;  %v1267_v26 = vmul.f32 0.2, %v1258_v13  ;;  %v4119_v27 = vpop.f32.mrf.mxu0  ;;  %2973 = vmatpush1.bf16.msra.mxu1 %v3780_v23  ;;  %v3763_v1 = vcombine.high %v2525_v61, %v2529_v2 }
 0x2a8   : > { %v5405_v31 = vmax.f32 %v1619_v4, %v2041_v11  ;;  %v2037_v33 = vmul.f32 0.2, %v2024_v17  ;;  %v1260_v46 = vpop.f32.mrf.mxu1  ;;  %2974 = vmatprep.subr.bf16.mxu1 %v3773_v41  ;;  %v2526_v4 = vld [vmem:[#allocation10 + $0x148] sm:$0xff]  ;;  %v3762_v11 = vcombine.low %v2525_v61, %v2529_v2 }
 0x2a9   : > { %v1272_v38 = vmax.f32 %v1258_v13, %v1267_v26  ;;  %v2028_v42 = vpop.f32.mrf.mxu0  ;;  %2915 = vmatprep.subr.bf16.mxu0 %v3763_v1  ;;  %v3765_v26 = vcombine.high %v2526_v4, %v2530_v37  ;;  %v2518_v46 = vld [vmem:[#allocation10 + $0x108] sm:$0xff] }
 0x2aa   : > { %v2042_v51 = vmax.f32 %v2024_v17, %v2037_v33  ;;  %v2029_v58 = vadd.f32 %v5314_v21, %v2028_v42  ;;  %v3943_v50 = vpop.f32.mrf.mxu1  ;;  %v3764_v17 = vcombine.low %v2526_v4, %v2530_v37  ;;  %2916 = vmatpush1.bf16.msra.mxu0 %v3762_v11  ;;  %v2521_v33 = vld [vmem:[#allocation10 + $0x120] sm:$0xff]  ;;  %v2522_v42 = vld [vmem:[#allocation10 + $0x128] sm:$0xff] }
 0x2ab   : > { %v1621_v35 = vmax.f32 %v1532_v36, %v1272_v38  ;;  %v4122_v53 = vpop.f32.mrf.mxu0  ;;  %2975 = vmatpush1.bf16.msra.mxu1 %v3772_v8  ;;  %v3755_v38 = vcombine.high %v2517_v15, %v2521_v33  ;;  %v2514_v8 = vld [vmem:[#allocation10 + $0xe8] sm:$0xff] }
 0x2ac   : > { %v5408_v47 = vmax.f32 %v1620_v20, %v2042_v51  ;;  %v2038_v57 = vmul.f32 0.2, %v2029_v58  ;;  %v1413_v40 = vpop.f32.mrf.mxu1  ;;  %2976 = vmatprep.subr.bf16.mxu1 %v3765_v26  ;;  %v3754_v51 = vcombine.low %v2517_v15, %v2521_v33  ;;  %v3757_v53 = vcombine.high %v2518_v46, %v2522_v42  ;;  %v2506_v26 = vld [vmem:[#allocation10 + $0xa8] sm:$0xff] }
 0x2ad   : > { %v1414_v63 = vadd.f32 %v5314_v21, %v1413_v40  ;;  %v2031_v16 = vpop.f32.mrf.mxu0  ;;  %2917 = vmatprep.subr.bf16.mxu0 %v3755_v38  ;;  %v2513_v40 = vld [vmem:[#allocation10 + $0xe0] sm:$0xff]  ;;  %v3749_v4 = vcombine.high %v2510_v62, %v2514_v8 }
 0x2ae   : > { %v2043_v36 = vmax.f32 %v2029_v58, %v2038_v57  ;;  %v3974_v18 = vpop.f32.mrf.mxu1  ;;  %v3756_v58 = vcombine.low %v2518_v46, %v2522_v42  ;;  %2918 = vmatpush1.bf16.msra.mxu0 %v3754_v51  ;;  %v2509_v57 = vld [vmem:[#allocation10 + $0xc0] sm:$0xff]  ;;  %v2494_v51 = vld [vmem:[#allocation10 + $0x48] sm:$0xff] }
 0x2af   : > { %v1435_v32 = vmul.f32 0.2, %v1414_v63  ;;  %v4123_v25 = vpop.f32.mrf.mxu0  ;;  %2977 = vmatpush1.bf16.msra.mxu1 %v3764_v17  ;;  %v3747_v60 = vcombine.high %v2509_v57, %v2513_v40 }
 0x2b0   : > { %v5411_v9 = vmax.f32 %v1621_v35, %v2043_v36  ;;  %v1416_v10 = vpop.f32.mrf.mxu1  ;;  %2978 = vmatprep.subr.bf16.mxu1 %v3757_v53  ;;  %v2498_v53 = vld [vmem:[#allocation10 + $0x68] sm:$0xff] }
 0x2b1   : > { %v1440_v12 = vmax.f32 %v1414_v63, %v1435_v32  ;;  %v1417_v13 = vadd.f32 %v5314_v21, %v1416_v10  ;;  %v2184_v19 = vpop.f32.mrf.mxu0  ;;  %v3746_v32 = vcombine.low %v2509_v57, %v2513_v40  ;;  %2919 = vmatprep.subr.bf16.mxu0 %v3747_v60  ;;  %v3732_v57 = vcombine.low %v2494_v51, %v2498_v53 }
 0x2b2   : > { %v2185_v5 = vadd.f32 %v5314_v21, %v2184_v19  ;;  %v3975_v20 = vpop.f32.mrf.mxu1  ;;  %v2502_v19 = vld [vmem:[#allocation10 + $0x88] sm:$0xff]  ;;  %v3733_v40 = vcombine.high %v2494_v51, %v2498_v53 }
 0x2b3   : > { %v1789_v27 = vmax.f32 %v5397_v52, %v1440_v12  ;;  %v1436_v28 = vmul.f32 0.2, %v1417_v13  ;;  %v4154_v29 = vpop.f32.mrf.mxu0  ;;  %2979 = vmatpush1.bf16.msra.mxu1 %v3756_v58  ;;  %2920 = vmatpush1.bf16.msra.mxu0 %v3746_v32  ;;  %v2501_v12 = vld [vmem:[#allocation10 + $0x80] sm:$0xff] }
 0x2b4   : > { %v2206_v7 = vmul.f32 0.2, %v2185_v5  ;;  %v1421_v30 = vpop.f32.mrf.mxu1  ;;  %2980 = vmatprep.subr.bf16.mxu1 %v3749_v4 }
 0x2b5   : > { %v1441_v39 = vmax.f32 %v1417_v13, %v1436_v28  ;;  %v1422_v23 = vadd.f32 %v5314_v21, %v1421_v30  ;;  %v2187_v48 = vpop.f32.mrf.mxu0  ;;  %v2505_v13 = vld [vmem:[#allocation10 + $0xa0] sm:$0xff]  ;;  %v3741_v30 = vcombine.high %v2502_v19, %v2506_v26 }
 0x2b6   : > { %v2211_v50 = vmax.f32 %v2185_v5, %v2206_v7  ;;  %v2188_v52 = vadd.f32 %v5314_v21, %v2187_v48  ;;  %v3978_v35 = vpop.f32.mrf.mxu1  ;;  %v3739_v20 = vcombine.high %v2501_v12, %v2505_v13  ;;  %v3738_v15 = vcombine.low %v2501_v12, %v2505_v13  ;;  %v2497_v48 = vld [vmem:[#allocation10 + $0x60] sm:$0xff] }
 0x2b7   : > { %v1790_v34 = vmax.f32 %v5401_v3, %v1441_v39  ;;  %v1437_v55 = vmul.f32 0.2, %v1422_v23  ;;  %v4155_v59 = vpop.f32.mrf.mxu0  ;;  %v3748_v3 = vcombine.low %v2510_v62, %v2514_v8  ;;  %v2485_v8 = vld [vmem:[#allocation10] sm:$0xff] }
 0x2b8   : > { %v5419_v45 = vmax.f32 %v1789_v27, %v2211_v50  ;;  %v2207_v63 = vmul.f32 0.2, %v2188_v52  ;;  %v1424_v16 = vpop.f32.mrf.mxu1  ;;  %2921 = vmatprep.subr.bf16.mxu0 %v3739_v20  ;;  %v5440_v20 = vld [vmem:[#allocation10 + $0x1d8] sm:$0xff] }
 0x2b9   : > { %v1442_v41 = vmax.f32 %v1422_v23, %v1437_v55  ;;  %v1425_v36 = vadd.f32 %v5314_v21, %v1424_v16  ;;  %v2192_v18 = vpop.f32.mrf.mxu0  ;;  %2981 = vmatpush1.bf16.msra.mxu1 %v3748_v3  ;;  %2922 = vmatpush1.bf16.msra.mxu0 %v3738_v15  ;;  %v2493_v23 = vld [vmem:[#allocation10 + $0x40] sm:$0xff] }
 0x2ba   : > { %v2212_v25 = vmax.f32 %v2188_v52, %v2207_v63  ;;  %v2193_v61 = vadd.f32 %v5314_v21, %v2192_v18  ;;  %v3979_v2 = vpop.f32.mrf.mxu1  ;;  %2982 = vmatprep.subr.bf16.mxu1 %v3741_v30  ;;  %v3731_v35 = vcombine.high %v2493_v23, %v2497_v48  ;;  %v3730_v59 = vcombine.low %v2493_v23, %v2497_v48 }
 0x2bb   : > { %v1791_v10 = vmax.f32 %v5405_v31, %v1442_v41  ;;  %v1438_v1 = vmul.f32 0.2, %v1425_v36  ;;  %v4158_v37 = vpop.f32.mrf.mxu0  ;;  %v3740_v31 = vcombine.low %v2502_v19, %v2506_v26  ;;  %v2489_v41 = vld [vmem:[#allocation10 + $0x20] sm:$0xff] }
 0x2bc   : > { %v5424_v11 = vmax.f32 %v1790_v34, %v2212_v25  ;;  %v2208_v17 = vmul.f32 0.2, %v2193_v61  ;;  %v1429_v5 = vpop.f32.mrf.mxu1  ;;  %2923 = vmatprep.subr.bf16.mxu0 %v3731_v35  ;;  %v3723_v25 = vcombine.high %v2485_v8, %v2489_v41 }
 0x2bd   : > { %v1443_v27 = vmax.f32 %v1425_v36, %v1438_v1  ;;  %v1430_v28 = vadd.f32 %v5314_v21, %v1429_v5  ;;  %v2195_v29 = vpop.f32.mrf.mxu0  ;;  %2983 = vmatpush1.bf16.msra.mxu1 %v3740_v31  ;;  %2924 = vmatpush1.bf16.msra.mxu0 %v3730_v59  ;;  %v2486_v36 = vld [vmem:[#allocation10 + $0x8] sm:$0xff]  ;;  %v5438_v5 = vld [vmem:[#allocation10 + $0x1f0] sm:$0xff] }
 0x2be   : > { %v2213_v33 = vmax.f32 %v2193_v61, %v2208_v17  ;;  %v2196_v46 = vadd.f32 %v5314_v21, %v2195_v29  ;;  %v3982_v7 = vpop.f32.mrf.mxu1  ;;  %2984 = vmatprep.subr.bf16.mxu1 %v3733_v40  ;;  %v2490_v61 = vld [vmem:[#allocation10 + $0x28] sm:$0xff]  ;;  %2925 = vmatprep.subr.bf16.mxu0 %v3723_v25  ;;  %v5436_v17 = vld [vmem:[#allocation10 + $0x1d0] sm:$0xff]  ;;  %v5444_v29 = vld [vmem:[#allocation10 + $0x1f8] sm:$0xff] }
 0x2bf   : > { %v1792_v38 = vmax.f32 %v5408_v47, %v1443_v27  ;;  %v1439_v42 = vmul.f32 0.2, %v1430_v28  ;;  %v4159_v39 = vpop.f32.mrf.mxu0  ;;  %v3724_v1 = vcombine.low %v2486_v36, %v2490_v61  ;;  %v3725_v37 = vcombine.high %v2486_v36, %v2490_v61 }
 0x2c0   : > { %v5429_v58 = vmax.f32 %v1791_v10, %v2213_v33  ;;  %v2209_v50 = vmul.f32 0.2, %v2196_v46  ;;  %v1432_v52 = vpop.f32.mrf.mxu1  ;;  %v3722_v10 = vcombine.low %v2485_v8, %v2489_v41  ;;  %v3784_v7 = vcombine.low %v5440_v20, %v5444_v29 }
 0x2c1   : > { %v1444_v34 = vmax.f32 %v1430_v28, %v1439_v42  ;;  %v2200_v55 = vpop.f32.mrf.mxu0  ;;  %2985 = vmatpush1.bf16.msra.mxu1 %v3732_v57  ;;  %v3783_v28 = vcombine.high %v5436_v17, %v5438_v5  ;;  %v3785_v42 = vcombine.high %v5440_v20, %v5444_v29 }
 0x2c2   : > { %v2214_v47 = vmax.f32 %v2196_v46, %v2209_v50  ;;  %v2201_v62 = vadd.f32 %v5314_v21, %v2200_v55  ;;  %v3983_v63 = vpop.f32.mrf.mxu1  ;;  %2986 = vmatprep.subr.bf16.mxu1 %v3725_v37  ;;  %2926 = vmatpush1.bf16.msra.mxu0 %v3722_v10  ;;  %v3782_v46 = vcombine.low %v5436_v17, %v5438_v5 }
 0x2c3   : > { %v1793_v16 = vmax.f32 %v5411_v9, %v1444_v34  ;;  %v4162_v60 = vpop.f32.mrf.mxu0  ;;  %3033 = vmatprep.subr.bf16.mxu0 %v3783_v28 }
 0x2c4   : > { %v5433_v18 = vmax.f32 %v1792_v38, %v2214_v47  ;;  %v2210_v32 = vmul.f32 0.2, %v2201_v62  ;;  %v1585_v3 = vpop.f32.mrf.mxu1 }
 0x2c5   : > { %v1586_v2 = vadd.f32 %v5314_v21, %v1585_v3  ;;  %v2203_v4 = vpop.f32.mrf.mxu0  ;;  %2987 = vmatpush1.bf16.msra.mxu1 %v3724_v1 }
 0x2c6   : > { %v2215_v9 = vmax.f32 %v2201_v62, %v2210_v32  ;;  %v4014_v12 = vpop.f32.mrf.mxu1  ;;  %3094 = vmatprep.subr.bf16.mxu1 %v3785_v42 }
 0x2c7   : > { %v1607_v13 = vmul.f32 0.2, %v1586_v2  ;;  %v4163_v19 = vpop.f32.mrf.mxu0 }
 0x2c8   : > { %v1876_v26 = vmax.f32 %v1793_v16, %v2215_v9  ;;  %v1588_v27 = vpop.f32.mrf.mxu1 }
 0x2c9   : > { %v1612_v15 = vmax.f32 %v1586_v2, %v1607_v13  ;;  %v1589_v31 = vadd.f32 %v5314_v21, %v1588_v27  ;;  %v2356_v33 = vpop.f32.mrf.mxu0 }
 0x2ca   : > { %v2357_v30 = vadd.f32 %v5314_v21, %v2356_v33  ;;  %v4015_v38 = vpop.f32.mrf.mxu1 }
 0x2cb   : > { %v1961_v39 = vmax.f32 %v5419_v45, %v1612_v15  ;;  %v1608_v23 = vmul.f32 0.2, %v1589_v31  ;;  %v4194_v48 = vpop.f32.mrf.mxu0 }
 0x2cc   : > { %v2378_v51 = vmul.f32 0.2, %v2357_v30  ;;  %v1593_v50 = vpop.f32.mrf.mxu1 }
 0x2cd   : > { %v1613_v52 = vmax.f32 %v1589_v31, %v1608_v23  ;;  %v1594_v35 = vadd.f32 %v5314_v21, %v1593_v50  ;;  %v2359_v53 = vpop.f32.mrf.mxu0 }
 0x2ce   : > { %v2383_v34 = vmax.f32 %v2357_v30, %v2378_v51  ;;  %v2360_v55 = vadd.f32 %v5314_v21, %v2359_v53  ;;  %v4018_v59 = vpop.f32.mrf.mxu1 }
 0x2cf   : > { %v1962_v57 = vmax.f32 %v5424_v11, %v1613_v52  ;;  %v1609_v40 = vmul.f32 0.2, %v1594_v35  ;;  %v4195_v47 = vpop.f32.mrf.mxu0 }
 0x2d0   : > { %v2044_v62 = vmax.f32 %v1961_v39, %v2383_v34  ;;  %v2379_v63 = vmul.f32 0.2, %v2360_v55  ;;  %v1596_v45 = vpop.f32.mrf.mxu1 }
 0x2d1   : > { %v1614_v16 = vmax.f32 %v1594_v35, %v1609_v40  ;;  %v1597_v60 = vadd.f32 %v5314_v21, %v1596_v45  ;;  %v2364_v8 = vpop.f32.mrf.mxu0 }
 0x2d2   : > { %v2384_v41 = vmax.f32 %v2360_v55, %v2379_v63  ;;  %v2365_v36 = vadd.f32 %v5314_v21, %v2364_v8  ;;  %v4019_v32 = vpop.f32.mrf.mxu1 }
 0x2d3   : > { %v1963_v3 = vmax.f32 %v5429_v58, %v1614_v16  ;;  %v1610_v25 = vmul.f32 0.2, %v1597_v60  ;;  %v4198_v61 = vpop.f32.mrf.mxu0 }
 0x2d4   : > { %v2045_v2 = vmax.f32 %v1962_v57, %v2384_v41  ;;  %v2380_v4 = vmul.f32 0.2, %v2365_v36  ;;  %v1601_v11 = vpop.f32.mrf.mxu1  ;;  %v5470_v41 = vld [vmem:[%s5850_s4] ss:$0 sm:$0xff] }
 0x2d5   : > { %v1615_v10 = vmax.f32 %v1597_v60, %v1610_v25  ;;  %v1602_v1 = vadd.f32 %v5314_v21, %v1601_v11  ;;  %v2367_v37 = vpop.f32.mrf.mxu0 }
 0x2d6   : > { %v2385_v9 = vmax.f32 %v2365_v36, %v2380_v4  ;;  %v2368_v12 = vadd.f32 %v5314_v21, %v2367_v37  ;;  %v4022_v13 = vpop.f32.mrf.mxu1 }
 0x2d7   : > { %v1964_v19 = vmax.f32 %v5433_v18, %v1615_v10  ;;  %v1611_v27 = vmul.f32 0.2, %v1602_v1  ;;  %v4199_v28 = vpop.f32.mrf.mxu0 }
 0x2d8   : > { %v2046_v15 = vmax.f32 %v1963_v3, %v2385_v9  ;;  %v2381_v31 = vmul.f32 0.2, %v2368_v12  ;;  %v1604_v58 = vpop.f32.mrf.mxu1 }
 0x2d9   : > { %v1616_v33 = vmax.f32 %v1602_v1, %v1611_v27  ;;  %v2372_v30 = vpop.f32.mrf.mxu0 }
 0x2da   : > { %v2386_v38 = vmax.f32 %v2368_v12, %v2381_v31  ;;  %v2373_v42 = vadd.f32 %v5314_v21, %v2372_v30  ;;  %v4023_v39 = vpop.f32.mrf.mxu1 }
 0x2db   : > { %v1965_v23 = vmax.f32 %v1876_v26, %v1616_v33  ;;  %v4202_v48 = vpop.f32.mrf.mxu0 }
 0x2dc   : > { %v2047_v51 = vmax.f32 %v1964_v19, %v2386_v38  ;;  %v2382_v50 = vmul.f32 0.2, %v2373_v42  ;;  %v1757_v52 = vpop.f32.mrf.mxu1 }
 0x2dd   : > { %v1758_v35 = vadd.f32 %v5314_v21, %v1757_v52  ;;  %v2375_v53 = vpop.f32.mrf.mxu0 }
 0x2de   : > { %v2387_v18 = vmax.f32 %v2373_v42, %v2382_v50  ;;  %v4054_v34 = vpop.f32.mrf.mxu1 }
 0x2df   : > { %v1779_v55 = vmul.f32 0.2, %v1758_v35  ;;  %v4203_v59 = vpop.f32.mrf.mxu0 }
 0x2e0   : > { %v2048_v57 = vmax.f32 %v1965_v23, %v2387_v18  ;;  %v1760_v40 = vpop.f32.mrf.mxu1 }
 0x2e1   : > { %v1784_v47 = vmax.f32 %v1758_v35, %v1779_v55  ;;  %v1761_v63 = vadd.f32 %v5314_v21, %v1760_v40 }
 0x2e2   : > { %v4055_v45 = vpop.f32.mrf.mxu1 }
 0x2e3   : > { %v2133_v16 = vmax.f32 %v2044_v62, %v1784_v47  ;;  %v1780_v60 = vmul.f32 0.2, %v1761_v63 }
 0x2e4   : > { %v1765_v26 = vpop.f32.mrf.mxu1 }
 0x2e5   : > { %v1785_v8 = vmax.f32 %v1761_v63, %v1780_v60  ;;  %v1766_v36 = vadd.f32 %v5470_v41, %v1765_v26 }
 0x2e6   : > { %v4058_v32 = vpop.f32.mrf.mxu1 }
 0x2e7   : > { %v2134_v3 = vmax.f32 %v2045_v2, %v1785_v8  ;;  %v1781_v25 = vmul.f32 0.2, %v1766_v36 }
 0x2e8   : > { %v1768_v61 = vpop.f32.mrf.mxu1 }
 0x2e9   : > { %v1786_v4 = vmax.f32 %v1766_v36, %v1781_v25  ;;  %v1769_v11 = vadd.f32 %v5470_v41, %v1768_v61 }
 0x2ea   : > { %v4059_v21 = vpop.f32.mrf.mxu1 }
 0x2eb   : > { %v2135_v10 = vmax.f32 %v2046_v15, %v1786_v4  ;;  %v1782_v62 = vmul.f32 0.2, %v1769_v11 }
 0x2ec   : > { %v1773_v1 = vpop.f32.mrf.mxu1 }
 0x2ed   : > { %v1787_v37 = vmax.f32 %v1769_v11, %v1782_v62  ;;  %v1774_v9 = vadd.f32 %v5470_v41, %v1773_v1 }
 0x2ee   : > { %v4062_v12 = vpop.f32.mrf.mxu1 }
 0x2ef   : > { %v2136_v13 = vmax.f32 %v2047_v51, %v1787_v37  ;;  %v1783_v19 = vmul.f32 0.2, %v1774_v9 }
 0x2f0   : > { %v1776_v27 = vpop.f32.mrf.mxu1 }
 0x2f1   : > { %v1788_v28 = vmax.f32 %v1774_v9, %v1783_v19 }
 0x2f2   : > { %v4063_v31 = vpop.f32.mrf.mxu1 }
 0x2f3   : > { %v2137_v58 = vmax.f32 %v2048_v57, %v1788_v28 }
 0x2f4   : > { %v1929_v2 = vpop.f32.mrf.mxu1 }
 0x2f5   : > { %v1930_v33 = vadd.f32 %v5470_v41, %v1929_v2 }
 0x2f6   : > { %v4094_v30 = vpop.f32.mrf.mxu1 }
 0x2f7   : > { %v1951_v38 = vmul.f32 0.2, %v1930_v33 }
 0x2f8   : > { %v1932_v42 = vpop.f32.mrf.mxu1 }
 0x2f9   : > { %v1956_v39 = vmax.f32 %v1930_v33, %v1951_v38  ;;  %v1933_v15 = vadd.f32 %v5470_v41, %v1932_v42 }
 0x2fa   : > { %v4095_v23 = vpop.f32.mrf.mxu1 }
 0x2fb   : > { %v5477_v48 = vmax.f32 %v2133_v16, %v1956_v39  ;;  %v1952_v50 = vmul.f32 0.2, %v1933_v15 }
 0x2fc   : > { %v1937_v52 = vpop.f32.mrf.mxu1 }
 0x2fd   : > { %v1957_v51 = vmax.f32 %v1933_v15, %v1952_v50  ;;  %v1938_v35 = vadd.f32 %v5470_v41, %v1937_v52 }
 0x2fe   : > { %v4098_v53 = vpop.f32.mrf.mxu1 }
 0x2ff   : > { %v5480_v18 = vmax.f32 %v2134_v3, %v1957_v51  ;;  %v1953_v34 = vmul.f32 0.2, %v1938_v35 }
 0x300   : > { %v1940_v55 = vpop.f32.mrf.mxu1 }
 0x301   : > { %v1958_v59 = vmax.f32 %v1938_v35, %v1953_v34  ;;  %v1941_v57 = vadd.f32 %v5470_v41, %v1940_v55 }
 0x302   : > { %v4099_v40 = vpop.f32.mrf.mxu1 }
 0x303   : > { %v5483_v47 = vmax.f32 %v2135_v10, %v1958_v59  ;;  %v1954_v63 = vmul.f32 0.2, %v1941_v57 }
 0x304   : > { %v1945_v45 = vpop.f32.mrf.mxu1 }
 0x305   : > { %v1959_v16 = vmax.f32 %v1941_v57, %v1954_v63  ;;  %v1946_v60 = vadd.f32 %v5470_v41, %v1945_v45 }
 0x306   : > { %v4102_v26 = vpop.f32.mrf.mxu1 }
 0x307   : > { %v5486_v8 = vmax.f32 %v2136_v13, %v1959_v16  ;;  %v1955_v36 = vmul.f32 0.2, %v1946_v60 }
 0x308   : > { %v1948_v32 = vpop.f32.mrf.mxu1 }
 0x309   : > { %v1960_v3 = vmax.f32 %v1946_v60, %v1955_v36 }
 0x30a   : > { %v4103_v25 = vpop.f32.mrf.mxu1 }
 0x30b   : > { %v5488_v61 = vmax.f32 %v2137_v58, %v1960_v3 }
 0x30c   : > { %v2101_v4 = vpop.f32.mrf.mxu1 }
 0x30d   : > { %v2102_v15 = vadd.f32 %v5470_v41, %v2101_v4 }
 0x30e   : > { %v4134_v11 = vpop.f32.mrf.mxu1 }
 0x30f   : > { %v2123_v53 = vmul.f32 0.2, %v2102_v15 }
 0x310   : > { %v2104_v21 = vpop.f32.mrf.mxu1 }
 0x311   : > { %v2105_v50 = vadd.f32 %v5470_v41, %v2104_v21  ;;  %v2128_v45 = vmax.f32 %v2102_v15, %v2123_v53  ;;  %v2535_v15 = vld [vmem:[#allocation10 + $0x190] sm:$0xff] }
 0x312   : > { %v4135_v62 = vpop.f32.mrf.mxu1 }
 0x313   : > { %v2124_v55 = vmul.f32 0.2, %v2105_v50 }
 0x314   : > { %v2109_v10 = vpop.f32.mrf.mxu1 }
 0x315   : > { %v2110_v16 = vadd.f32 %v5470_v41, %v2109_v10  ;;  %v2129_v36 = vmax.f32 %v2105_v50, %v2124_v55  ;;  %v5509_v55 = vld [vmem:[#allocation10 + $0x150] sm:$0xff] }
 0x316   : > { %v4138_v1 = vpop.f32.mrf.mxu1 }
 0x317   : > { %v2305_v1 = vmax.f32 %v5477_v48, %v2128_v45  ;;  %v2306_v10 = vmax.f32 %v5480_v18, %v2129_v36  ;;  %v2539_v48 = vld [vmem:[#allocation10 + $0x1b0] sm:$0xff]  ;;  %v2540_v18 = vld [vmem:[#allocation10 + $0x1b8] sm:$0xff] }
 0x318   : > { %v2112_v37 = vpop.f32.mrf.mxu1  ;;  %v3775_v45 = vcombine.high %v2535_v15, %v2539_v48 }
 0x319   : > { %v2113_v60 = vadd.f32 %v5470_v41, %v2112_v37 }
 0x31a   : > { %v4139_v9 = vpop.f32.mrf.mxu1 }
 0x31b   : > { %v2125_v9 = vmul.f32 0.2, %v2110_v16 }
 0x31c   : > { %v2117_v12 = vpop.f32.mrf.mxu1 }
 0x31e   : > { %v4142_v19 = vpop.f32.mrf.mxu1 }
 0x31f   : > { %v2126_v19 = vmul.f32 0.2, %v2113_v60 }
 0x320   : > { %v2120_v27 = vpop.f32.mrf.mxu1 }
 0x321   : > { %v2131_v50 = vmax.f32 %v2113_v60, %v2126_v19 }
 0x322   : > { %v4143_v28 = vpop.f32.mrf.mxu1 }
 0x324   : > { %v2273_v13 = vpop.f32.mrf.mxu1 }
 0x325   : > { %v2274_v52 = vadd.f32 %v5470_v41, %v2273_v13  ;;  %v5503_v13 = vadd.f32 %v5470_v41, %v2117_v12 }
 0x326   : > { %v4174_v31 = vpop.f32.mrf.mxu1 }
 0x327   : > { %v2295_v59 = vmul.f32 0.2, %v2274_v52 }
 0x328   : > { %v2276_v2 = vpop.f32.mrf.mxu1 }
 0x329   : > { %v2277_v35 = vadd.f32 %v5470_v41, %v2276_v2  ;;  %v2300_v3 = vmax.f32 %v2274_v52, %v2295_v59  ;;  %v5511_v59 = vld [vmem:[#allocation10 + $0x170] sm:$0xff] }
 0x32a   : > { %v4175_v33 = vpop.f32.mrf.mxu1  ;;  %v3766_v17 = vcombine.low %v5509_v55, %v5511_v59 }
 0x32b   : > { %v2296_v40 = vmul.f32 0.2, %v2277_v35  ;;  %v2388_v31 = vmax.f32 %v2305_v1, %v2300_v3  ;;  %v3767_v1 = vcombine.high %v5509_v55, %v5511_v59 }
 0x32c   : > { %v2281_v30 = vpop.f32.mrf.mxu1 }
 0x32d   : > { %v2282_v25 = vadd.f32 %v5470_v41, %v2281_v30  ;;  %v2301_v11 = vmax.f32 %v2277_v35, %v2296_v40 }
 0x32e   : > { %v4178_v38 = vpop.f32.mrf.mxu1 }
 0x32f   : > { %v2297_v2 = vmul.f32 0.2, %v2282_v25  ;;  %v2389_v30 = vmax.f32 %v2306_v10, %v2301_v11  ;;  %v3774_v11 = vcombine.low %v2535_v15, %v2539_v48 }
 0x330   : > { %v2284_v58 = vpop.f32.mrf.mxu1 }
 0x331   : > { %v2285_v21 = vadd.f32 %v5470_v41, %v2284_v58  ;;  %v2302_v40 = vmax.f32 %v2282_v25, %v2297_v2  ;;  %v2308_v25 = vmax.f32 %v5486_v8, %v2131_v50  ;;  %v2511_v50 = vld [vmem:[#allocation10 + $0xd0] sm:$0xff] }
 0x332   : > { %v4179_v42 = vpop.f32.mrf.mxu1 }
 0x333   : > { %v2298_v38 = vmul.f32 0.2, %v2285_v21 }
 0x334   : > { %v2289_v39 = vpop.f32.mrf.mxu1 }
 0x335   : > { %v5507_v35 = vadd.f32 %v5470_v41, %v2289_v39  ;;  %v2528_v39 = vld [vmem:[#allocation10 + $0x158] sm:$0xff] }
 0x336   : > { %v4182_v23 = vpop.f32.mrf.mxu1 }
 0x337   : > { %v2130_v23 = vmax.f32 %v2110_v16, %v2125_v9  ;;  %v2303_v16 = vmax.f32 %v2285_v21, %v2298_v38  ;;  %v2299_v9 = vmul.f32 0.2, %v5507_v35 }
 0x338   : > { %v2292_v51 = vpop.f32.mrf.mxu1 }
 0x339   : > { %v2536_v51 = vld [vmem:[#allocation10 + $0x198] sm:$0xff]  ;;  %v2307_v3 = vmax.f32 %v5483_v47, %v2130_v23  ;;  %v2304_v5 = vmax.f32 %v5507_v35, %v2299_v9 }
 0x33a   : > { %v4183_v34 = vpop.f32.mrf.mxu1  ;;  %v3777_v36 = vcombine.high %v2536_v51, %v2540_v18  ;;  %v2516_v35 = vld [vmem:[#allocation10 + $0xf8] sm:$0xff] }
 0x33b   : > { %v2390_v10 = vmax.f32 %v2307_v3, %v2302_v40  ;;  %v2507_v40 = vld [vmem:[#allocation10 + $0xb0] sm:$0xff] }
 0x33c   : > { %v2445_v57 = vpop.f32.mrf.mxu1  ;;  %v2495_v3 = vld [vmem:[#allocation10 + $0x50] sm:$0xff] }
 0x33d   : > { %v2446_v63 = vadd.f32 %v5470_v41, %v2445_v57  ;;  %v2127_v57 = vmul.f32 0.2, %v5503_v13 }
 0x33e   : > { %v4214_v26 = vpop.f32.mrf.mxu1 }
 0x33f   : > { %v2467_v32 = vmul.f32 0.2, %v2446_v63 }
 0x340   : > { %v2448_v4 = vpop.f32.mrf.mxu1 }
 0x341   : > { %v2449_v62 = vadd.f32 %v5470_v41, %v2448_v4  ;;  %v2472_v37 = vmax.f32 %v2446_v63, %v2467_v32  ;;  %v2532_v32 = vld [vmem:[#allocation10 + $0x178] sm:$0xff] }
 0x342   : > { %v4215_v27 = vpop.f32.mrf.mxu1  ;;  %v3769_v8 = vcombine.high %v2528_v39, %v2532_v32 }
 0x343   : > { %v2468_v28 = vmul.f32 0.2, %v2449_v62  ;;  %v2477_v12 = vmax.f32 %v2388_v31, %v2472_v37  ;;  %v2132_v27 = vmax.f32 %v5503_v13, %v2127_v57  ;;  %v2519_v37 = vld [vmem:[#allocation10 + $0x110] sm:$0xff]  ;;  %v2520_v13 = vld [vmem:[#allocation10 + $0x118] sm:$0xff] }
 0x344   : > { %v2453_v33 = vpop.f32.mrf.mxu1  ;;  %v2503_v57 = vld [vmem:[#allocation10 + $0x90] sm:$0xff] }
 0x345   : > { %v2473_v58 = vmax.f32 %v2449_v62, %v2468_v28  ;;  %v2454_v42 = vadd.f32 %v5470_v41, %v2453_v33  ;;  %v3776_v62 = vcombine.low %v2536_v51, %v2540_v18  ;;  %v2391_v28 = vmax.f32 %v2308_v25, %v2303_v16  ;;  %v2523_v33 = vld [vmem:[#allocation10 + $0x130] sm:$0xff]  ;;  %v2512_v18 = vld [vmem:[#allocation10 + $0xd8] sm:$0xff] }
 0x346   : > { %v4218_v52 = vpop.f32.mrf.mxu1  ;;  %v2309_v15 = vmax.f32 %v5488_v61, %v2132_v27  ;;  %v2515_v51 = vld [vmem:[#allocation10 + $0xf0] sm:$0xff]  ;;  %v3753_v59 = vcombine.high %v2512_v18, %v2516_v35 }
 0x347   : > { %v2478_v53 = vmax.f32 %v2389_v30, %v2473_v58  ;;  %v2469_v34 = vmul.f32 0.2, %v2454_v42  ;;  %v2524_v30 = vld [vmem:[#allocation10 + $0x138] sm:$0xff]  ;;  %v3759_v58 = vcombine.high %v2519_v37, %v2523_v33  ;;  %v3751_v55 = vcombine.high %v2511_v50, %v2515_v51  ;;  %v2491_v27 = vld [vmem:[#allocation10 + $0x30] sm:$0xff] }
 0x348   : > { %v2456_v63 = vpop.f32.mrf.mxu1  ;;  %v3750_v16 = vcombine.low %v2511_v50, %v2515_v51 }
 0x349   : > { %v5514_v60 = vpack.c.bf16 %v2478_v53, %v2477_v12  ;;  %v2457_v26 = vadd.f32 %v5470_v41, %v2456_v63  ;;  %v2474_v21 = vmax.f32 %v2454_v42, %v2469_v34  ;;  %v3761_v42 = vcombine.high %v2520_v13, %v2524_v30  ;;  %v2504_v63 = vld [vmem:[#allocation10 + $0x98] sm:$0xff] }
 0x34a   : > { %v4219_v4 = vpop.f32.mrf.mxu1  ;;  %v2392_v12 = vmax.f32 %v2309_v15, %v2304_v5  ;;  %v3758_v53 = vcombine.low %v2519_v37, %v2523_v33  ;;  %v3760_v34 = vcombine.low %v2520_v13, %v2524_v30  ;;  %v5557_v13 = vld [vmem:[%s5852_s6] sm:$0xff]  ;;  %v3240_v15 = vadd.s32 16, %v4918_v43 }
 0x34b   : > { %v2470_v19 = vmul.f32 0.2, %v2457_v26  ;;  %2944 = vmatmul.mubr.bf16.vlgmr.msra.gmra.mxu0 %v5514_v60  ;;  %3005 = vmatmul.mubr.bf16.vlgmr.msra.gmra.mxu1 %v5514_v60  ;;  %v2479_v20 = vmax.f32 %v2390_v10, %v2474_v21  ;;  %v2499_v4 = vld [vmem:[#allocation10 + $0x70] sm:$0xff]  ;;  %v2488_v10 = vld [vmem:[#allocation10 + $0x18] sm:$0xff]  ;;  %v5568_v30 = vrot.slane %v5557_v13, %v454_v56 }
 0x34c   : > { %3034 = vmatpush1.bf16.msra.mxu0 %v3782_v46  ;;  %3095 = vmatpush1.bf16.msra.mxu1 %v3784_v7  ;;  %v2461_v47 = vpop.f32.mrf.mxu1  ;;  %v3735_v9 = vcombine.high %v2495_v3, %v2499_v4 }
 0x34d   : > { %v2475_v31 = vmax.f32 %v2457_v26, %v2470_v19  ;;  %v2462_v2 = vadd.f32 %v5470_v41, %v2461_v47  ;;  %3035 = vmatprep.subr.bf16.mxu0 %v3775_v45  ;;  %3096 = vmatprep.subr.bf16.mxu1 %v3777_v36  ;;  %v3768_v41 = vcombine.low %v2528_v39, %v2532_v32  ;;  %v2508_v45 = vld [vmem:[#allocation10 + $0xb8] sm:$0xff]  ;;  %v2487_v19 = vld [vmem:[#allocation10 + $0x10] sm:$0xff] }
 0x34e   : > { %v4222_v38 = vpop.f32.mrf.mxu1  ;;  %2953 = vmatprep.mubr.bf16.mxu0 %v4615_v0  ;;  %3014 = vmatprep.mubr.bf16.mxu1 %v4615_v0  ;;  %v3752_v26 = vcombine.low %v2512_v18, %v2516_v35  ;;  %v3743_v39 = vcombine.high %v2503_v57, %v2507_v40  ;;  %v3745_v32 = vcombine.high %v2504_v63, %v2508_v45  ;;  %v2492_v47 = vld [vmem:[#allocation10 + $0x38] sm:$0xff] }
 0x34f   : > { %v2480_v29 = vmax.f32 %v2391_v28, %v2475_v31  ;;  %v2471_v46 = vmul.f32 0.2, %v2462_v2  ;;  %v3744_v25 = vcombine.low %v2504_v63, %v2508_v45  ;;  %v3727_v28 = vcombine.high %v2487_v19, %v2491_v27 }
 0x350   : > { %3036 = vmatpush1.bf16.msra.mxu0 %v3774_v11  ;;  %3097 = vmatpush1.bf16.msra.mxu1 %v3776_v62  ;;  %v2464_v7 = vpop.f32.mrf.mxu1  ;;  %v2496_v11 = vld [vmem:[#allocation10 + $0x58] sm:$0xff]  ;;  %v3729_v31 = vcombine.high %v2488_v10, %v2492_v47  ;;  %v3728_v33 = vcombine.low %v2488_v10, %v2492_v47  ;;  %v5578_v38 = vrot.slane %v5557_v13, %v458_v14  ;;  %v3239_v14 = vadd.s32 8, %v4918_v43 }
 0x351   : > { %v5538_v48 = vpack.c.bf16 %v2480_v29, %v2479_v20  ;;  %v2476_v23 = vmax.f32 %v2462_v2, %v2471_v46  ;;  %3037 = vmatprep.subr.bf16.mxu0 %v3767_v1  ;;  %3098 = vmatprep.subr.bf16.mxu1 %v3769_v8  ;;  %v2500_v62 = vld [vmem:[#allocation10 + $0x78] sm:$0xff]  ;;  %v3742_v1 = vcombine.low %v2503_v57, %v2507_v40  ;;  %v3243_v20 = vstv %s3236_s20 }
 0x352   : > { %v4223_v52 = vpop.f32.mrf.mxu1  ;;  %v3737_v21 = vcombine.high %v2496_v11, %v2500_v62  ;;  %v3734_v8 = vcombine.low %v2495_v3, %v2499_v4  ;;  %v3736_v37 = vcombine.low %v2496_v11, %v2500_v62  ;;  %v3726_v2 = vcombine.low %v2487_v19, %v2491_v27 }
 0x353   : > { %2954 = vmatmul.mubr.bf16.gmra.mxu0 %v5538_v48  ;;  %3015 = vmatmul.mubr.bf16.gmra.mxu1 %v5538_v48  ;;  %v2481_v61 = vmax.f32 %v2392_v12, %v2476_v23  ;;  %v5593_v57 = vadd.s32 %v3243_v20, %v3239_v14  ;;  %v3242_v40 = vadd.s32 32, %v4918_v43  ;;  %v5618_v10 = vrot.slane %v5557_v13, %v462_v49 }
 0x354   : > { %3038 = vmatpush1.bf16.msra.mxu0 %v3766_v17  ;;  %3099 = vmatpush1.bf16.msra.mxu1 %v3768_v41  ;;  %v5623_v47 = vrot.slane %v5557_v13, %v470_v6 }
 0x355   : > { %3039 = vmatprep.subr.bf16.mxu0 %v3759_v58  ;;  %3100 = vmatprep.subr.bf16.mxu1 %v3761_v42  ;;  %v2484_v36 = vpack.c.bf16 %v2481_v61, %v2481_v61  ;;  %v5585_v42 = vadd.s32 %v3243_v20, %v4918_v43  ;;  %vm3250_vm4 = vcmp.lt.s32.totalorder %v5593_v57, 40  ;;  %v5613_v27 = vadd.s32 %v3243_v20, %v3242_v40 }
 0x356   : > { %2963 = vmatprep.mubr.bf16.mxu0 %v4615_v0  ;;  %3024 = vmatprep.mubr.bf16.mxu1 %v4615_v0 }
 0x357   : > { %vm3249_vm3 = vcmp.lt.s32.totalorder %v5585_v42, 40  ;;  %vm3253_vm7 = vcmp.lt.s32.totalorder %v5613_v27, 40 }
 0x358   : > { %3040 = vmatpush1.bf16.msra.mxu0 %v3758_v53  ;;  %3101 = vmatpush1.bf16.msra.mxu1 %v3760_v34 }
 0x359   : > { %3041 = vmatprep.subr.bf16.mxu0 %v3751_v55  ;;  %3102 = vmatprep.subr.bf16.mxu1 %v3753_v59 }
 0x35b   : > { %2964 = vmatmul.mubr.bf16.gmra.mxu0 %v2484_v36  ;;  %3025 = vmatmul.mubr.bf16.gmra.mxu1 %v2484_v36 }
 0x35c   : > { %3042 = vmatpush1.bf16.msra.mxu0 %v3750_v16  ;;  %3103 = vmatpush1.bf16.msra.mxu1 %v3752_v26  ;;  %v5596_v16 = vadd.s32 %v3243_v20, %v3240_v15 }
 0x35d   : > { %3043 = vmatprep.subr.bf16.mxu0 %v3743_v39  ;;  %3104 = vmatprep.subr.bf16.mxu1 %v3745_v32 }
 0x35e   : > { %3065 = vmatprep.mubr.bf16.mxu0 %v4615_v0  ;;  %3126 = vmatprep.mubr.bf16.mxu1 %v4615_v0  ;;  %vm3251_vm5 = vcmp.lt.s32.totalorder %v5596_v16, 40 }
 0x360   : > { %3044 = vmatpush1.bf16.msra.mxu0 %v3742_v1  ;;  %3105 = vmatpush1.bf16.msra.mxu1 %v3744_v25 }
 0x361   : > { %3045 = vmatprep.subr.bf16.mxu0 %v3735_v9  ;;  %3106 = vmatprep.subr.bf16.mxu1 %v3737_v21 }
 0x364   : > { %3046 = vmatpush1.bf16.msra.mxu0 %v3734_v8  ;;  %3107 = vmatpush1.bf16.msra.mxu1 %v3736_v37 }
 0x365   : > { %3047 = vmatprep.subr.bf16.mxu0 %v3727_v28  ;;  %3108 = vmatprep.subr.bf16.mxu1 %v3729_v31 }
 0x368   : > { %3048 = vmatpush1.bf16.msra.mxu0 %v3726_v2  ;;  %3109 = vmatpush1.bf16.msra.mxu1 %v3728_v33 }
 0x36b   : > { %3066 = vmatmul.mubr.bf16.vlgmr.msra.gmra.mxu0 %v5514_v60  ;;  %3127 = vmatmul.mubr.bf16.vlgmr.msra.gmra.mxu1 %v5514_v60  ;;  %v5562_v60 = vrot.slane %v5557_v13, %v446_v44 }
 0x36c   : > { %3075 = vmatprep.mubr.bf16.mxu0 %v4615_v0  ;;  %3136 = vmatprep.mubr.bf16.mxu1 %v4615_v0 }
 0x373   : > { %3076 = vmatmul.mubr.bf16.gmra.mxu0 %v5538_v48  ;;  %3137 = vmatmul.mubr.bf16.gmra.mxu1 %v5538_v48  ;;  %v3241_v48 = vadd.s32 24, %v4918_v43 }
 0x374   : > { %3085 = vmatprep.mubr.bf16.mxu0 %v4615_v0  ;;  %3146 = vmatprep.mubr.bf16.mxu1 %v4615_v0  ;;  %v5573_v0 = vrot.slane %v5557_v13, %v450_v54 }
 0x375   : > { %v5598_v39 = vadd.s32 %v3243_v20, %v3241_v48 }
 0x377   : > { %vm3252_vm6 = vcmp.lt.s32.totalorder %v5598_v39, 40 }
 0x37b   : > { %3086 = vmatmul.mubr.bf16.gmra.mxu0 %v2484_v36  ;;  %3147 = vmatmul.mubr.bf16.gmra.mxu1 %v2484_v36 }
 0x40b   : > { %v2945_v17 = vpop.f32.mrf.mxu0  ;;  %v3006_v5 = vpop.f32.mrf.mxu1 }
 0x40c   : > { %v2946_v44 = vadd.f32 %v2945_v17, %v5562_v60  ;;  %v3007_v29 = vadd.f32 %v3006_v5, %v5568_v30 }
 0x40d   : > { %v2947_v46 = vpop.f32.mrf.mxu0  ;;  %v3008_v56 = vpop.f32.mrf.mxu1 }
 0x40e   : > { %v2948_v7 = vadd.f32 %v2947_v46, %v5573_v0  ;;  %v3009_v41 = vadd.f32 %v3008_v56, %v5578_v38  ;;  %v3155_v23 = vmul.f32 0.2, %v2946_v44  ;;  %v3157_v50 = vmul.f32 0.2, %v3007_v29 }
 0x40f   : > { %v2949_v54 = vpop.f32.mrf.mxu0  ;;  %v3010_v58 = vpop.f32.mrf.mxu1 }
 0x410   : > { %v2950_v52 = vadd.f32 %v2949_v54, %v5562_v60  ;;  %v3011_v51 = vadd.f32 %v3010_v58, %v5568_v30  ;;  %v3156_v12 = vmul.f32 0.2, %v2948_v7  ;;  %v3158_v53 = vmul.f32 0.2, %v3009_v41 }
 0x411   : > { %v2951_v18 = vpop.f32.mrf.mxu0  ;;  %v3012_v35 = vpop.f32.mrf.mxu1  ;;  %v3195_v63 = vmax.f32 %v2946_v44, %v3155_v23  ;;  %v3197_v45 = vmax.f32 %v3007_v29, %v3157_v50 }
 0x412   : > { %v3163_v34 = vmul.f32 0.2, %v2950_v52  ;;  %v3165_v61 = vmul.f32 0.2, %v3011_v51  ;;  %v3196_v32 = vmax.f32 %v2948_v7, %v3156_v12  ;;  %v3198_v3 = vmax.f32 %v3009_v41, %v3158_v53 }
 0x413   : > { %v2955_v55 = vpop.f32.mrf.mxu0  ;;  %v3016_v59 = vpop.f32.mrf.mxu1  ;;  %v5601_v4 = vadd.f32 %v2951_v18, %v5573_v0  ;;  %v5604_v11 = vadd.f32 %v3012_v35, %v5578_v38  ;;  %v5627_v8 = vsel %vm3249_vm3, %v3195_v63, -inf  ;;  %v5631_v37 = vsel %vm3249_vm3, %v3197_v45, -inf }
 0x414   : > { %v3203_v62 = vmax.f32 %v2950_v52, %v3163_v34  ;;  %v3205_v1 = vmax.f32 %v3011_v51, %v3165_v61  ;;  %v5607_v25 = vadd.f32 %v2955_v55, %v5562_v60  ;;  %v5610_v9 = vadd.f32 %v3016_v59, %v5568_v30 }
 0x415   : > { %v2957_v26 = vpop.f32.mrf.mxu0  ;;  %v3018_v36 = vpop.f32.mrf.mxu1  ;;  %v5638_v6 = vsel %vm3249_vm3, %v3196_v32, -inf  ;;  %v5642_v33 = vsel %vm3249_vm3, %v3198_v3, -inf  ;;  %v3164_v17 = vmul.f32 0.2, %v5601_v4  ;;  %v3166_v5 = vmul.f32 0.2, %v5604_v11 }
 0x416   : > { %v2958_v28 = vadd.f32 %v2957_v26, %v5573_v0  ;;  %v3019_v49 = vadd.f32 %v3018_v36, %v5578_v38  ;;  %v3272_v44 = vsel %vm3250_vm4, %v3203_v62, -inf  ;;  %v3274_v20 = vsel %vm3250_vm4, %v3205_v1, -inf }
 0x417   : > { %v2959_v21 = vpop.f32.mrf.mxu0  ;;  %v3020_v19 = vpop.f32.mrf.mxu1  ;;  %v3171_v29 = vmul.f32 0.2, %v5607_v25  ;;  %v3173_v46 = vmul.f32 0.2, %v5610_v9  ;;  %v3204_v18 = vmax.f32 %v5601_v4, %v3164_v17  ;;  %v3206_v35 = vmax.f32 %v5604_v11, %v3166_v5 }
 0x418   : > { %v2960_v41 = vadd.f32 %v2959_v21, %v5562_v60  ;;  %v3021_v54 = vadd.f32 %v3020_v19, %v5568_v30  ;;  %v3172_v15 = vmul.f32 0.2, %v2958_v28  ;;  %v3174_v48 = vmul.f32 0.2, %v3019_v49 }
 0x419   : > { %v2961_v31 = vpop.f32.mrf.mxu0  ;;  %v3022_v2 = vpop.f32.mrf.mxu1  ;;  %v3211_v34 = vmax.f32 %v5607_v25, %v3171_v29  ;;  %v3213_v63 = vmax.f32 %v5610_v9, %v3173_v46  ;;  %v3304_v36 = vmax.f32 %v5627_v8, %v3272_v44  ;;  %v3324_v1 = vmax.f32 %v5631_v37, %v3274_v20 }
 0x41a   : > { %v2962_v58 = vadd.f32 %v2961_v31, %v5573_v0  ;;  %v3023_v14 = vadd.f32 %v3022_v2, %v5578_v38  ;;  %v3179_v12 = vmul.f32 0.2, %v2960_v41  ;;  %v3181_v53 = vmul.f32 0.2, %v3021_v54 }
 0x41b   : > { %v2965_v56 = vpop.f32.mrf.mxu0  ;;  %v3026_v7 = vpop.f32.mrf.mxu1  ;;  %v3212_v32 = vmax.f32 %v2958_v28, %v3172_v15  ;;  %v3214_v3 = vmax.f32 %v3019_v49, %v3174_v48  ;;  %v3273_v19 = vsel %vm3250_vm4, %v3204_v18, -inf  ;;  %v3275_v9 = vsel %vm3250_vm4, %v3206_v35, -inf }
 0x41c   : > { %v2966_v23 = vadd.f32 %v2965_v56, %v5562_v60  ;;  %v3027_v50 = vadd.f32 %v3026_v7, %v5568_v30  ;;  %v3180_v61 = vmul.f32 0.2, %v2962_v58  ;;  %v3182_v55 = vmul.f32 0.2, %v3023_v14 }
 0x41d   : > { %v2967_v52 = vpop.f32.mrf.mxu0  ;;  %v3028_v51 = vpop.f32.mrf.mxu1  ;;  %v3219_v25 = vmax.f32 %v2960_v41, %v3179_v12  ;;  %v3221_v21 = vmax.f32 %v3021_v54, %v3181_v53  ;;  %v3280_v8 = vsel %vm3251_vm5, %v3211_v34, -inf  ;;  %v3282_v28 = vsel %vm3251_vm5, %v3213_v63, -inf }
 0x41e   : > { %v2968_v59 = vadd.f32 %v2967_v52, %v5573_v0  ;;  %v3187_v45 = vmul.f32 0.2, %v2966_v23  ;;  %v3189_v30 = vmul.f32 0.2, %v3027_v50  ;;  %v3029_v26 = vadd.f32 %v3028_v51, %v5578_v38 }
 0x41f   : > { %v2969_v40 = vpop.f32.mrf.mxu0  ;;  %v3030_v60 = vpop.f32.mrf.mxu1  ;;  %v3220_v31 = vmax.f32 %v2962_v58, %v3180_v61  ;;  %v3222_v38 = vmax.f32 %v3023_v14, %v3182_v55  ;;  %v3281_v37 = vsel %vm3251_vm5, %v3212_v32, -inf  ;;  %v3283_v17 = vsel %vm3251_vm5, %v3214_v3, -inf }
 0x420   : > { %v3188_v4 = vmul.f32 0.2, %v2968_v59  ;;  %v3190_v0 = vmul.f32 0.2, %v3029_v26  ;;  %v3227_v49 = vmax.f32 %v2966_v23, %v3187_v45  ;;  %v3229_v2 = vmax.f32 %v3027_v50, %v3189_v30 }
 0x421   : > { %v2970_v11 = vpop.f32.mrf.mxu0  ;;  %v3031_v62 = vpop.f32.mrf.mxu1  ;;  %v3314_v20 = vmax.f32 %v5638_v6, %v3273_v19  ;;  %v3334_v29 = vmax.f32 %v5642_v33, %v3275_v9  ;;  %v3288_v46 = vsel %vm3252_vm6, %v3219_v25, -inf  ;;  %v3290_v56 = vsel %vm3252_vm6, %v3221_v21, -inf }
 0x422   : > { %v3228_v5 = vmax.f32 %v2968_v59, %v3188_v4  ;;  %v3230_v44 = vmax.f32 %v3029_v26, %v3190_v0  ;;  %v3305_v7 = vmax.f32 %v3304_v36, %v3280_v8  ;;  %v3325_v41 = vmax.f32 %v3324_v1, %v3282_v28 }
 0x423   : > { %v3289_v54 = vsel %vm3252_vm6, %v3220_v31, -inf  ;;  %v3291_v58 = vsel %vm3252_vm6, %v3222_v38, -inf  ;;  %v3315_v14 = vmax.f32 %v3314_v20, %v3281_v37  ;;  %v3335_v15 = vmax.f32 %v3334_v29, %v3283_v17 }
 0x424   : > { %v3296_v6 = vsel %vm3253_vm7, %v3227_v49, -inf  ;;  %v3298_v33 = vsel %vm3253_vm7, %v3229_v2, -inf  ;;  %v3306_v48 = vmax.f32 %v3305_v7, %v3288_v46  ;;  %v3326_v23 = vmax.f32 %v3325_v41, %v3290_v56 }
 0x425   : > { %v3297_v50 = vsel %vm3253_vm7, %v3228_v5, -inf  ;;  %v3299_v52 = vsel %vm3253_vm7, %v3230_v44, -inf  ;;  %v3316_v51 = vmax.f32 %v3315_v14, %v3289_v54  ;;  %v3336_v18 = vmax.f32 %v3335_v15, %v3291_v58 }
 0x426   : > { %v3307_v35 = vmax.f32 %v3306_v48, %v3296_v6  ;;  %v3327_v12 = vmax.f32 %v3326_v23, %v3298_v33  ;;  %v5701_v61 = vrot.slane %v5557_v13, %v466_v24  ;;  %v5706_v55 = vrot.slane %v5557_v13, %v474_v22 }
 0x427   : > { %v3317_v59 = vmax.f32 %v3316_v51, %v3297_v50  ;;  %v3337_v40 = vmax.f32 %v3336_v18, %v3299_v52  ;;  %v4619_v18 = vmov 1966171168  }
 0x428   : > { %v3308_v26 = vrot.slane %v3307_v35, 4  ;;  %v3328_v36 = vrot.slane %v3327_v12, 4 }
 0x429   : > { %v3318_v11 = vrot.slane %v3317_v59, 4  ;;  %v3338_v62 = vrot.slane %v3337_v40, 4 }
 0x42a   : > { %v5712_v19 = vmax.f32 %v3307_v35, %v3308_v26  ;;  %v5714_v9 = vmax.f32 %v3327_v12, %v3328_v36  ;;  %v5729_v35 = vunpack.c.l.s4 %v4619_v18 }
 0x42b   : > { %v3067_v53 = vpop.f32.mrf.mxu0  ;;  %v3128_v34 = vpop.f32.mrf.mxu1  ;;  %v5718_v49 = vmax.f32 %v3317_v59, %v3318_v11  ;;  %v5720_v2 = vmax.f32 %v3337_v40, %v3338_v62 }
 0x42c   : > { %v3068_v60 = vadd.f32 %v3067_v53, %v5618_v10  ;;  %v3129_v63 = vadd.f32 %v3128_v34, %v5623_v47  ;;  %v3310_v50 = vrot.slane %v5712_v19, 2  ;;  %v3330_v52 = vrot.slane %v5714_v9, 2 }
 0x42d   : > { %v3069_v45 = vpop.f32.mrf.mxu0  ;;  %v3130_v30 = vpop.f32.mrf.mxu1  ;;  %v3320_v51 = vrot.slane %v5718_v49, 2  ;;  %v3340_v12 = vrot.slane %v5720_v2, 2 }
 0x42e   : > { %v3070_v32 = vadd.f32 %v3069_v45, %v5701_v61  ;;  %v3131_v24 = vadd.f32 %v3130_v30, %v5706_v55  ;;  %v3159_v22 = vmul.f32 0.2, %v3068_v60  ;;  %v3161_v13 = vmul.f32 0.2, %v3129_v63 }
 0x42f   : > { %v3071_v3 = vpop.f32.mrf.mxu0  ;;  %v3132_v4 = vpop.f32.mrf.mxu1  ;;  %v3311_v39 = vmax.f32 %v5712_v19, %v3310_v50 }
 0x430   : > { %v3160_v21 = vmul.f32 0.2, %v3070_v32  ;;  %v3162_v0 = vmul.f32 0.2, %v3131_v24  ;;  %v3072_v31 = vadd.f32 %v3071_v3, %v5618_v10  ;;  %v3133_v38 = vadd.f32 %v3132_v4, %v5623_v47 }
 0x431   : > { %v3073_v1 = vpop.f32.mrf.mxu0  ;;  %v3134_v25 = vpop.f32.mrf.mxu1  ;;  %v3199_v5 = vmax.f32 %v3068_v60, %v3159_v22  ;;  %v3201_v44 = vmax.f32 %v3129_v63, %v3161_v13  ;;  %v3312_v50 = vrot.slane %v3311_v39, 1 }
 0x432   : > { %v3074_v37 = vadd.f32 %v3073_v1, %v5701_v61  ;;  %v3135_v17 = vadd.f32 %v3134_v25, %v5706_v55  ;;  %v3167_v20 = vmul.f32 0.2, %v3072_v31  ;;  %v3169_v29 = vmul.f32 0.2, %v3133_v38 }
 0x433   : > { %v3077_v8 = vpop.f32.mrf.mxu0  ;;  %v3138_v28 = vpop.f32.mrf.mxu1  ;;  %v3200_v7 = vmax.f32 %v3070_v32, %v3160_v21  ;;  %v3202_v41 = vmax.f32 %v3131_v24, %v3162_v0  ;;  %v3268_v63 = vsel %vm3249_vm3, %v3199_v5, -inf  ;;  %v3270_v45 = vsel %vm3249_vm3, %v3201_v44, -inf }
 0x434   : > { %v3168_v54 = vmul.f32 0.2, %v3074_v37  ;;  %v3170_v58 = vmul.f32 0.2, %v3135_v17  ;;  %v3207_v14 = vmax.f32 %v3072_v31, %v3167_v20  ;;  %v3209_v15 = vmax.f32 %v3133_v38, %v3169_v29 }
 0x435   : > { %v3079_v46 = vpop.f32.mrf.mxu0  ;;  %v3140_v56 = vpop.f32.mrf.mxu1  ;;  %v3078_v6 = vadd.f32 %v3077_v8, %v5618_v10  ;;  %v3139_v33 = vadd.f32 %v3138_v28, %v5623_v47  ;;  %v3269_v36 = vsel %vm3249_vm3, %v3200_v7, -inf  ;;  %v5742_v32 = vsel %vm3249_vm3, %v3202_v41, -inf }
 0x436   : > { %v3208_v53 = vmax.f32 %v3074_v37, %v3168_v54  ;;  %v3276_v30 = vsel %vm3250_vm4, %v3207_v14, -inf  ;;  %v3210_v26 = vmax.f32 %v3135_v17, %v3170_v58  ;;  %v3278_v24 = vsel %vm3250_vm4, %v3209_v15, -inf }
 0x437   : > { %v3081_v48 = vpop.f32.mrf.mxu0  ;;  %v3142_v23 = vpop.f32.mrf.mxu1  ;;  %v3175_v34 = vmul.f32 0.2, %v3078_v6  ;;  %v3177_v59 = vmul.f32 0.2, %v3139_v33  ;;  %v3080_v22 = vadd.f32 %v3079_v46, %v5701_v61  ;;  %v3141_v13 = vadd.f32 %v3140_v56, %v5706_v55 }
 0x438   : > { %v3082_v1 = vadd.f32 %v3081_v48, %v5618_v10  ;;  %v3344_v25 = vmax.f32 %v3268_v63, %v3276_v30  ;;  %v3277_v21 = vsel %vm3250_vm4, %v3208_v53, -inf  ;;  %v3143_v42 = vadd.f32 %v3142_v23, %v5623_v47 }
 0x439   : > { %v3083_v40 = vpop.f32.mrf.mxu0  ;;  %v3144_v60 = vpop.f32.mrf.mxu1  ;;  %v3215_v3 = vmax.f32 %v3078_v6, %v3175_v34  ;;  %v3217_v62 = vmax.f32 %v3139_v33, %v3177_v59  ;;  %v3279_v8 = vsel %vm3250_vm4, %v3210_v26, -inf  ;;  %v3176_v37 = vmul.f32 0.2, %v3080_v22 }
 0x43a   : > { %v3084_v0 = vadd.f32 %v3083_v40, %v5701_v61  ;;  %v3178_v17 = vmul.f32 0.2, %v3141_v13  ;;  %v3183_v5 = vmul.f32 0.2, %v3082_v1  ;;  %v3185_v44 = vmul.f32 0.2, %v3143_v42 }
 0x43b   : > { %v3087_v4 = vpop.f32.mrf.mxu0  ;;  %v3148_v11 = vpop.f32.mrf.mxu1  ;;  %v3284_v28 = vsel %vm3251_vm5, %v3215_v3, -inf  ;;  %v3145_v29 = vadd.f32 %v3144_v60, %v5706_v55  ;;  %v3286_v7 = vsel %vm3251_vm5, %v3217_v62, -inf  ;;  %v3216_v41 = vmax.f32 %v3080_v22, %v3176_v37 }
 0x43c   : > { %v3184_v20 = vmul.f32 0.2, %v3084_v0  ;;  %v3088_v54 = vadd.f32 %v3087_v4, %v5618_v10  ;;  %v3149_v57 = vadd.f32 %v3148_v11, %v5623_v47  ;;  %v3218_v58 = vmax.f32 %v3141_v13, %v3178_v17 }
 0x43d   : > { %v3089_v31 = vpop.f32.mrf.mxu0  ;;  %v3150_v38 = vpop.f32.mrf.mxu1  ;;  %v3223_v14 = vmax.f32 %v3082_v1, %v3183_v5  ;;  %v3225_v15 = vmax.f32 %v3143_v42, %v3185_v44  ;;  %v3186_v6 = vmul.f32 0.2, %v3145_v29  ;;  %v3364_v23 = vmax.f32 %v3270_v45, %v3278_v24 }
 0x43e   : > { %v3354_v18 = vmax.f32 %v3269_v36, %v3277_v21  ;;  %v3191_v53 = vmul.f32 0.2, %v3088_v54  ;;  %v3193_v34 = vmul.f32 0.2, %v3149_v57  ;;  %v3285_v59 = vsel %vm3251_vm5, %v3216_v41, -inf }
 0x43f   : > { %v3091_v46 = vpop.f32.mrf.mxu0  ;;  %v3152_v56 = vpop.f32.mrf.mxu1  ;;  %v3292_v40 = vsel %vm3252_vm6, %v3223_v14, -inf  ;;  %v3294_v10 = vsel %vm3252_vm6, %v3225_v15, -inf  ;;  %v3224_v47 = vmax.f32 %v3084_v0, %v3184_v20  ;;  %v3374_v60 = vmax.f32 %v5742_v32, %v3279_v8 }
 0x440   : > { %v3345_v63 = vmax.f32 %v3344_v25, %v3284_v28  ;;  %v3365_v30 = vmax.f32 %v3364_v23, %v3286_v7  ;;  %v3226_v26 = vmax.f32 %v3145_v29, %v3186_v6  ;;  %v3287_v45 = vsel %vm3251_vm5, %v3218_v58, -inf }
 0x441   : > { %v3092_v33 = vpop.f32.mrf.mxu0  ;;  %v3153_v48 = vpop.f32.mrf.mxu1  ;;  %v3231_v36 = vmax.f32 %v3088_v54, %v3191_v53  ;;  %v3233_v24 = vmax.f32 %v3149_v57, %v3193_v34  ;;  %v3090_v3 = vadd.f32 %v3089_v31, %v5701_v61  ;;  %v3355_v4 = vmax.f32 %v3354_v18, %v3285_v59 }
 0x442   : > { %v3346_v11 = vmax.f32 %v3345_v63, %v3292_v40  ;;  %v3366_v62 = vmax.f32 %v3365_v30, %v3294_v10  ;;  %v3151_v22 = vadd.f32 %v3150_v38, %v5706_v55  ;;  %v3293_v13 = vsel %vm3252_vm6, %v3224_v47, -inf }
 0x443   : > { %v3300_v32 = vsel %vm3253_vm7, %v3231_v36, -inf  ;;  %v3302_v1 = vsel %vm3253_vm7, %v3233_v24, -inf  ;;  %v3192_v16 = vmul.f32 0.2, %v3090_v3  ;;  %v3295_v25 = vsel %vm3252_vm6, %v3226_v26, -inf }
 0x444   : > { %v3347_v21 = vmax.f32 %v3346_v11, %v3300_v32  ;;  %v3367_v61 = vmax.f32 %v3366_v62, %v3302_v1  ;;  %v3194_v42 = vmul.f32 0.2, %v3151_v22  ;;  %v3321_v55 = vmax.f32 %v5718_v49, %v3320_v51 }
 0x445   : > { %v3341_v0 = vmax.f32 %v5720_v2, %v3340_v12  ;;  %v3375_v31 = vmax.f32 %v3374_v60, %v3287_v45  ;;  %v3232_v38 = vmax.f32 %v3090_v3, %v3192_v16  ;;  %v3356_v8 = vmax.f32 %v3355_v4, %v3293_v13 }
 0x446   : > { %v3348_v28 = vrot.slane %v3347_v21, 4  ;;  %v3368_v37 = vrot.slane %v3367_v61, 4  ;;  %v3234_v17 = vmax.f32 %v3151_v22, %v3194_v42  ;;  %v3331_v5 = vmax.f32 %v5714_v9, %v3330_v52 }
 0x447   : > { %v3376_v44 = vmax.f32 %v3375_v31, %v3295_v25  ;;  %v3301_v49 = vsel %vm3253_vm7, %v3232_v38, -inf  ;;  %v3322_v29 = vrot.slane %v3321_v55, 1  ;;  %v3342_v46 = vrot.slane %v3341_v0, 1 }
 0x448   : > { %v3349_v51 = vmax.f32 %v3347_v21, %v3348_v28  ;;  %v3369_v2 = vmax.f32 %v3367_v61, %v3368_v37  ;;  %v3357_v12 = vmax.f32 %v3356_v8, %v3301_v49  ;;  %v3303_v20 = vsel %vm3253_vm7, %v3234_v17, -inf }
 0x449   : > { %v3377_v56 = vmax.f32 %v3376_v44, %v3303_v20  ;;  %v3332_v54 = vrot.slane %v3331_v5, 1  ;;  %v3399_v9 = vunpack.c.0.s8 %v5729_v35  ;;  %v3323_v14 = vmax.f32 %v3321_v55, %v3322_v29 }
 0x44a   : > { %v3350_v7 = vrot.slane %v3349_v51, 2  ;;  %v3370_v41 = vrot.slane %v3369_v2, 2  ;;  %v3358_v19 = vrot.slane %v3357_v12, 4  ;;  %v3343_v15 = vmax.f32 %v3341_v0, %v3342_v46 }
 0x44b   : > { %v3378_v57 = vrot.slane %v3377_v56, 4  ;;  %v3313_v27 = vmax.f32 %v3311_v39, %v3312_v50  ;;  %v3333_v23 = vmax.f32 %v3331_v5, %v3332_v54  ;;  %v3402_v53 = vsub.s32 %v3399_v9, %v4918_v43 }
 0x44c   : > { %v3351_v52 = vmax.f32 %v3349_v51, %v3350_v7  ;;  %v3359_v58 = vmax.f32 %v3357_v12, %v3358_v19  ;;  %v3371_v6 = vmax.f32 %v3369_v2, %v3370_v41 }
 0x44d   : > { %v3379_v33 = vmax.f32 %v3377_v56, %v3378_v57  ;;  %v3393_v40 = vcombine.low %v3313_v27, %v3323_v14  ;;  %v3394_v10 = vcombine.low %v3333_v23, %v3343_v15 }
 0x44e   : > { %v3360_v48 = vrot.slane %v3359_v58, 2  ;;  %v3352_v34 = vrot.slane %v3351_v52, 1  ;;  %v3372_v35 = vrot.slane %v3371_v6, 1 }
 0x44f   : > { %v3380_v18 = vrot.slane %v3379_v33, 2  ;;  %v3403_v45 = vrot.slane %v3393_v40, %v3402_v53  ;;  %v3410_v36 = vrot.slane %v3394_v10, %v3402_v53 }
 0x450   : > { %v3361_v59 = vmax.f32 %v3359_v58, %v3360_v48  ;;  %v3353_v30 = vmax.f32 %v3351_v52, %v3352_v34  ;;  %v3373_v24 = vmax.f32 %v3371_v6, %v3372_v35 }
 0x451   : > { %v3381_v47 = vmax.f32 %v3379_v33, %v3380_v18  ;;  %v3425_v62 = vcombine.low %v3403_v45, %v3410_v36 }
 0x452   : > { %v3362_v60 = vrot.slane %v3361_v59, 1 }
 0x453   : > { %v3382_v63 = vrot.slane %v3381_v47, 1  ;;  %v3433_v32 = vrot.slane %v3425_v62, %v3402_v53 }
 0x454   : > { %v3363_v26 = vmax.f32 %v3361_v59, %v3362_v60 }
 0x455   : > { %v3383_v3 = vmax.f32 %v3381_v47, %v3382_v63 }
 0x456   : > { %v3395_v4 = vcombine.low %v3353_v30, %v3363_v26 }
 0x457   : > { %v3396_v11 = vcombine.low %v3373_v24, %v3383_v3 }
 0x458   : > { %v3417_v43 = vrot.slane %v3395_v4, %v3402_v53 }
 0x459   : > { %v3424_v22 = vrot.slane %v3396_v11, %v3402_v53 }
 0x45b   : > { %v3426_v13 = vcombine.low %v3417_v43, %v3424_v22 }
 0x45d   : > { %v3440_v1 = vrot.slane %v3426_v13, %v3402_v53 }
 0x45f   : > { %v3441_v16 = vcombine.low %v3433_v32, %v3440_v1 }
 0x461   : > { %3444 = vst [vmem:[%s380_s10] sm:$0xff] %v3441_v16 }
 0x462   : > { %4513 = shalt.err (!%p4510_p1)
}
 0x463   : > { %s4514_s15 = scalar_lea.hbm %s3460_s19, 128  ;;  %s4518_s17 = scalar_lea.hbm %s5900_s14, 512 }
 0x464   : > { %p4515_p2 = scmp.ne.s32.totalorder %s3460_s19, %s4514_s15  ;;  %p4519_p8 = scmp.lt.s32.totalorder %s3460_s19, %s5900_s14 }
 0x465   : > { %p4520_p10 = scmp.lt.s32.totalorder %s4518_s17, %s4514_s15 }
 0x466   : > { %p4516_p4 = pnand %p4515_p2, %p4797_p11 }
 0x467   : > { %p4521_p3 = por %p4520_p10, %p4519_p8 }
 0x468   : > { %p4517_p6 = pneg %p4516_p4 }
 0x46a   : > { %p4522_p0 = pnand %p4521_p3, %p4517_p6 }
 0x46c   : > { %4525 = shalt.err (!%p4522_p0)
}
 0x46d   : > { %4245 = dma.vmem_to_hbm [thread:$0]  (%p4797_p11), %s3463_s2, 128, %s3460_s19, %s3446_s5  }
 0x46e PF: > { %s5901_s12 = sld [smem:[#allocation17_spill]] }
 0x46f   : > { %s5902_s23 = sld [smem:[#allocation16_spill]] }
 0x470   : > { %s5903_s21 = sld [smem:[#allocation18_spill]] }
 0x474   : > { %p4277_p5 = scmp.ge.s32.totalorder %s5901_s12, 2 }
 0x475   : > { %s3474_s3 = sand.u32 1, %s5902_s23  }
 0x476   : > { %p5904_p7 = scmp.ne.s32.totalorder %s5903_s21, 0  ;;  %s3475_s16 = scalar_lea.sflag [#allocation4], %s3474_s3 }
 0x478   : > { %p4265_p9 = pnand %p4277_p5, %p5904_p7 }
 0x47a   : > { %p4266_p12 = pneg %p4265_p9 }
 0x47c   : > { %4571 = dma.done.wait (%p4266_p12), %s3475_s16, 128  }
 0x47d   : > { %4573 = vsyncadd (%p4266_p12), %s3475_s16, 4294967168  ;;  %s25_s8 = sadd.s32 1, %s5901_s12   ;;  %s5905_s1 = sld [smem:[#allocation19_spill]] }
 0x47e   : > { %p22_p13 = scmp.ge.s32.totalorder %s25_s8, 6   ;;  %s5906_s10 = sld [smem:[#allocation20_spill]] }
 0x47f   : > { %s5907_s24 = smov %s4580_s25  ;;  %s5908_s25 = smov %s4584_s26 }
 0x480   : > { %s5909_s26 = smov %s4816_s22  ;;  %s5910_s27 = smov %s4596_s29 }
 0x481   : > { %s5911_s28 = smov %s4600_s30  ;;  %24 = sbr.rel (!%p22_p13) target bundleno = 15 (0xf), region = 113 }
 0x483   : > { %s5912_s29 = smov %s5905_s1 }
 0x484   : > { %s5913_s30 = smov %s5906_s10 }
 0x486   :  { %3480 = vsyncpa [#allocation3], 1 }
 0x487   :  { %3482 = vsyncpa [#allocation3 + $0x1], 1 }
 0x488   :  { %3483 = vsyncpa [#allocation6], 1 }
 0x489   :  { %3484 = vsyncpa [#allocation9], 1 }
 0x48a   :  { %3485 = vsyncpa [#allocation4], 1 }
 0x48b   :  { %3487 = vsyncpa [#allocation4 + $0x1], 1 }

</bundles_post_ra>
